<compile_context>
chip_gen: v6e
topology: v6e:2x2x1
jax: 0.10.0
libtpu: 0.0.40
codegen_flags: <defaults>
</compile_context>

<pallas_src>
import functools

import jax
import jax.numpy as jnp
from jax import lax
from jax.experimental import pallas as pl
from jax.experimental.pallas import tpu as pltpu

EPS = 1e-5
LANE = 128                      # TPU lane width; channels padded to this
VMEM_LIMIT = 32 * 1024 * 1024   # safe on v5e / v6e / v7x


# ---------------------------- in-kernel helpers ----------------------------

def _conv3x3_acc(xpad_ref, w_ref, b_ref, H, W):
    """3x3 'same' conv + bias as 9 shifted MXU matmuls over a zero-halo VMEM tile.

    xpad_ref: [H+2, W+2, CP] f32 scratch (halo already zero, interior freshly written)
    w_ref:    [9, CP, CP]    bf16 weights, ordered (dy*3+dx, cin, cout)
    b_ref:    [1, CP]        f32 bias
    returns:  [H*W, CP]      f32 conv output rows
    """
    CP = xpad_ref.shape[-1]
    Cout = w_ref.shape[2]
    acc = jnp.zeros((H * W, Cout), jnp.float32)
    for k in range(9):
        dy, dx = divmod(k, 3)
        patch = xpad_ref[dy:dy + H, dx:dx + W, :].reshape(H * W, CP)
        acc = acc + jnp.dot(patch.astype(jnp.bfloat16), w_ref[k],
                            preferred_element_type=jnp.float32)
    return acc + b_ref[...]


def _bn_scale_shift(s_ref, q_ref, g_ref, bt_ref, count):
    """Per-channel BN scale/shift vectors from global sum / sum-of-squares."""
    inv = 1.0 / count
    mean = s_ref[...] * inv
    var = jnp.maximum(q_ref[...] * inv - mean * mean, 0.0)
    scale = g_ref[...] * lax.rsqrt(var + EPS)
    shift = bt_ref[...] - mean * scale
    return scale, shift


# ---------------------------- Pallas kernels ----------------------------

def _stage1_kernel(x_ref, w0_ref, b0_ref, w1_ref, b1_ref,
                   xpool_ref, z1_ref, sum_ref, sq_ref,
                   xpad0, zpad, ppad1):
    """conv0+bias -> maxpool(3,2,1) -> conv1+bias, plus BN1 stat accumulation."""
    H, W, CP = x_ref.shape
    Ho, Wo, _ = xpool_ref.shape

    @pl.when(pl.program_id(0) == 0)
    def _init():
        # Halos stay constant across the whole grid; only interiors change per image.
        xpad0[...] = jnp.zeros(xpad0.shape, jnp.float32)
        zpad[...] = jnp.full(zpad.shape, -jnp.inf, jnp.float32)
        ppad1[...] = jnp.zeros(ppad1.shape, jnp.float32)
        sum_ref[...] = jnp.zeros_like(sum_ref)
        sq_ref[...] = jnp.zeros_like(sq_ref)

    # initial conv + bias
    xpad0[1:H + 1, 1:W + 1, :] = x_ref[...]
    z0 = _conv3x3_acc(xpad0, w0_ref, b0_ref, H, W)           # [H*W, CP]
    zpad[1:H + 1, 1:W + 1, :] = z0.reshape(H, W, CP)

    # 3x3 / stride-2 / pad-1 max pool: 9 strided window taps straight from VMEM.
    pooled = jnp.full((Ho, Wo, CP), -jnp.inf, jnp.float32)
    for dy in range(3):
        for dx in range(3):
            tap = zpad[pl.ds(dy, Ho, stride=2), pl.ds(dx, Wo, stride=2), :]
            pooled = jnp.maximum(pooled, tap)
    xpool_ref[...] = pooled                                   # needed for residual add

    # residual block 1 conv + bias: pooled input never round-trips through HBM.
    ppad1[1:Ho + 1, 1:Wo + 1, :] = pooled
    z1 = _conv3x3_acc(ppad1, w1_ref, b1_ref, Ho, Wo)          # [Ho*Wo, CP]
    z1_ref[...] = z1.reshape(Ho, Wo, CP)

    # BN1 batch statistics accumulated across the (arbitrary) batch grid axis.
    sum_ref[...] += jnp.sum(z1, axis=0, keepdims=True)
    sq_ref[...] += jnp.sum(z1 * z1, axis=0, keepdims=True)


def _stage2_kernel(z1_ref, s1_ref, q1_ref, g1_ref, bt1_ref, w2_ref, b2_ref,
                   z2_ref, sum_ref, sq_ref, apad, *, count):
    """BN1 apply + ReLU (from global stats) fused with conv2+bias and BN2 stats."""
    Ho, Wo, CP = z1_ref.shape

    @pl.when(pl.program_id(0) == 0)
    def _init():
        apad[...] = jnp.zeros(apad.shape, jnp.float32)
        sum_ref[...] = jnp.zeros_like(sum_ref)
        sq_ref[...] = jnp.zeros_like(sq_ref)

    scale, shift = _bn_scale_shift(s1_ref, q1_ref, g1_ref, bt1_ref, count)
    a1 = jnp.maximum(z1_ref[...] * scale + shift, 0.0)        # BN1 + ReLU, in VMEM only

    # residual block 2 conv + bias
    apad[1:Ho + 1, 1:Wo + 1, :] = a1
    z2 = _conv3x3_acc(apad, w2_ref, b2_ref, Ho, Wo)           # [Ho*Wo, CP]
    z2_ref[...] = z2.reshape(Ho, Wo, CP)

    # BN2 batch statistics accumulated across the (arbitrary) batch grid axis.
    sum_ref[...] += jnp.sum(z2, axis=0, keepdims=True)
    sq_ref[...] += jnp.sum(z2 * z2, axis=0, keepdims=True)


def _bn_relu_add_kernel(z_ref, s_ref, q_ref, g_ref, bt_ref, res_ref, o_ref, *, count):
    """Row-tiled training-mode BN2 + affine + ReLU with the residual add fused."""
    scale, shift = _bn_scale_shift(s_ref, q_ref, g_ref, bt_ref, count)
    o_ref[...] = jnp.maximum(z_ref[...] * scale + shift, 0.0) + res_ref[...]


# ---------------------------- pallas_call wrappers ----------------------------

def _stage1(x, w0, b0, w1, b1):
    N, H, W, CP = x.shape
    Ho = (H - 1) // 2 + 1
    Wo = (W - 1) // 2 + 1
    img_in = pl.BlockSpec((None, H, W, CP), lambda n: (n, 0, 0, 0))
    img_out = pl.BlockSpec((None, Ho, Wo, CP), lambda n: (n, 0, 0, 0))
    wspec = pl.BlockSpec((9, CP, CP), lambda n: (0, 0, 0))
    vspec = pl.BlockSpec((1, CP), lambda n: (0, 0))
    return pl.pallas_call(
        _stage1_kernel,
        grid=(N,),
        in_specs=[img_in, wspec, vspec, wspec, vspec],
        out_specs=[img_out, img_out, vspec, vspec],
        out_shape=[
            jax.ShapeDtypeStruct((N, Ho, Wo, CP), jnp.float32),   # xpool (residual)
            jax.ShapeDtypeStruct((N, Ho, Wo, CP), jnp.float32),   # z1 (pre-BN1)
            jax.ShapeDtypeStruct((1, CP), jnp.float32),           # sum1
            jax.ShapeDtypeStruct((1, CP), jnp.float32),           # sumsq1
        ],
        scratch_shapes=[
            pltpu.VMEM((H + 2, W + 2, CP), jnp.float32),    # zero-halo conv0 input
            pltpu.VMEM((H + 2, W + 2, CP), jnp.float32),    # -inf-halo conv0 output
            pltpu.VMEM((Ho + 2, Wo + 2, CP), jnp.float32),  # zero-halo conv1 input
        ],
        compiler_params=pltpu.CompilerParams(
            dimension_semantics=("arbitrary",),             # resident stat accumulators
            vmem_limit_bytes=VMEM_LIMIT,
        ),
    )(x, w0, b0, w1, b1)


def _stage2(z1, s1, q1, g1, bt1, w2, b2, count):
    N, Ho, Wo, CP = z1.shape
    img = pl.BlockSpec((None, Ho, Wo, CP), lambda n: (n, 0, 0, 0))
    wspec = pl.BlockSpec((9, CP, CP), lambda n: (0, 0, 0))
    vspec = pl.BlockSpec((1, CP), lambda n: (0, 0))
    return pl.pallas_call(
        functools.partial(_stage2_kernel, count=float(count)),
        grid=(N,),
        in_specs=[img, vspec, vspec, vspec, vspec, wspec, vspec],
        out_specs=[img, vspec, vspec],
        out_shape=[
            jax.ShapeDtypeStruct((N, Ho, Wo, CP), jnp.float32),   # z2 (pre-BN2)
            jax.ShapeDtypeStruct((1, CP), jnp.float32),           # sum2
            jax.ShapeDtypeStruct((1, CP), jnp.float32),           # sumsq2
        ],
        scratch_shapes=[pltpu.VMEM((Ho + 2, Wo + 2, CP), jnp.float32)],
        compiler_params=pltpu.CompilerParams(
            dimension_semantics=("arbitrary",),
            vmem_limit_bytes=VMEM_LIMIT,
        ),
    )(z1, s1, q1, g1, bt1, w2, b2)


def _row_block(m):
    """Largest multiple-of-8 divisor of m (< m, capped at 512), so the row axis tiles."""
    best = None
    for cand in range(8, min(512, m - 1) + 1, 8):
        if m % cand == 0:
            best = cand
    return best if best is not None else m


def _bn_relu_add(z2d, ssum, ssq, gamma, beta, residual, count):
    M, C = z2d.shape
    rb = _row_block(M)
    row_spec = pl.BlockSpec((rb, C), lambda i: (i, 0))
    vec_spec = pl.BlockSpec((1, C), lambda i: (0, 0))
    return pl.pallas_call(
        functools.partial(_bn_relu_add_kernel, count=float(count)),
        grid=(M // rb,),
        in_specs=[row_spec, vec_spec, vec_spec, vec_spec, vec_spec, row_spec],
        out_specs=row_spec,
        out_shape=jax.ShapeDtypeStruct((M, C), jnp.float32),
        compiler_params=pltpu.CompilerParams(
            dimension_semantics=("parallel",),
            vmem_limit_bytes=VMEM_LIMIT,
        ),
    )(z2d, ssum, ssq, gamma, beta, residual)


# ---------------------------- parameter packing (glue) ----------------------------

def _pad_last(a, target):
    pad = target - a.shape[-1]
    if pad == 0:
        return a
    widths = [(0, 0)] * (a.ndim - 1) + [(0, pad)]
    return jnp.pad(a, widths)


def _prep_weight(w, cp):
    kh, kw, ci, co = w.shape
    wp = jnp.pad(w.astype(jnp.float32), ((0, 0), (0, 0), (0, cp - ci), (0, cp - co)))
    return wp.reshape(kh * kw, cp, cp).astype(jnp.bfloat16)


def _prep_vec(v, cp):
    return jnp.pad(v.astype(jnp.float32), (0, cp - v.shape[0])).reshape(1, cp)


# ---------------------------- ResidualStack forward ----------------------------

def residual_stack_forward(x_nchw, p):
    x = jnp.transpose(x_nchw, (0, 2, 3, 1)).astype(jnp.float32)  # NCHW -> NHWC
    N, H, W, Cin = x.shape
    Cout = p["w0"].shape[-1]
    assert Cin <= LANE and Cout <= LANE, "channel tiling beyond 128 lanes not implemented"
    CP = LANE

    xp = _pad_last(x, CP)                                        # [N, H, W, CP]
    w0, b0 = _prep_weight(p["w0"], CP), _prep_vec(p["b0"], CP)
    w1, b1 = _prep_weight(p["w1"], CP), _prep_vec(p["b1"], CP)
    g1, be1 = _prep_vec(p["g1"], CP), _prep_vec(p["be1"], CP)
    w2, b2 = _prep_weight(p["w2"], CP), _prep_vec(p["b2"], CP)
    g2, be2 = _prep_vec(p["g2"], CP), _prep_vec(p["be2"], CP)

    # stage 1: conv0+bias -> maxpool -> conv1+bias, BN1 stats
    xpool, z1, s1, q1 = _stage1(xp, w0, b0, w1, b1)              # [N, Ho, Wo, CP]
    _, Ho, Wo, _ = xpool.shape
    M = N * Ho * Wo                                              # BN count over (N,H,W)

    # stage 2: BN1+ReLU applied on the fly -> conv2+bias, BN2 stats
    z2, s2, q2 = _stage2(z1, s1, q1, g1, be1, w2, b2, M)

    # stage 3: BN2 + affine + ReLU + residual add (row-tiled, lane-dense)
    out2d = _bn_relu_add(z2.reshape(M, CP), s2, q2, g2, be2,
                         xpool.reshape(M, CP), M)

    out = out2d.reshape(N, Ho, Wo, CP)[..., :Cout]               # drop lane padding
    return jnp.transpose(out, (0, 3, 1, 2))                      # back to NCHW


# ---------------------------- pure-JAX f32 reference ----------------------------

def _ref_forward(x_nchw, p):
    x = jnp.transpose(x_nchw, (0, 2, 3, 1)).astype(jnp.float32)

    def conv(h, w, b):
        return lax.conv_general_dilated(
            h, w, (1, 1), ((1, 1), (1, 1)),
            dimension_numbers=("NHWC", "HWIO", "NHWC")) + b

    z = conv(x, p["w0"], p["b0"])
    xpool = lax.reduce_window(z, -jnp.inf, lax.max,
                              (1, 3, 3, 1), (1, 2, 2, 1),
                              ((0, 0), (1, 1), (1, 1), (0, 0)))

    def block(h, w, b, g, bt):
        zz = conv(h, w, b)
        mean = zz.mean(axis=(0, 1, 2), keepdims=True)
        var = ((zz - mean) ** 2).mean(axis=(0, 1, 2), keepdims=True)
        return jnp.maximum((zz - mean) * lax.rsqrt(var + EPS) * g + bt, 0.0)

    z1 = block(xpool, p["w1"], p["b1"], p["g1"], p["be1"])
    z2 = block(z1, p["w2"], p["b2"], p["g2"], p["be2"])
    return jnp.transpose(z2 + xpool, (0, 3, 1, 2))


# ---------------------------- main ----------------------------

if __name__ == "__main__":
    N, Cin, Cout, H, W = 2, 4, 8, 16, 16
    key = jax.random.PRNGKey(0)
    ks = jax.random.split(key, 11)

    params = {
        # HWIO conv weights (deterministic synthetic init), biases, BN affine params.
        "w0": jax.random.normal(ks[0], (3, 3, Cin, Cout), jnp.float32) * 0.1,
        "b0": jax.random.normal(ks[1], (Cout,), jnp.float32) * 0.1,
        "w1": jax.random.normal(ks[2], (3, 3, Cout, Cout), jnp.float32) * 0.1,
        "b1": jax.random.normal(ks[3], (Cout,), jnp.float32) * 0.1,
        "g1": 1.0 + 0.1 * jax.random.normal(ks[4], (Cout,), jnp.float32),
        "be1": 0.1 * jax.random.normal(ks[5], (Cout,), jnp.float32),
        "w2": jax.random.normal(ks[6], (3, 3, Cout, Cout), jnp.float32) * 0.1,
        "b2": jax.random.normal(ks[7], (Cout,), jnp.float32) * 0.1,
        "g2": 1.0 + 0.1 * jax.random.normal(ks[8], (Cout,), jnp.float32),
        "be2": 0.1 * jax.random.normal(ks[9], (Cout,), jnp.float32),
    }
    x = jax.random.normal(ks[10], (N, Cin, H, W), jnp.float32)  # NCHW, like PyTorch

    fwd = jax.jit(residual_stack_forward)
    out = jax.block_until_ready(fwd(x, params))

    ref = jax.block_until_ready(_ref_forward(x, params))
    assert out.shape == (N, Cout, H // 2, W // 2), out.shape
    # Tolerance covers the bf16 MXU operands (accumulation and all BN math stay f32).
    max_err = float(jnp.max(jnp.abs(out - ref)))
    assert max_err < 5e-2, f"max abs err too large: {max_err}"

    print("KERNEL_OK")
</pallas_src>

<mosaic_0001>
module attributes {stable_mosaic.version = 11 : i64} {
  func.func @_stage1_kernel(%arg0: i32, %arg1: memref<1x16x16x128xf32, #tpu.memory_space<vmem>>, %arg2: memref<9x128x128xbf16, #tpu.memory_space<vmem>>, %arg3: memref<1x128xf32, #tpu.memory_space<vmem>>, %arg4: memref<9x128x128xbf16, #tpu.memory_space<vmem>>, %arg5: memref<1x128xf32, #tpu.memory_space<vmem>>, %arg6: memref<1x8x8x128xf32, #tpu.memory_space<vmem>>, %arg7: memref<1x8x8x128xf32, #tpu.memory_space<vmem>>, %arg8: memref<1x128xf32, #tpu.memory_space<vmem>>, %arg9: memref<1x128xf32, #tpu.memory_space<vmem>>, %arg10: memref<18x18x128xf32, #tpu.memory_space<vmem>>, %arg11: memref<18x18x128xf32, #tpu.memory_space<vmem>>, %arg12: memref<10x10x128xf32, #tpu.memory_space<vmem>>) attributes {dimension_semantics = [#tpu.dimension_semantics<arbitrary>], iteration_bounds = array<i64: 2>, scalar_prefetch = 0 : i64, scratch_operands = 3 : i64, tpu.core_type = #tpu.core_type<tc>, window_params = [{transform_indices = @transform_0, window_bounds = array<i64: 1, 16, 16, 128>}, {pipeline_mode = #tpu.pipeline_mode<synchronous>, transform_indices = @transform_1, window_bounds = array<i64: 9, 128, 128>}, {pipeline_mode = #tpu.pipeline_mode<synchronous>, transform_indices = @transform_2, window_bounds = array<i64: 1, 128>}, {pipeline_mode = #tpu.pipeline_mode<synchronous>, transform_indices = @transform_3, window_bounds = array<i64: 9, 128, 128>}, {pipeline_mode = #tpu.pipeline_mode<synchronous>, transform_indices = @transform_4, window_bounds = array<i64: 1, 128>}, {transform_indices = @transform_5, window_bounds = array<i64: 1, 8, 8, 128>}, {transform_indices = @transform_6, window_bounds = array<i64: 1, 8, 8, 128>}, {pipeline_mode = #tpu.pipeline_mode<synchronous>, transform_indices = @transform_7, window_bounds = array<i64: 1, 128>}, {pipeline_mode = #tpu.pipeline_mode<synchronous>, transform_indices = @transform_8, window_bounds = array<i64: 1, 128>}]} {
    %c0_i32 = arith.constant 0 : i32
    %0 = arith.cmpi eq, %arg0, %c0_i32 : i32
    %1 = arith.extui %0 : i1 to i32
    %c0_i32_0 = arith.constant 0 : i32
    %2 = arith.cmpi ne, %1, %c0_i32_0 : i32
    scf.if %2 {
      %cst_182 = arith.constant 0.000000e+00 : f32
      %180 = vector.broadcast %cst_182 : f32 to vector<18x18x128xf32>
      %c0_183 = arith.constant 0 : index
      %c0_184 = arith.constant 0 : index
      %c0_185 = arith.constant 0 : index
      %181 = vector.load %arg10[%c0_183, %c0_184, %c0_185] : memref<18x18x128xf32, #tpu.memory_space<vmem>>, vector<18x18x128xf32>
      tpu.vector_store %arg10[%c0_183, %c0_184, %c0_185], %180 {strides = array<i32>} : memref<18x18x128xf32, #tpu.memory_space<vmem>>, vector<18x18x128xf32>,
      %cst_186 = arith.constant 0xFF800000 : f32
      %182 = vector.broadcast %cst_186 : f32 to vector<18x18x128xf32>
      %c0_187 = arith.constant 0 : index
      %c0_188 = arith.constant 0 : index
      %c0_189 = arith.constant 0 : index
      %183 = vector.load %arg11[%c0_187, %c0_188, %c0_189] : memref<18x18x128xf32, #tpu.memory_space<vmem>>, vector<18x18x128xf32>
      tpu.vector_store %arg11[%c0_187, %c0_188, %c0_189], %182 {strides = array<i32>} : memref<18x18x128xf32, #tpu.memory_space<vmem>>, vector<18x18x128xf32>,
      %cst_190 = arith.constant 0.000000e+00 : f32
      %184 = vector.broadcast %cst_190 : f32 to vector<10x10x128xf32>
      %c0_191 = arith.constant 0 : index
      %c0_192 = arith.constant 0 : index
      %c0_193 = arith.constant 0 : index
      %185 = vector.load %arg12[%c0_191, %c0_192, %c0_193] : memref<10x10x128xf32, #tpu.memory_space<vmem>>, vector<10x10x128xf32>
      tpu.vector_store %arg12[%c0_191, %c0_192, %c0_193], %184 {strides = array<i32>} : memref<10x10x128xf32, #tpu.memory_space<vmem>>, vector<10x10x128xf32>,
      %cst_194 = arith.constant 0.000000e+00 : f32
      %186 = vector.broadcast %cst_194 : f32 to vector<1x128xf32>
      %c0_195 = arith.constant 0 : index
      %c0_196 = arith.constant 0 : index
      %187 = vector.load %arg8[%c0_195, %c0_196] : memref<1x128xf32, #tpu.memory_space<vmem>>, vector<1x128xf32>
      tpu.vector_store %arg8[%c0_195, %c0_196], %186 {strides = array<i32>} : memref<1x128xf32, #tpu.memory_space<vmem>>, vector<1x128xf32>,
      %cst_197 = arith.constant 0.000000e+00 : f32
      %188 = vector.broadcast %cst_197 : f32 to vector<1x128xf32>
      %c0_198 = arith.constant 0 : index
      %c0_199 = arith.constant 0 : index
      %189 = vector.load %arg9[%c0_198, %c0_199] : memref<1x128xf32, #tpu.memory_space<vmem>>, vector<1x128xf32>
      tpu.vector_store %arg9[%c0_198, %c0_199], %188 {strides = array<i32>} : memref<1x128xf32, #tpu.memory_space<vmem>>, vector<1x128xf32>,
    } else {
    }
    %c0 = arith.constant 0 : index
    %c0_1 = arith.constant 0 : index
    %c0_2 = arith.constant 0 : index
    %c0_3 = arith.constant 0 : index
    %3 = vector.load %arg1[%c0, %c0_1, %c0_2, %c0_3] : memref<1x16x16x128xf32, #tpu.memory_space<vmem>>, vector<1x16x16x128xf32>
    %4 = vector.shape_cast %3 : vector<1x16x16x128xf32> to vector<16x16x128xf32>
    %c1 = arith.constant 1 : index
    %c1_4 = arith.constant 1 : index
    %c0_5 = arith.constant 0 : index
    %5 = vector.load %arg10[%c1, %c1_4, %c0_5] : memref<18x18x128xf32, #tpu.memory_space<vmem>>, vector<16x16x128xf32>
    tpu.vector_store %arg10[%c1, %c1_4, %c0_5], %4 {strides = array<i32>} : memref<18x18x128xf32, #tpu.memory_space<vmem>>, vector<16x16x128xf32>,
    %cst = arith.constant 0.000000e+00 : f32
    %6 = vector.broadcast %cst : f32 to vector<256x128xf32>
    %c0_6 = arith.constant 0 : index
    %c0_7 = arith.constant 0 : index
    %c0_8 = arith.constant 0 : index
    %7 = vector.load %arg10[%c0_6, %c0_7, %c0_8] : memref<18x18x128xf32, #tpu.memory_space<vmem>>, vector<16x16x128xf32>
    %8 = vector.shape_cast %7 : vector<16x16x128xf32> to vector<256x128xf32>
    %9 = arith.truncf %8 : vector<256x128xf32> to vector<256x128xbf16>
    %c0_9 = arith.constant 0 : index
    %c0_10 = arith.constant 0 : index
    %c0_11 = arith.constant 0 : index
    %10 = vector.load %arg2[%c0_9, %c0_10, %c0_11] : memref<9x128x128xbf16, #tpu.memory_space<vmem>>, vector<1x128x128xbf16>
    %11 = vector.shape_cast %10 : vector<1x128x128xbf16> to vector<128x128xbf16>
    %cst_12 = arith.constant dense<0.000000e+00> : vector<256x128xf32>
    %12 = tpu.matmul %9, %11, %cst_12 {dimension_numbers = #tpu.dot_dimension_numbers<[1], [0], [0], [1], [0, 0, 1, 1], [], []>} : vector<256x128xbf16>, vector<128x128xbf16>, vector<256x128xf32> -> vector<256x128xf32>
    %13 = arith.addf %6, %12 : vector<256x128xf32>
    %c0_13 = arith.constant 0 : index
    %c1_14 = arith.constant 1 : index
    %c0_15 = arith.constant 0 : index
    %14 = vector.load %arg10[%c0_13, %c1_14, %c0_15] : memref<18x18x128xf32, #tpu.memory_space<vmem>>, vector<16x16x128xf32>
    %15 = vector.shape_cast %14 : vector<16x16x128xf32> to vector<256x128xf32>
    %16 = arith.truncf %15 : vector<256x128xf32> to vector<256x128xbf16>
    %c1_16 = arith.constant 1 : index
    %c0_17 = arith.constant 0 : index
    %c0_18 = arith.constant 0 : index
    %17 = vector.load %arg2[%c1_16, %c0_17, %c0_18] : memref<9x128x128xbf16, #tpu.memory_space<vmem>>, vector<1x128x128xbf16>
    %18 = vector.shape_cast %17 : vector<1x128x128xbf16> to vector<128x128xbf16>
    %cst_19 = arith.constant dense<0.000000e+00> : vector<256x128xf32>
    %19 = tpu.matmul %16, %18, %cst_19 {dimension_numbers = #tpu.dot_dimension_numbers<[1], [0], [0], [1], [0, 0, 1, 1], [], []>} : vector<256x128xbf16>, vector<128x128xbf16>, vector<256x128xf32> -> vector<256x128xf32>
    %20 = arith.addf %13, %19 : vector<256x128xf32>
    %c0_20 = arith.constant 0 : index
    %c2 = arith.constant 2 : index
    %c0_21 = arith.constant 0 : index
    %21 = vector.load %arg10[%c0_20, %c2, %c0_21] : memref<18x18x128xf32, #tpu.memory_space<vmem>>, vector<16x16x128xf32>
    %22 = vector.shape_cast %21 : vector<16x16x128xf32> to vector<256x128xf32>
    %23 = arith.truncf %22 : vector<256x128xf32> to vector<256x128xbf16>
    %c2_22 = arith.constant 2 : index
    %c0_23 = arith.constant 0 : index
    %c0_24 = arith.constant 0 : index
    %24 = vector.load %arg2[%c2_22, %c0_23, %c0_24] : memref<9x128x128xbf16, #tpu.memory_space<vmem>>, vector<1x128x128xbf16>
    %25 = vector.shape_cast %24 : vector<1x128x128xbf16> to vector<128x128xbf16>
    %cst_25 = arith.constant dense<0.000000e+00> : vector<256x128xf32>
    %26 = tpu.matmul %23, %25, %cst_25 {dimension_numbers = #tpu.dot_dimension_numbers<[1], [0], [0], [1], [0, 0, 1, 1], [], []>} : vector<256x128xbf16>, vector<128x128xbf16>, vector<256x128xf32> -> vector<256x128xf32>
    %27 = arith.addf %20, %26 : vector<256x128xf32>
    %c1_26 = arith.constant 1 : index
    %c0_27 = arith.constant 0 : index
    %c0_28 = arith.constant 0 : index
    %28 = vector.load %arg10[%c1_26, %c0_27, %c0_28] : memref<18x18x128xf32, #tpu.memory_space<vmem>>, vector<16x16x128xf32>
    %29 = vector.shape_cast %28 : vector<16x16x128xf32> to vector<256x128xf32>
    %30 = arith.truncf %29 : vector<256x128xf32> to vector<256x128xbf16>
    %c3 = arith.constant 3 : index
    %c0_29 = arith.constant 0 : index
    %c0_30 = arith.constant 0 : index
    %31 = vector.load %arg2[%c3, %c0_29, %c0_30] : memref<9x128x128xbf16, #tpu.memory_space<vmem>>, vector<1x128x128xbf16>
    %32 = vector.shape_cast %31 : vector<1x128x128xbf16> to vector<128x128xbf16>
    %cst_31 = arith.constant dense<0.000000e+00> : vector<256x128xf32>
    %33 = tpu.matmul %30, %32, %cst_31 {dimension_numbers = #tpu.dot_dimension_numbers<[1], [0], [0], [1], [0, 0, 1, 1], [], []>} : vector<256x128xbf16>, vector<128x128xbf16>, vector<256x128xf32> -> vector<256x128xf32>
    %34 = arith.addf %27, %33 : vector<256x128xf32>
    %c1_32 = arith.constant 1 : index
    %c1_33 = arith.constant 1 : index
    %c0_34 = arith.constant 0 : index
    %35 = vector.load %arg10[%c1_32, %c1_33, %c0_34] : memref<18x18x128xf32, #tpu.memory_space<vmem>>, vector<16x16x128xf32>
    %36 = vector.shape_cast %35 : vector<16x16x128xf32> to vector<256x128xf32>
    %37 = arith.truncf %36 : vector<256x128xf32> to vector<256x128xbf16>
    %c4 = arith.constant 4 : index
    %c0_35 = arith.constant 0 : index
    %c0_36 = arith.constant 0 : index
    %38 = vector.load %arg2[%c4, %c0_35, %c0_36] : memref<9x128x128xbf16, #tpu.memory_space<vmem>>, vector<1x128x128xbf16>
    %39 = vector.shape_cast %38 : vector<1x128x128xbf16> to vector<128x128xbf16>
    %cst_37 = arith.constant dense<0.000000e+00> : vector<256x128xf32>
    %40 = tpu.matmul %37, %39, %cst_37 {dimension_numbers = #tpu.dot_dimension_numbers<[1], [0], [0], [1], [0, 0, 1, 1], [], []>} : vector<256x128xbf16>, vector<128x128xbf16>, vector<256x128xf32> -> vector<256x128xf32>
    %41 = arith.addf %34, %40 : vector<256x128xf32>
    %c1_38 = arith.constant 1 : index
    %c2_39 = arith.constant 2 : index
    %c0_40 = arith.constant 0 : index
    %42 = vector.load %arg10[%c1_38, %c2_39, %c0_40] : memref<18x18x128xf32, #tpu.memory_space<vmem>>, vector<16x16x128xf32>
    %43 = vector.shape_cast %42 : vector<16x16x128xf32> to vector<256x128xf32>
    %44 = arith.truncf %43 : vector<256x128xf32> to vector<256x128xbf16>
    %c5 = arith.constant 5 : index
    %c0_41 = arith.constant 0 : index
    %c0_42 = arith.constant 0 : index
    %45 = vector.load %arg2[%c5, %c0_41, %c0_42] : memref<9x128x128xbf16, #tpu.memory_space<vmem>>, vector<1x128x128xbf16>
    %46 = vector.shape_cast %45 : vector<1x128x128xbf16> to vector<128x128xbf16>
    %cst_43 = arith.constant dense<0.000000e+00> : vector<256x128xf32>
    %47 = tpu.matmul %44, %46, %cst_43 {dimension_numbers = #tpu.dot_dimension_numbers<[1], [0], [0], [1], [0, 0, 1, 1], [], []>} : vector<256x128xbf16>, vector<128x128xbf16>, vector<256x128xf32> -> vector<256x128xf32>
    %48 = arith.addf %41, %47 : vector<256x128xf32>
    %c2_44 = arith.constant 2 : index
    %c0_45 = arith.constant 0 : index
    %c0_46 = arith.constant 0 : index
    %49 = vector.load %arg10[%c2_44, %c0_45, %c0_46] : memref<18x18x128xf32, #tpu.memory_space<vmem>>, vector<16x16x128xf32>
    %50 = vector.shape_cast %49 : vector<16x16x128xf32> to vector<256x128xf32>
    %51 = arith.truncf %50 : vector<256x128xf32> to vector<256x128xbf16>
    %c6 = arith.constant 6 : index
    %c0_47 = arith.constant 0 : index
    %c0_48 = arith.constant 0 : index
    %52 = vector.load %arg2[%c6, %c0_47, %c0_48] : memref<9x128x128xbf16, #tpu.memory_space<vmem>>, vector<1x128x128xbf16>
    %53 = vector.shape_cast %52 : vector<1x128x128xbf16> to vector<128x128xbf16>
    %cst_49 = arith.constant dense<0.000000e+00> : vector<256x128xf32>
    %54 = tpu.matmul %51, %53, %cst_49 {dimension_numbers = #tpu.dot_dimension_numbers<[1], [0], [0], [1], [0, 0, 1, 1], [], []>} : vector<256x128xbf16>, vector<128x128xbf16>, vector<256x128xf32> -> vector<256x128xf32>
    %55 = arith.addf %48, %54 : vector<256x128xf32>
    %c2_50 = arith.constant 2 : index
    %c1_51 = arith.constant 1 : index
    %c0_52 = arith.constant 0 : index
    %56 = vector.load %arg10[%c2_50, %c1_51, %c0_52] : memref<18x18x128xf32, #tpu.memory_space<vmem>>, vector<16x16x128xf32>
    %57 = vector.shape_cast %56 : vector<16x16x128xf32> to vector<256x128xf32>
    %58 = arith.truncf %57 : vector<256x128xf32> to vector<256x128xbf16>
    %c7 = arith.constant 7 : index
    %c0_53 = arith.constant 0 : index
    %c0_54 = arith.constant 0 : index
    %59 = vector.load %arg2[%c7, %c0_53, %c0_54] : memref<9x128x128xbf16, #tpu.memory_space<vmem>>, vector<1x128x128xbf16>
    %60 = vector.shape_cast %59 : vector<1x128x128xbf16> to vector<128x128xbf16>
    %cst_55 = arith.constant dense<0.000000e+00> : vector<256x128xf32>
    %61 = tpu.matmul %58, %60, %cst_55 {dimension_numbers = #tpu.dot_dimension_numbers<[1], [0], [0], [1], [0, 0, 1, 1], [], []>} : vector<256x128xbf16>, vector<128x128xbf16>, vector<256x128xf32> -> vector<256x128xf32>
    %62 = arith.addf %55, %61 : vector<256x128xf32>
    %c2_56 = arith.constant 2 : index
    %c2_57 = arith.constant 2 : index
    %c0_58 = arith.constant 0 : index
    %63 = vector.load %arg10[%c2_56, %c2_57, %c0_58] : memref<18x18x128xf32, #tpu.memory_space<vmem>>, vector<16x16x128xf32>
    %64 = vector.shape_cast %63 : vector<16x16x128xf32> to vector<256x128xf32>
    %65 = arith.truncf %64 : vector<256x128xf32> to vector<256x128xbf16>
    %c8 = arith.constant 8 : index
    %c0_59 = arith.constant 0 : index
    %c0_60 = arith.constant 0 : index
    %66 = vector.load %arg2[%c8, %c0_59, %c0_60] : memref<9x128x128xbf16, #tpu.memory_space<vmem>>, vector<1x128x128xbf16>
    %67 = vector.shape_cast %66 : vector<1x128x128xbf16> to vector<128x128xbf16>
    %cst_61 = arith.constant dense<0.000000e+00> : vector<256x128xf32>
    %68 = tpu.matmul %65, %67, %cst_61 {dimension_numbers = #tpu.dot_dimension_numbers<[1], [0], [0], [1], [0, 0, 1, 1], [], []>} : vector<256x128xbf16>, vector<128x128xbf16>, vector<256x128xf32> -> vector<256x128xf32>
    %69 = arith.addf %62, %68 : vector<256x128xf32>
    %c0_62 = arith.constant 0 : index
    %c0_63 = arith.constant 0 : index
    %70 = vector.load %arg3[%c0_62, %c0_63] : memref<1x128xf32, #tpu.memory_space<vmem>>, vector<1x128xf32>
    %71 = vector.broadcast %70 : vector<1x128xf32> to vector<256x128xf32>
    %72 = arith.addf %69, %71 : vector<256x128xf32>
    %73 = vector.shape_cast %72 : vector<256x128xf32> to vector<16x16x128xf32>
    %c1_64 = arith.constant 1 : index
    %c1_65 = arith.constant 1 : index
    %c0_66 = arith.constant 0 : index
    %74 = vector.load %arg11[%c1_64, %c1_65, %c0_66] : memref<18x18x128xf32, #tpu.memory_space<vmem>>, vector<16x16x128xf32>
    tpu.vector_store %arg11[%c1_64, %c1_65, %c0_66], %73 {strides = array<i32>} : memref<18x18x128xf32, #tpu.memory_space<vmem>>, vector<16x16x128xf32>,
    %cst_67 = arith.constant 0xFF800000 : f32
    %75 = vector.broadcast %cst_67 : f32 to vector<8x8x128xf32>
    %c0_68 = arith.constant 0 : index
    %c0_69 = arith.constant 0 : index
    %c0_70 = arith.constant 0 : index
    %76 = tpu.strided_load %arg11[%c0_68, %c0_69, %c0_70] {strides = array<i32: 2, 2, 1>} : memref<18x18x128xf32, #tpu.memory_space<vmem>>, vector<8x8x128xf32>
    %77 = arith.maximumf %75, %76 : vector<8x8x128xf32>
    %c0_71 = arith.constant 0 : index
    %c1_72 = arith.constant 1 : index
    %c0_73 = arith.constant 0 : index
    %78 = tpu.strided_load %arg11[%c0_71, %c1_72, %c0_73] {strides = array<i32: 2, 2, 1>} : memref<18x18x128xf32, #tpu.memory_space<vmem>>, vector<8x8x128xf32>
    %79 = arith.maximumf %77, %78 : vector<8x8x128xf32>
    %c0_74 = arith.constant 0 : index
    %c2_75 = arith.constant 2 : index
    %c0_76 = arith.constant 0 : index
    %80 = tpu.strided_load %arg11[%c0_74, %c2_75, %c0_76] {strides = array<i32: 2, 2, 1>} : memref<18x18x128xf32, #tpu.memory_space<vmem>>, vector<8x8x128xf32>
    %81 = arith.maximumf %79, %80 : vector<8x8x128xf32>
    %c1_77 = arith.constant 1 : index
    %c0_78 = arith.constant 0 : index
    %c0_79 = arith.constant 0 : index
    %82 = tpu.strided_load %arg11[%c1_77, %c0_78, %c0_79] {strides = array<i32: 2, 2, 1>} : memref<18x18x128xf32, #tpu.memory_space<vmem>>, vector<8x8x128xf32>
    %83 = arith.maximumf %81, %82 : vector<8x8x128xf32>
    %c1_80 = arith.constant 1 : index
    %c1_81 = arith.constant 1 : index
    %c0_82 = arith.constant 0 : index
    %84 = tpu.strided_load %arg11[%c1_80, %c1_81, %c0_82] {strides = array<i32: 2, 2, 1>} : memref<18x18x128xf32, #tpu.memory_space<vmem>>, vector<8x8x128xf32>
    %85 = arith.maximumf %83, %84 : vector<8x8x128xf32>
    %c1_83 = arith.constant 1 : index
    %c2_84 = arith.constant 2 : index
    %c0_85 = arith.constant 0 : index
    %86 = tpu.strided_load %arg11[%c1_83, %c2_84, %c0_85] {strides = array<i32: 2, 2, 1>} : memref<18x18x128xf32, #tpu.memory_space<vmem>>, vector<8x8x128xf32>
    %87 = arith.maximumf %85, %86 : vector<8x8x128xf32>
    %c2_86 = arith.constant 2 : index
    %c0_87 = arith.constant 0 : index
    %c0_88 = arith.constant 0 : index
    %88 = tpu.strided_load %arg11[%c2_86, %c0_87, %c0_88] {strides = array<i32: 2, 2, 1>} : memref<18x18x128xf32, #tpu.memory_space<vmem>>, vector<8x8x128xf32>
    %89 = arith.maximumf %87, %88 : vector<8x8x128xf32>
    %c2_89 = arith.constant 2 : index
    %c1_90 = arith.constant 1 : index
    %c0_91 = arith.constant 0 : index
    %90 = tpu.strided_load %arg11[%c2_89, %c1_90, %c0_91] {strides = array<i32: 2, 2, 1>} : memref<18x18x128xf32, #tpu.memory_space<vmem>>, vector<8x8x128xf32>
    %91 = arith.maximumf %89, %90 : vector<8x8x128xf32>
    %c2_92 = arith.constant 2 : index
    %c2_93 = arith.constant 2 : index
    %c0_94 = arith.constant 0 : index
    %92 = tpu.strided_load %arg11[%c2_92, %c2_93, %c0_94] {strides = array<i32: 2, 2, 1>} : memref<18x18x128xf32, #tpu.memory_space<vmem>>, vector<8x8x128xf32>
    %93 = arith.maximumf %91, %92 : vector<8x8x128xf32>
    %c0_95 = arith.constant 0 : index
    %c0_96 = arith.constant 0 : index
    %c0_97 = arith.constant 0 : index
    %c0_98 = arith.constant 0 : index
    %94 = vector.load %arg6[%c0_95, %c0_96, %c0_97, %c0_98] : memref<1x8x8x128xf32, #tpu.memory_space<vmem>>, vector<1x8x8x128xf32>
    %95 = vector.shape_cast %94 : vector<1x8x8x128xf32> to vector<8x8x128xf32>
    %96 = vector.shape_cast %93 : vector<8x8x128xf32> to vector<1x8x8x128xf32>
    tpu.vector_store %arg6[%c0_95, %c0_96, %c0_97, %c0_98], %96 {strides = array<i32>} : memref<1x8x8x128xf32, #tpu.memory_space<vmem>>, vector<1x8x8x128xf32>,
    %c1_99 = arith.constant 1 : index
    %c1_100 = arith.constant 1 : index
    %c0_101 = arith.constant 0 : index
    %97 = vector.load %arg12[%c1_99, %c1_100, %c0_101] : memref<10x10x128xf32, #tpu.memory_space<vmem>>, vector<8x8x128xf32>
    tpu.vector_store %arg12[%c1_99, %c1_100, %c0_101], %93 {strides = array<i32>} : memref<10x10x128xf32, #tpu.memory_space<vmem>>, vector<8x8x128xf32>,
    %cst_102 = arith.constant 0.000000e+00 : f32
    %98 = vector.broadcast %cst_102 : f32 to vector<64x128xf32>
    %c0_103 = arith.constant 0 : index
    %c0_104 = arith.constant 0 : index
    %c0_105 = arith.constant 0 : index
    %99 = vector.load %arg12[%c0_103, %c0_104, %c0_105] : memref<10x10x128xf32, #tpu.memory_space<vmem>>, vector<8x8x128xf32>
    %100 = vector.shape_cast %99 : vector<8x8x128xf32> to vector<64x128xf32>
    %101 = arith.truncf %100 : vector<64x128xf32> to vector<64x128xbf16>
    %c0_106 = arith.constant 0 : index
    %c0_107 = arith.constant 0 : index
    %c0_108 = arith.constant 0 : index
    %102 = vector.load %arg4[%c0_106, %c0_107, %c0_108] : memref<9x128x128xbf16, #tpu.memory_space<vmem>>, vector<1x128x128xbf16>
    %103 = vector.shape_cast %102 : vector<1x128x128xbf16> to vector<128x128xbf16>
    %cst_109 = arith.constant dense<0.000000e+00> : vector<64x128xf32>
    %104 = tpu.matmul %101, %103, %cst_109 {dimension_numbers = #tpu.dot_dimension_numbers<[1], [0], [0], [1], [0, 0, 1, 1], [], []>} : vector<64x128xbf16>, vector<128x128xbf16>, vector<64x128xf32> -> vector<64x128xf32>
    %105 = arith.addf %98, %104 : vector<64x128xf32>
    %c0_110 = arith.constant 0 : index
    %c1_111 = arith.constant 1 : index
    %c0_112 = arith.constant 0 : index
    %106 = vector.load %arg12[%c0_110, %c1_111, %c0_112] : memref<10x10x128xf32, #tpu.memory_space<vmem>>, vector<8x8x128xf32>
    %107 = vector.shape_cast %106 : vector<8x8x128xf32> to vector<64x128xf32>
    %108 = arith.truncf %107 : vector<64x128xf32> to vector<64x128xbf16>
    %c1_113 = arith.constant 1 : index
    %c0_114 = arith.constant 0 : index
    %c0_115 = arith.constant 0 : index
    %109 = vector.load %arg4[%c1_113, %c0_114, %c0_115] : memref<9x128x128xbf16, #tpu.memory_space<vmem>>, vector<1x128x128xbf16>
    %110 = vector.shape_cast %109 : vector<1x128x128xbf16> to vector<128x128xbf16>
    %cst_116 = arith.constant dense<0.000000e+00> : vector<64x128xf32>
    %111 = tpu.matmul %108, %110, %cst_116 {dimension_numbers = #tpu.dot_dimension_numbers<[1], [0], [0], [1], [0, 0, 1, 1], [], []>} : vector<64x128xbf16>, vector<128x128xbf16>, vector<64x128xf32> -> vector<64x128xf32>
    %112 = arith.addf %105, %111 : vector<64x128xf32>
    %c0_117 = arith.constant 0 : index
    %c2_118 = arith.constant 2 : index
    %c0_119 = arith.constant 0 : index
    %113 = vector.load %arg12[%c0_117, %c2_118, %c0_119] : memref<10x10x128xf32, #tpu.memory_space<vmem>>, vector<8x8x128xf32>
    %114 = vector.shape_cast %113 : vector<8x8x128xf32> to vector<64x128xf32>
    %115 = arith.truncf %114 : vector<64x128xf32> to vector<64x128xbf16>
    %c2_120 = arith.constant 2 : index
    %c0_121 = arith.constant 0 : index
    %c0_122 = arith.constant 0 : index
    %116 = vector.load %arg4[%c2_120, %c0_121, %c0_122] : memref<9x128x128xbf16, #tpu.memory_space<vmem>>, vector<1x128x128xbf16>
    %117 = vector.shape_cast %116 : vector<1x128x128xbf16> to vector<128x128xbf16>
    %cst_123 = arith.constant dense<0.000000e+00> : vector<64x128xf32>
    %118 = tpu.matmul %115, %117, %cst_123 {dimension_numbers = #tpu.dot_dimension_numbers<[1], [0], [0], [1], [0, 0, 1, 1], [], []>} : vector<64x128xbf16>, vector<128x128xbf16>, vector<64x128xf32> -> vector<64x128xf32>
    %119 = arith.addf %112, %118 : vector<64x128xf32>
    %c1_124 = arith.constant 1 : index
    %c0_125 = arith.constant 0 : index
    %c0_126 = arith.constant 0 : index
    %120 = vector.load %arg12[%c1_124, %c0_125, %c0_126] : memref<10x10x128xf32, #tpu.memory_space<vmem>>, vector<8x8x128xf32>
    %121 = vector.shape_cast %120 : vector<8x8x128xf32> to vector<64x128xf32>
    %122 = arith.truncf %121 : vector<64x128xf32> to vector<64x128xbf16>
    %c3_127 = arith.constant 3 : index
    %c0_128 = arith.constant 0 : index
    %c0_129 = arith.constant 0 : index
    %123 = vector.load %arg4[%c3_127, %c0_128, %c0_129] : memref<9x128x128xbf16, #tpu.memory_space<vmem>>, vector<1x128x128xbf16>
    %124 = vector.shape_cast %123 : vector<1x128x128xbf16> to vector<128x128xbf16>
    %cst_130 = arith.constant dense<0.000000e+00> : vector<64x128xf32>
    %125 = tpu.matmul %122, %124, %cst_130 {dimension_numbers = #tpu.dot_dimension_numbers<[1], [0], [0], [1], [0, 0, 1, 1], [], []>} : vector<64x128xbf16>, vector<128x128xbf16>, vector<64x128xf32> -> vector<64x128xf32>
    %126 = arith.addf %119, %125 : vector<64x128xf32>
    %c1_131 = arith.constant 1 : index
    %c1_132 = arith.constant 1 : index
    %c0_133 = arith.constant 0 : index
    %127 = vector.load %arg12[%c1_131, %c1_132, %c0_133] : memref<10x10x128xf32, #tpu.memory_space<vmem>>, vector<8x8x128xf32>
    %128 = vector.shape_cast %127 : vector<8x8x128xf32> to vector<64x128xf32>
    %129 = arith.truncf %128 : vector<64x128xf32> to vector<64x128xbf16>
    %c4_134 = arith.constant 4 : index
    %c0_135 = arith.constant 0 : index
    %c0_136 = arith.constant 0 : index
    %130 = vector.load %arg4[%c4_134, %c0_135, %c0_136] : memref<9x128x128xbf16, #tpu.memory_space<vmem>>, vector<1x128x128xbf16>
    %131 = vector.shape_cast %130 : vector<1x128x128xbf16> to vector<128x128xbf16>
    %cst_137 = arith.constant dense<0.000000e+00> : vector<64x128xf32>
    %132 = tpu.matmul %129, %131, %cst_137 {dimension_numbers = #tpu.dot_dimension_numbers<[1], [0], [0], [1], [0, 0, 1, 1], [], []>} : vector<64x128xbf16>, vector<128x128xbf16>, vector<64x128xf32> -> vector<64x128xf32>
    %133 = arith.addf %126, %132 : vector<64x128xf32>
    %c1_138 = arith.constant 1 : index
    %c2_139 = arith.constant 2 : index
    %c0_140 = arith.constant 0 : index
    %134 = vector.load %arg12[%c1_138, %c2_139, %c0_140] : memref<10x10x128xf32, #tpu.memory_space<vmem>>, vector<8x8x128xf32>
    %135 = vector.shape_cast %134 : vector<8x8x128xf32> to vector<64x128xf32>
    %136 = arith.truncf %135 : vector<64x128xf32> to vector<64x128xbf16>
    %c5_141 = arith.constant 5 : index
    %c0_142 = arith.constant 0 : index
    %c0_143 = arith.constant 0 : index
    %137 = vector.load %arg4[%c5_141, %c0_142, %c0_143] : memref<9x128x128xbf16, #tpu.memory_space<vmem>>, vector<1x128x128xbf16>
    %138 = vector.shape_cast %137 : vector<1x128x128xbf16> to vector<128x128xbf16>
    %cst_144 = arith.constant dense<0.000000e+00> : vector<64x128xf32>
    %139 = tpu.matmul %136, %138, %cst_144 {dimension_numbers = #tpu.dot_dimension_numbers<[1], [0], [0], [1], [0, 0, 1, 1], [], []>} : vector<64x128xbf16>, vector<128x128xbf16>, vector<64x128xf32> -> vector<64x128xf32>
    %140 = arith.addf %133, %139 : vector<64x128xf32>
    %c2_145 = arith.constant 2 : index
    %c0_146 = arith.constant 0 : index
    %c0_147 = arith.constant 0 : index
    %141 = vector.load %arg12[%c2_145, %c0_146, %c0_147] : memref<10x10x128xf32, #tpu.memory_space<vmem>>, vector<8x8x128xf32>
    %142 = vector.shape_cast %141 : vector<8x8x128xf32> to vector<64x128xf32>
    %143 = arith.truncf %142 : vector<64x128xf32> to vector<64x128xbf16>
    %c6_148 = arith.constant 6 : index
    %c0_149 = arith.constant 0 : index
    %c0_150 = arith.constant 0 : index
    %144 = vector.load %arg4[%c6_148, %c0_149, %c0_150] : memref<9x128x128xbf16, #tpu.memory_space<vmem>>, vector<1x128x128xbf16>
    %145 = vector.shape_cast %144 : vector<1x128x128xbf16> to vector<128x128xbf16>
    %cst_151 = arith.constant dense<0.000000e+00> : vector<64x128xf32>
    %146 = tpu.matmul %143, %145, %cst_151 {dimension_numbers = #tpu.dot_dimension_numbers<[1], [0], [0], [1], [0, 0, 1, 1], [], []>} : vector<64x128xbf16>, vector<128x128xbf16>, vector<64x128xf32> -> vector<64x128xf32>
    %147 = arith.addf %140, %146 : vector<64x128xf32>
    %c2_152 = arith.constant 2 : index
    %c1_153 = arith.constant 1 : index
    %c0_154 = arith.constant 0 : index
    %148 = vector.load %arg12[%c2_152, %c1_153, %c0_154] : memref<10x10x128xf32, #tpu.memory_space<vmem>>, vector<8x8x128xf32>
    %149 = vector.shape_cast %148 : vector<8x8x128xf32> to vector<64x128xf32>
    %150 = arith.truncf %149 : vector<64x128xf32> to vector<64x128xbf16>
    %c7_155 = arith.constant 7 : index
    %c0_156 = arith.constant 0 : index
    %c0_157 = arith.constant 0 : index
    %151 = vector.load %arg4[%c7_155, %c0_156, %c0_157] : memref<9x128x128xbf16, #tpu.memory_space<vmem>>, vector<1x128x128xbf16>
    %152 = vector.shape_cast %151 : vector<1x128x128xbf16> to vector<128x128xbf16>
    %cst_158 = arith.constant dense<0.000000e+00> : vector<64x128xf32>
    %153 = tpu.matmul %150, %152, %cst_158 {dimension_numbers = #tpu.dot_dimension_numbers<[1], [0], [0], [1], [0, 0, 1, 1], [], []>} : vector<64x128xbf16>, vector<128x128xbf16>, vector<64x128xf32> -> vector<64x128xf32>
    %154 = arith.addf %147, %153 : vector<64x128xf32>
    %c2_159 = arith.constant 2 : index
    %c2_160 = arith.constant 2 : index
    %c0_161 = arith.constant 0 : index
    %155 = vector.load %arg12[%c2_159, %c2_160, %c0_161] : memref<10x10x128xf32, #tpu.memory_space<vmem>>, vector<8x8x128xf32>
    %156 = vector.shape_cast %155 : vector<8x8x128xf32> to vector<64x128xf32>
    %157 = arith.truncf %156 : vector<64x128xf32> to vector<64x128xbf16>
    %c8_162 = arith.constant 8 : index
    %c0_163 = arith.constant 0 : index
    %c0_164 = arith.constant 0 : index
    %158 = vector.load %arg4[%c8_162, %c0_163, %c0_164] : memref<9x128x128xbf16, #tpu.memory_space<vmem>>, vector<1x128x128xbf16>
    %159 = vector.shape_cast %158 : vector<1x128x128xbf16> to vector<128x128xbf16>
    %cst_165 = arith.constant dense<0.000000e+00> : vector<64x128xf32>
    %160 = tpu.matmul %157, %159, %cst_165 {dimension_numbers = #tpu.dot_dimension_numbers<[1], [0], [0], [1], [0, 0, 1, 1], [], []>} : vector<64x128xbf16>, vector<128x128xbf16>, vector<64x128xf32> -> vector<64x128xf32>
    %161 = arith.addf %154, %160 : vector<64x128xf32>
    %c0_166 = arith.constant 0 : index
    %c0_167 = arith.constant 0 : index
    %162 = vector.load %arg5[%c0_166, %c0_167] : memref<1x128xf32, #tpu.memory_space<vmem>>, vector<1x128xf32>
    %163 = vector.broadcast %162 : vector<1x128xf32> to vector<64x128xf32>
    %164 = arith.addf %161, %163 : vector<64x128xf32>
    %165 = vector.shape_cast %164 : vector<64x128xf32> to vector<8x8x128xf32>
    %c0_168 = arith.constant 0 : index
    %c0_169 = arith.constant 0 : index
    %c0_170 = arith.constant 0 : index
    %c0_171 = arith.constant 0 : index
    %166 = vector.load %arg7[%c0_168, %c0_169, %c0_170, %c0_171] : memref<1x8x8x128xf32, #tpu.memory_space<vmem>>, vector<1x8x8x128xf32>
    %167 = vector.shape_cast %166 : vector<1x8x8x128xf32> to vector<8x8x128xf32>
    %168 = vector.shape_cast %165 : vector<8x8x128xf32> to vector<1x8x8x128xf32>
    tpu.vector_store %arg7[%c0_168, %c0_169, %c0_170, %c0_171], %168 {strides = array<i32>} : memref<1x8x8x128xf32, #tpu.memory_space<vmem>>, vector<1x8x8x128xf32>,
    %c0_172 = arith.constant 0 : index
    %c0_173 = arith.constant 0 : index
    %169 = vector.load %arg8[%c0_172, %c0_173] : memref<1x128xf32, #tpu.memory_space<vmem>>, vector<1x128xf32>
    %cst_174 = arith.constant dense<0.000000e+00> : vector<128xf32>
    %170 = vector.multi_reduction <add>, %164, %cst_174 [0] : vector<64x128xf32> to vector<128xf32>
    %171 = vector.shape_cast %170 : vector<128xf32> to vector<1x128xf32>
    %172 = arith.addf %169, %171 : vector<1x128xf32>
    %c0_175 = arith.constant 0 : index
    %c0_176 = arith.constant 0 : index
    %173 = vector.load %arg8[%c0_175, %c0_176] : memref<1x128xf32, #tpu.memory_space<vmem>>, vector<1x128xf32>
    tpu.vector_store %arg8[%c0_175, %c0_176], %172 {strides = array<i32>} : memref<1x128xf32, #tpu.memory_space<vmem>>, vector<1x128xf32>,
    %c0_177 = arith.constant 0 : index
    %c0_178 = arith.constant 0 : index
    %174 = vector.load %arg9[%c0_177, %c0_178] : memref<1x128xf32, #tpu.memory_space<vmem>>, vector<1x128xf32>
    %175 = arith.mulf %164, %164 : vector<64x128xf32>
    %cst_179 = arith.constant dense<0.000000e+00> : vector<128xf32>
    %176 = vector.multi_reduction <add>, %175, %cst_179 [0] : vector<64x128xf32> to vector<128xf32>
    %177 = vector.shape_cast %176 : vector<128xf32> to vector<1x128xf32>
    %178 = arith.addf %174, %177 : vector<1x128xf32>
    %c0_180 = arith.constant 0 : index
    %c0_181 = arith.constant 0 : index
    %179 = vector.load %arg9[%c0_180, %c0_181] : memref<1x128xf32, #tpu.memory_space<vmem>>, vector<1x128xf32>
    tpu.vector_store %arg9[%c0_180, %c0_181], %178 {strides = array<i32>} : memref<1x128xf32, #tpu.memory_space<vmem>>, vector<1x128xf32>,
    return
  }
  func.func @transform_0(%arg0: i32) -> (i32, i32, i32, i32) {
    %c0_i32 = arith.constant 0 : i32
    %c0_i32_0 = arith.constant 0 : i32
    %c0_i32_1 = arith.constant 0 : i32
    %c0_i32_2 = arith.constant 0 : i32
    return %arg0, %c0_i32, %c0_i32_0, %c0_i32_1 : i32, i32, i32, i32
  }
  func.func @transform_1(%arg0: i32) -> (i32, i32, i32) {
    %c0_i32 = arith.constant 0 : i32
    %c0_i32_0 = arith.constant 0 : i32
    %c0_i32_1 = arith.constant 0 : i32
    %c0_i32_2 = arith.constant 0 : i32
    return %c0_i32, %c0_i32_0, %c0_i32_1 : i32, i32, i32
  }
  func.func @transform_2(%arg0: i32) -> (i32, i32) {
    %c0_i32 = arith.constant 0 : i32
    %c0_i32_0 = arith.constant 0 : i32
    %c0_i32_1 = arith.constant 0 : i32
    return %c0_i32, %c0_i32_0 : i32, i32
  }
  func.func @transform_3(%arg0: i32) -> (i32, i32, i32) {
    %c0_i32 = arith.constant 0 : i32
    %c0_i32_0 = arith.constant 0 : i32
    %c0_i32_1 = arith.constant 0 : i32
    %c0_i32_2 = arith.constant 0 : i32
    return %c0_i32, %c0_i32_0, %c0_i32_1 : i32, i32, i32
  }
  func.func @transform_4(%arg0: i32) -> (i32, i32) {
    %c0_i32 = arith.constant 0 : i32
    %c0_i32_0 = arith.constant 0 : i32
    %c0_i32_1 = arith.constant 0 : i32
    return %c0_i32, %c0_i32_0 : i32, i32
  }
  func.func @transform_5(%arg0: i32) -> (i32, i32, i32, i32) {
    %c0_i32 = arith.constant 0 : i32
    %c0_i32_0 = arith.constant 0 : i32
    %c0_i32_1 = arith.constant 0 : i32
    %c0_i32_2 = arith.constant 0 : i32
    return %arg0, %c0_i32, %c0_i32_0, %c0_i32_1 : i32, i32, i32, i32
  }
  func.func @transform_6(%arg0: i32) -> (i32, i32, i32, i32) {
    %c0_i32 = arith.constant 0 : i32
    %c0_i32_0 = arith.constant 0 : i32
    %c0_i32_1 = arith.constant 0 : i32
    %c0_i32_2 = arith.constant 0 : i32
    return %arg0, %c0_i32, %c0_i32_0, %c0_i32_1 : i32, i32, i32, i32
  }
  func.func @transform_7(%arg0: i32) -> (i32, i32) {
    %c0_i32 = arith.constant 0 : i32
    %c0_i32_0 = arith.constant 0 : i32
    %c0_i32_1 = arith.constant 0 : i32
    return %c0_i32, %c0_i32_0 : i32, i32
  }
  func.func @transform_8(%arg0: i32) -> (i32, i32) {
    %c0_i32 = arith.constant 0 : i32
    %c0_i32_0 = arith.constant 0 : i32
    %c0_i32_1 = arith.constant 0 : i32
    return %c0_i32, %c0_i32_0 : i32, i32
  }
}

module attributes {stable_mosaic.version = 11 : i64} {
  func.func @_bn_relu_add_kernel(%arg0: i32, %arg1: memref<64x128xf32, #tpu.memory_space<vmem>>, %arg2: memref<1x128xf32, #tpu.memory_space<vmem>>, %arg3: memref<1x128xf32, #tpu.memory_space<vmem>>, %arg4: memref<1x128xf32, #tpu.memory_space<vmem>>, %arg5: memref<1x128xf32, #tpu.memory_space<vmem>>, %arg6: memref<64x128xf32, #tpu.memory_space<vmem>>, %arg7: memref<64x128xf32, #tpu.memory_space<vmem>>) attributes {dimension_semantics = [#tpu.dimension_semantics<parallel>], iteration_bounds = array<i64: 2>, scalar_prefetch = 0 : i64, scratch_operands = 0 : i64, tpu.core_type = #tpu.core_type<tc>, window_params = [{transform_indices = @transform_0, window_bounds = array<i64: 64, 128>}, {pipeline_mode = #tpu.pipeline_mode<synchronous>, transform_indices = @transform_1, window_bounds = array<i64: 1, 128>}, {pipeline_mode = #tpu.pipeline_mode<synchronous>, transform_indices = @transform_2, window_bounds = array<i64: 1, 128>}, {pipeline_mode = #tpu.pipeline_mode<synchronous>, transform_indices = @transform_3, window_bounds = array<i64: 1, 128>}, {pipeline_mode = #tpu.pipeline_mode<synchronous>, transform_indices = @transform_4, window_bounds = array<i64: 1, 128>}, {transform_indices = @transform_5, window_bounds = array<i64: 64, 128>}, {transform_indices = @transform_6, window_bounds = array<i64: 64, 128>}]} {
    %c0 = arith.constant 0 : index
    %c0_0 = arith.constant 0 : index
    %0 = vector.load %arg2[%c0, %c0_0] : memref<1x128xf32, #tpu.memory_space<vmem>>, vector<1x128xf32>
    %cst = arith.constant 7.812500e-03 : f32
    %1 = vector.broadcast %cst : f32 to vector<1x128xf32>
    %2 = arith.mulf %0, %1 : vector<1x128xf32>
    %c0_1 = arith.constant 0 : index
    %c0_2 = arith.constant 0 : index
    %3 = vector.load %arg3[%c0_1, %c0_2] : memref<1x128xf32, #tpu.memory_space<vmem>>, vector<1x128xf32>
    %cst_3 = arith.constant 7.812500e-03 : f32
    %4 = vector.broadcast %cst_3 : f32 to vector<1x128xf32>
    %5 = arith.mulf %3, %4 : vector<1x128xf32>
    %6 = arith.mulf %2, %2 : vector<1x128xf32>
    %7 = arith.subf %5, %6 : vector<1x128xf32>
    %cst_4 = arith.constant 0.000000e+00 : f32
    %8 = vector.broadcast %cst_4 : f32 to vector<1x128xf32>
    %9 = arith.maximumf %7, %8 : vector<1x128xf32>
    %c0_5 = arith.constant 0 : index
    %c0_6 = arith.constant 0 : index
    %10 = vector.load %arg4[%c0_5, %c0_6] : memref<1x128xf32, #tpu.memory_space<vmem>>, vector<1x128xf32>
    %cst_7 = arith.constant 9.99999974E-6 : f32
    %11 = vector.broadcast %cst_7 : f32 to vector<1x128xf32>
    %12 = arith.addf %9, %11 : vector<1x128xf32>
    %13 = math.rsqrt %12 : vector<1x128xf32>
    %14 = arith.mulf %10, %13 : vector<1x128xf32>
    %c0_8 = arith.constant 0 : index
    %c0_9 = arith.constant 0 : index
    %15 = vector.load %arg5[%c0_8, %c0_9] : memref<1x128xf32, #tpu.memory_space<vmem>>, vector<1x128xf32>
    %16 = arith.mulf %2, %14 : vector<1x128xf32>
    %17 = arith.subf %15, %16 : vector<1x128xf32>
    %c0_10 = arith.constant 0 : index
    %c0_11 = arith.constant 0 : index
    %18 = vector.load %arg1[%c0_10, %c0_11] : memref<64x128xf32, #tpu.memory_space<vmem>>, vector<64x128xf32>
    %19 = vector.broadcast %14 : vector<1x128xf32> to vector<64x128xf32>
    %20 = arith.mulf %18, %19 : vector<64x128xf32>
    %21 = vector.broadcast %17 : vector<1x128xf32> to vector<64x128xf32>
    %22 = arith.addf %20, %21 : vector<64x128xf32>
    %cst_12 = arith.constant 0.000000e+00 : f32
    %23 = vector.broadcast %cst_12 : f32 to vector<64x128xf32>
    %24 = arith.maximumf %22, %23 : vector<64x128xf32>
    %c0_13 = arith.constant 0 : index
    %c0_14 = arith.constant 0 : index
    %25 = vector.load %arg6[%c0_13, %c0_14] : memref<64x128xf32, #tpu.memory_space<vmem>>, vector<64x128xf32>
    %26 = arith.addf %24, %25 : vector<64x128xf32>
    %c0_15 = arith.constant 0 : index
    %c0_16 = arith.constant 0 : index
    %27 = vector.load %arg7[%c0_15, %c0_16] : memref<64x128xf32, #tpu.memory_space<vmem>>, vector<64x128xf32>
    tpu.vector_store %arg7[%c0_15, %c0_16], %26 {strides = array<i32>} : memref<64x128xf32, #tpu.memory_space<vmem>>, vector<64x128xf32>,
    return
  }
  func.func @transform_0(%arg0: i32) -> (i32, i32) {
    %c0_i32 = arith.constant 0 : i32
    %c0_i32_0 = arith.constant 0 : i32
    return %arg0, %c0_i32 : i32, i32
  }
  func.func @transform_1(%arg0: i32) -> (i32, i32) {
    %c0_i32 = arith.constant 0 : i32
    %c0_i32_0 = arith.constant 0 : i32
    %c0_i32_1 = arith.constant 0 : i32
    return %c0_i32, %c0_i32_0 : i32, i32
  }
  func.func @transform_2(%arg0: i32) -> (i32, i32) {
    %c0_i32 = arith.constant 0 : i32
    %c0_i32_0 = arith.constant 0 : i32
    %c0_i32_1 = arith.constant 0 : i32
    return %c0_i32, %c0_i32_0 : i32, i32
  }
  func.func @transform_3(%arg0: i32) -> (i32, i32) {
    %c0_i32 = arith.constant 0 : i32
    %c0_i32_0 = arith.constant 0 : i32
    %c0_i32_1 = arith.constant 0 : i32
    return %c0_i32, %c0_i32_0 : i32, i32
  }
  func.func @transform_4(%arg0: i32) -> (i32, i32) {
    %c0_i32 = arith.constant 0 : i32
    %c0_i32_0 = arith.constant 0 : i32
    %c0_i32_1 = arith.constant 0 : i32
    return %c0_i32, %c0_i32_0 : i32, i32
  }
  func.func @transform_5(%arg0: i32) -> (i32, i32) {
    %c0_i32 = arith.constant 0 : i32
    %c0_i32_0 = arith.constant 0 : i32
    return %arg0, %c0_i32 : i32, i32
  }
  func.func @transform_6(%arg0: i32) -> (i32, i32) {
    %c0_i32 = arith.constant 0 : i32
    %c0_i32_0 = arith.constant 0 : i32
    return %arg0, %c0_i32 : i32, i32
  }
}

module attributes {stable_mosaic.version = 11 : i64} {
  func.func @_stage2_kernel(%arg0: i32, %arg1: memref<1x8x8x128xf32, #tpu.memory_space<vmem>>, %arg2: memref<1x128xf32, #tpu.memory_space<vmem>>, %arg3: memref<1x128xf32, #tpu.memory_space<vmem>>, %arg4: memref<1x128xf32, #tpu.memory_space<vmem>>, %arg5: memref<1x128xf32, #tpu.memory_space<vmem>>, %arg6: memref<9x128x128xbf16, #tpu.memory_space<vmem>>, %arg7: memref<1x128xf32, #tpu.memory_space<vmem>>, %arg8: memref<1x8x8x128xf32, #tpu.memory_space<vmem>>, %arg9: memref<1x128xf32, #tpu.memory_space<vmem>>, %arg10: memref<1x128xf32, #tpu.memory_space<vmem>>, %arg11: memref<10x10x128xf32, #tpu.memory_space<vmem>>) attributes {dimension_semantics = [#tpu.dimension_semantics<arbitrary>], iteration_bounds = array<i64: 2>, scalar_prefetch = 0 : i64, scratch_operands = 1 : i64, tpu.core_type = #tpu.core_type<tc>, window_params = [{transform_indices = @transform_0, window_bounds = array<i64: 1, 8, 8, 128>}, {pipeline_mode = #tpu.pipeline_mode<synchronous>, transform_indices = @transform_1, window_bounds = array<i64: 1, 128>}, {pipeline_mode = #tpu.pipeline_mode<synchronous>, transform_indices = @transform_2, window_bounds = array<i64: 1, 128>}, {pipeline_mode = #tpu.pipeline_mode<synchronous>, transform_indices = @transform_3, window_bounds = array<i64: 1, 128>}, {pipeline_mode = #tpu.pipeline_mode<synchronous>, transform_indices = @transform_4, window_bounds = array<i64: 1, 128>}, {pipeline_mode = #tpu.pipeline_mode<synchronous>, transform_indices = @transform_5, window_bounds = array<i64: 9, 128, 128>}, {pipeline_mode = #tpu.pipeline_mode<synchronous>, transform_indices = @transform_6, window_bounds = array<i64: 1, 128>}, {transform_indices = @transform_7, window_bounds = array<i64: 1, 8, 8, 128>}, {pipeline_mode = #tpu.pipeline_mode<synchronous>, transform_indices = @transform_8, window_bounds = array<i64: 1, 128>}, {pipeline_mode = #tpu.pipeline_mode<synchronous>, transform_indices = @transform_9, window_bounds = array<i64: 1, 128>}]} {
    %c0_i32 = arith.constant 0 : i32
    %0 = arith.cmpi eq, %arg0, %c0_i32 : i32
    %1 = arith.extui %0 : i1 to i32
    %c0_i32_0 = arith.constant 0 : i32
    %2 = arith.cmpi ne, %1, %c0_i32_0 : i32
    scf.if %2 {
      %cst_91 = arith.constant 0.000000e+00 : f32
      %114 = vector.broadcast %cst_91 : f32 to vector<10x10x128xf32>
      %c0_92 = arith.constant 0 : index
      %c0_93 = arith.constant 0 : index
      %c0_94 = arith.constant 0 : index
      %115 = vector.load %arg11[%c0_92, %c0_93, %c0_94] : memref<10x10x128xf32, #tpu.memory_space<vmem>>, vector<10x10x128xf32>
      tpu.vector_store %arg11[%c0_92, %c0_93, %c0_94], %114 {strides = array<i32>} : memref<10x10x128xf32, #tpu.memory_space<vmem>>, vector<10x10x128xf32>,
      %cst_95 = arith.constant 0.000000e+00 : f32
      %116 = vector.broadcast %cst_95 : f32 to vector<1x128xf32>
      %c0_96 = arith.constant 0 : index
      %c0_97 = arith.constant 0 : index
      %117 = vector.load %arg9[%c0_96, %c0_97] : memref<1x128xf32, #tpu.memory_space<vmem>>, vector<1x128xf32>
      tpu.vector_store %arg9[%c0_96, %c0_97], %116 {strides = array<i32>} : memref<1x128xf32, #tpu.memory_space<vmem>>, vector<1x128xf32>,
      %cst_98 = arith.constant 0.000000e+00 : f32
      %118 = vector.broadcast %cst_98 : f32 to vector<1x128xf32>
      %c0_99 = arith.constant 0 : index
      %c0_100 = arith.constant 0 : index
      %119 = vector.load %arg10[%c0_99, %c0_100] : memref<1x128xf32, #tpu.memory_space<vmem>>, vector<1x128xf32>
      tpu.vector_store %arg10[%c0_99, %c0_100], %118 {strides = array<i32>} : memref<1x128xf32, #tpu.memory_space<vmem>>, vector<1x128xf32>,
    } else {
    }
    %c0 = arith.constant 0 : index
    %c0_1 = arith.constant 0 : index
    %3 = vector.load %arg2[%c0, %c0_1] : memref<1x128xf32, #tpu.memory_space<vmem>>, vector<1x128xf32>
    %cst = arith.constant 7.812500e-03 : f32
    %4 = vector.broadcast %cst : f32 to vector<1x128xf32>
    %5 = arith.mulf %3, %4 : vector<1x128xf32>
    %c0_2 = arith.constant 0 : index
    %c0_3 = arith.constant 0 : index
    %6 = vector.load %arg3[%c0_2, %c0_3] : memref<1x128xf32, #tpu.memory_space<vmem>>, vector<1x128xf32>
    %cst_4 = arith.constant 7.812500e-03 : f32
    %7 = vector.broadcast %cst_4 : f32 to vector<1x128xf32>
    %8 = arith.mulf %6, %7 : vector<1x128xf32>
    %9 = arith.mulf %5, %5 : vector<1x128xf32>
    %10 = arith.subf %8, %9 : vector<1x128xf32>
    %cst_5 = arith.constant 0.000000e+00 : f32
    %11 = vector.broadcast %cst_5 : f32 to vector<1x128xf32>
    %12 = arith.maximumf %10, %11 : vector<1x128xf32>
    %c0_6 = arith.constant 0 : index
    %c0_7 = arith.constant 0 : index
    %13 = vector.load %arg4[%c0_6, %c0_7] : memref<1x128xf32, #tpu.memory_space<vmem>>, vector<1x128xf32>
    %cst_8 = arith.constant 9.99999974E-6 : f32
    %14 = vector.broadcast %cst_8 : f32 to vector<1x128xf32>
    %15 = arith.addf %12, %14 : vector<1x128xf32>
    %16 = math.rsqrt %15 : vector<1x128xf32>
    %17 = arith.mulf %13, %16 : vector<1x128xf32>
    %c0_9 = arith.constant 0 : index
    %c0_10 = arith.constant 0 : index
    %18 = vector.load %arg5[%c0_9, %c0_10] : memref<1x128xf32, #tpu.memory_space<vmem>>, vector<1x128xf32>
    %19 = arith.mulf %5, %17 : vector<1x128xf32>
    %20 = arith.subf %18, %19 : vector<1x128xf32>
    %c0_11 = arith.constant 0 : index
    %c0_12 = arith.constant 0 : index
    %c0_13 = arith.constant 0 : index
    %c0_14 = arith.constant 0 : index
    %21 = vector.load %arg1[%c0_11, %c0_12, %c0_13, %c0_14] : memref<1x8x8x128xf32, #tpu.memory_space<vmem>>, vector<1x8x8x128xf32>
    %22 = vector.shape_cast %21 : vector<1x8x8x128xf32> to vector<8x8x128xf32>
    %23 = vector.shape_cast %17 : vector<1x128xf32> to vector<1x1x128xf32>
    %24 = vector.broadcast %23 : vector<1x1x128xf32> to vector<8x8x128xf32>
    %25 = arith.mulf %22, %24 : vector<8x8x128xf32>
    %26 = vector.shape_cast %20 : vector<1x128xf32> to vector<1x1x128xf32>
    %27 = vector.broadcast %26 : vector<1x1x128xf32> to vector<8x8x128xf32>
    %28 = arith.addf %25, %27 : vector<8x8x128xf32>
    %cst_15 = arith.constant 0.000000e+00 : f32
    %29 = vector.broadcast %cst_15 : f32 to vector<8x8x128xf32>
    %30 = arith.maximumf %28, %29 : vector<8x8x128xf32>
    %c1 = arith.constant 1 : index
    %c1_16 = arith.constant 1 : index
    %c0_17 = arith.constant 0 : index
    %31 = vector.load %arg11[%c1, %c1_16, %c0_17] : memref<10x10x128xf32, #tpu.memory_space<vmem>>, vector<8x8x128xf32>
    tpu.vector_store %arg11[%c1, %c1_16, %c0_17], %30 {strides = array<i32>} : memref<10x10x128xf32, #tpu.memory_space<vmem>>, vector<8x8x128xf32>,
    %cst_18 = arith.constant 0.000000e+00 : f32
    %32 = vector.broadcast %cst_18 : f32 to vector<64x128xf32>
    %c0_19 = arith.constant 0 : index
    %c0_20 = arith.constant 0 : index
    %c0_21 = arith.constant 0 : index
    %33 = vector.load %arg11[%c0_19, %c0_20, %c0_21] : memref<10x10x128xf32, #tpu.memory_space<vmem>>, vector<8x8x128xf32>
    %34 = vector.shape_cast %33 : vector<8x8x128xf32> to vector<64x128xf32>
    %35 = arith.truncf %34 : vector<64x128xf32> to vector<64x128xbf16>
    %c0_22 = arith.constant 0 : index
    %c0_23 = arith.constant 0 : index
    %c0_24 = arith.constant 0 : index
    %36 = vector.load %arg6[%c0_22, %c0_23, %c0_24] : memref<9x128x128xbf16, #tpu.memory_space<vmem>>, vector<1x128x128xbf16>
    %37 = vector.shape_cast %36 : vector<1x128x128xbf16> to vector<128x128xbf16>
    %cst_25 = arith.constant dense<0.000000e+00> : vector<64x128xf32>
    %38 = tpu.matmul %35, %37, %cst_25 {dimension_numbers = #tpu.dot_dimension_numbers<[1], [0], [0], [1], [0, 0, 1, 1], [], []>} : vector<64x128xbf16>, vector<128x128xbf16>, vector<64x128xf32> -> vector<64x128xf32>
    %39 = arith.addf %32, %38 : vector<64x128xf32>
    %c0_26 = arith.constant 0 : index
    %c1_27 = arith.constant 1 : index
    %c0_28 = arith.constant 0 : index
    %40 = vector.load %arg11[%c0_26, %c1_27, %c0_28] : memref<10x10x128xf32, #tpu.memory_space<vmem>>, vector<8x8x128xf32>
    %41 = vector.shape_cast %40 : vector<8x8x128xf32> to vector<64x128xf32>
    %42 = arith.truncf %41 : vector<64x128xf32> to vector<64x128xbf16>
    %c1_29 = arith.constant 1 : index
    %c0_30 = arith.constant 0 : index
    %c0_31 = arith.constant 0 : index
    %43 = vector.load %arg6[%c1_29, %c0_30, %c0_31] : memref<9x128x128xbf16, #tpu.memory_space<vmem>>, vector<1x128x128xbf16>
    %44 = vector.shape_cast %43 : vector<1x128x128xbf16> to vector<128x128xbf16>
    %cst_32 = arith.constant dense<0.000000e+00> : vector<64x128xf32>
    %45 = tpu.matmul %42, %44, %cst_32 {dimension_numbers = #tpu.dot_dimension_numbers<[1], [0], [0], [1], [0, 0, 1, 1], [], []>} : vector<64x128xbf16>, vector<128x128xbf16>, vector<64x128xf32> -> vector<64x128xf32>
    %46 = arith.addf %39, %45 : vector<64x128xf32>
    %c0_33 = arith.constant 0 : index
    %c2 = arith.constant 2 : index
    %c0_34 = arith.constant 0 : index
    %47 = vector.load %arg11[%c0_33, %c2, %c0_34] : memref<10x10x128xf32, #tpu.memory_space<vmem>>, vector<8x8x128xf32>
    %48 = vector.shape_cast %47 : vector<8x8x128xf32> to vector<64x128xf32>
    %49 = arith.truncf %48 : vector<64x128xf32> to vector<64x128xbf16>
    %c2_35 = arith.constant 2 : index
    %c0_36 = arith.constant 0 : index
    %c0_37 = arith.constant 0 : index
    %50 = vector.load %arg6[%c2_35, %c0_36, %c0_37] : memref<9x128x128xbf16, #tpu.memory_space<vmem>>, vector<1x128x128xbf16>
    %51 = vector.shape_cast %50 : vector<1x128x128xbf16> to vector<128x128xbf16>
    %cst_38 = arith.constant dense<0.000000e+00> : vector<64x128xf32>
    %52 = tpu.matmul %49, %51, %cst_38 {dimension_numbers = #tpu.dot_dimension_numbers<[1], [0], [0], [1], [0, 0, 1, 1], [], []>} : vector<64x128xbf16>, vector<128x128xbf16>, vector<64x128xf32> -> vector<64x128xf32>
    %53 = arith.addf %46, %52 : vector<64x128xf32>
    %c1_39 = arith.constant 1 : index
    %c0_40 = arith.constant 0 : index
    %c0_41 = arith.constant 0 : index
    %54 = vector.load %arg11[%c1_39, %c0_40, %c0_41] : memref<10x10x128xf32, #tpu.memory_space<vmem>>, vector<8x8x128xf32>
    %55 = vector.shape_cast %54 : vector<8x8x128xf32> to vector<64x128xf32>
    %56 = arith.truncf %55 : vector<64x128xf32> to vector<64x128xbf16>
    %c3 = arith.constant 3 : index
    %c0_42 = arith.constant 0 : index
    %c0_43 = arith.constant 0 : index
    %57 = vector.load %arg6[%c3, %c0_42, %c0_43] : memref<9x128x128xbf16, #tpu.memory_space<vmem>>, vector<1x128x128xbf16>
    %58 = vector.shape_cast %57 : vector<1x128x128xbf16> to vector<128x128xbf16>
    %cst_44 = arith.constant dense<0.000000e+00> : vector<64x128xf32>
    %59 = tpu.matmul %56, %58, %cst_44 {dimension_numbers = #tpu.dot_dimension_numbers<[1], [0], [0], [1], [0, 0, 1, 1], [], []>} : vector<64x128xbf16>, vector<128x128xbf16>, vector<64x128xf32> -> vector<64x128xf32>
    %60 = arith.addf %53, %59 : vector<64x128xf32>
    %c1_45 = arith.constant 1 : index
    %c1_46 = arith.constant 1 : index
    %c0_47 = arith.constant 0 : index
    %61 = vector.load %arg11[%c1_45, %c1_46, %c0_47] : memref<10x10x128xf32, #tpu.memory_space<vmem>>, vector<8x8x128xf32>
    %62 = vector.shape_cast %61 : vector<8x8x128xf32> to vector<64x128xf32>
    %63 = arith.truncf %62 : vector<64x128xf32> to vector<64x128xbf16>
    %c4 = arith.constant 4 : index
    %c0_48 = arith.constant 0 : index
    %c0_49 = arith.constant 0 : index
    %64 = vector.load %arg6[%c4, %c0_48, %c0_49] : memref<9x128x128xbf16, #tpu.memory_space<vmem>>, vector<1x128x128xbf16>
    %65 = vector.shape_cast %64 : vector<1x128x128xbf16> to vector<128x128xbf16>
    %cst_50 = arith.constant dense<0.000000e+00> : vector<64x128xf32>
    %66 = tpu.matmul %63, %65, %cst_50 {dimension_numbers = #tpu.dot_dimension_numbers<[1], [0], [0], [1], [0, 0, 1, 1], [], []>} : vector<64x128xbf16>, vector<128x128xbf16>, vector<64x128xf32> -> vector<64x128xf32>
    %67 = arith.addf %60, %66 : vector<64x128xf32>
    %c1_51 = arith.constant 1 : index
    %c2_52 = arith.constant 2 : index
    %c0_53 = arith.constant 0 : index
    %68 = vector.load %arg11[%c1_51, %c2_52, %c0_53] : memref<10x10x128xf32, #tpu.memory_space<vmem>>, vector<8x8x128xf32>
    %69 = vector.shape_cast %68 : vector<8x8x128xf32> to vector<64x128xf32>
    %70 = arith.truncf %69 : vector<64x128xf32> to vector<64x128xbf16>
    %c5 = arith.constant 5 : index
    %c0_54 = arith.constant 0 : index
    %c0_55 = arith.constant 0 : index
    %71 = vector.load %arg6[%c5, %c0_54, %c0_55] : memref<9x128x128xbf16, #tpu.memory_space<vmem>>, vector<1x128x128xbf16>
    %72 = vector.shape_cast %71 : vector<1x128x128xbf16> to vector<128x128xbf16>
    %cst_56 = arith.constant dense<0.000000e+00> : vector<64x128xf32>
    %73 = tpu.matmul %70, %72, %cst_56 {dimension_numbers = #tpu.dot_dimension_numbers<[1], [0], [0], [1], [0, 0, 1, 1], [], []>} : vector<64x128xbf16>, vector<128x128xbf16>, vector<64x128xf32> -> vector<64x128xf32>
    %74 = arith.addf %67, %73 : vector<64x128xf32>
    %c2_57 = arith.constant 2 : index
    %c0_58 = arith.constant 0 : index
    %c0_59 = arith.constant 0 : index
    %75 = vector.load %arg11[%c2_57, %c0_58, %c0_59] : memref<10x10x128xf32, #tpu.memory_space<vmem>>, vector<8x8x128xf32>
    %76 = vector.shape_cast %75 : vector<8x8x128xf32> to vector<64x128xf32>
    %77 = arith.truncf %76 : vector<64x128xf32> to vector<64x128xbf16>
    %c6 = arith.constant 6 : index
    %c0_60 = arith.constant 0 : index
    %c0_61 = arith.constant 0 : index
    %78 = vector.load %arg6[%c6, %c0_60, %c0_61] : memref<9x128x128xbf16, #tpu.memory_space<vmem>>, vector<1x128x128xbf16>
    %79 = vector.shape_cast %78 : vector<1x128x128xbf16> to vector<128x128xbf16>
    %cst_62 = arith.constant dense<0.000000e+00> : vector<64x128xf32>
    %80 = tpu.matmul %77, %79, %cst_62 {dimension_numbers = #tpu.dot_dimension_numbers<[1], [0], [0], [1], [0, 0, 1, 1], [], []>} : vector<64x128xbf16>, vector<128x128xbf16>, vector<64x128xf32> -> vector<64x128xf32>
    %81 = arith.addf %74, %80 : vector<64x128xf32>
    %c2_63 = arith.constant 2 : index
    %c1_64 = arith.constant 1 : index
    %c0_65 = arith.constant 0 : index
    %82 = vector.load %arg11[%c2_63, %c1_64, %c0_65] : memref<10x10x128xf32, #tpu.memory_space<vmem>>, vector<8x8x128xf32>
    %83 = vector.shape_cast %82 : vector<8x8x128xf32> to vector<64x128xf32>
    %84 = arith.truncf %83 : vector<64x128xf32> to vector<64x128xbf16>
    %c7 = arith.constant 7 : index
    %c0_66 = arith.constant 0 : index
    %c0_67 = arith.constant 0 : index
    %85 = vector.load %arg6[%c7, %c0_66, %c0_67] : memref<9x128x128xbf16, #tpu.memory_space<vmem>>, vector<1x128x128xbf16>
    %86 = vector.shape_cast %85 : vector<1x128x128xbf16> to vector<128x128xbf16>
    %cst_68 = arith.constant dense<0.000000e+00> : vector<64x128xf32>
    %87 = tpu.matmul %84, %86, %cst_68 {dimension_numbers = #tpu.dot_dimension_numbers<[1], [0], [0], [1], [0, 0, 1, 1], [], []>} : vector<64x128xbf16>, vector<128x128xbf16>, vector<64x128xf32> -> vector<64x128xf32>
    %88 = arith.addf %81, %87 : vector<64x128xf32>
    %c2_69 = arith.constant 2 : index
    %c2_70 = arith.constant 2 : index
    %c0_71 = arith.constant 0 : index
    %89 = vector.load %arg11[%c2_69, %c2_70, %c0_71] : memref<10x10x128xf32, #tpu.memory_space<vmem>>, vector<8x8x128xf32>
    %90 = vector.shape_cast %89 : vector<8x8x128xf32> to vector<64x128xf32>
    %91 = arith.truncf %90 : vector<64x128xf32> to vector<64x128xbf16>
    %c8 = arith.constant 8 : index
    %c0_72 = arith.constant 0 : index
    %c0_73 = arith.constant 0 : index
    %92 = vector.load %arg6[%c8, %c0_72, %c0_73] : memref<9x128x128xbf16, #tpu.memory_space<vmem>>, vector<1x128x128xbf16>
    %93 = vector.shape_cast %92 : vector<1x128x128xbf16> to vector<128x128xbf16>
    %cst_74 = arith.constant dense<0.000000e+00> : vector<64x128xf32>
    %94 = tpu.matmul %91, %93, %cst_74 {dimension_numbers = #tpu.dot_dimension_numbers<[1], [0], [0], [1], [0, 0, 1, 1], [], []>} : vector<64x128xbf16>, vector<128x128xbf16>, vector<64x128xf32> -> vector<64x128xf32>
    %95 = arith.addf %88, %94 : vector<64x128xf32>
    %c0_75 = arith.constant 0 : index
    %c0_76 = arith.constant 0 : index
    %96 = vector.load %arg7[%c0_75, %c0_76] : memref<1x128xf32, #tpu.memory_space<vmem>>, vector<1x128xf32>
    %97 = vector.broadcast %96 : vector<1x128xf32> to vector<64x128xf32>
    %98 = arith.addf %95, %97 : vector<64x128xf32>
    %99 = vector.shape_cast %98 : vector<64x128xf32> to vector<8x8x128xf32>
    %c0_77 = arith.constant 0 : index
    %c0_78 = arith.constant 0 : index
    %c0_79 = arith.constant 0 : index
    %c0_80 = arith.constant 0 : index
    %100 = vector.load %arg8[%c0_77, %c0_78, %c0_79, %c0_80] : memref<1x8x8x128xf32, #tpu.memory_space<vmem>>, vector<1x8x8x128xf32>
    %101 = vector.shape_cast %100 : vector<1x8x8x128xf32> to vector<8x8x128xf32>
    %102 = vector.shape_cast %99 : vector<8x8x128xf32> to vector<1x8x8x128xf32>
    tpu.vector_store %arg8[%c0_77, %c0_78, %c0_79, %c0_80], %102 {strides = array<i32>} : memref<1x8x8x128xf32, #tpu.memory_space<vmem>>, vector<1x8x8x128xf32>,
    %c0_81 = arith.constant 0 : index
    %c0_82 = arith.constant 0 : index
    %103 = vector.load %arg9[%c0_81, %c0_82] : memref<1x128xf32, #tpu.memory_space<vmem>>, vector<1x128xf32>
    %cst_83 = arith.constant dense<0.000000e+00> : vector<128xf32>
    %104 = vector.multi_reduction <add>, %98, %cst_83 [0] : vector<64x128xf32> to vector<128xf32>
    %105 = vector.shape_cast %104 : vector<128xf32> to vector<1x128xf32>
    %106 = arith.addf %103, %105 : vector<1x128xf32>
    %c0_84 = arith.constant 0 : index
    %c0_85 = arith.constant 0 : index
    %107 = vector.load %arg9[%c0_84, %c0_85] : memref<1x128xf32, #tpu.memory_space<vmem>>, vector<1x128xf32>
    tpu.vector_store %arg9[%c0_84, %c0_85], %106 {strides = array<i32>} : memref<1x128xf32, #tpu.memory_space<vmem>>, vector<1x128xf32>,
    %c0_86 = arith.constant 0 : index
    %c0_87 = arith.constant 0 : index
    %108 = vector.load %arg10[%c0_86, %c0_87] : memref<1x128xf32, #tpu.memory_space<vmem>>, vector<1x128xf32>
    %109 = arith.mulf %98, %98 : vector<64x128xf32>
    %cst_88 = arith.constant dense<0.000000e+00> : vector<128xf32>
    %110 = vector.multi_reduction <add>, %109, %cst_88 [0] : vector<64x128xf32> to vector<128xf32>
    %111 = vector.shape_cast %110 : vector<128xf32> to vector<1x128xf32>
    %112 = arith.addf %108, %111 : vector<1x128xf32>
    %c0_89 = arith.constant 0 : index
    %c0_90 = arith.constant 0 : index
    %113 = vector.load %arg10[%c0_89, %c0_90] : memref<1x128xf32, #tpu.memory_space<vmem>>, vector<1x128xf32>
    tpu.vector_store %arg10[%c0_89, %c0_90], %112 {strides = array<i32>} : memref<1x128xf32, #tpu.memory_space<vmem>>, vector<1x128xf32>,
    return
  }
  func.func @transform_0(%arg0: i32) -> (i32, i32, i32, i32) {
    %c0_i32 = arith.constant 0 : i32
    %c0_i32_0 = arith.constant 0 : i32
    %c0_i32_1 = arith.constant 0 : i32
    %c0_i32_2 = arith.constant 0 : i32
    return %arg0, %c0_i32, %c0_i32_0, %c0_i32_1 : i32, i32, i32, i32
  }
  func.func @transform_1(%arg0: i32) -> (i32, i32) {
    %c0_i32 = arith.constant 0 : i32
    %c0_i32_0 = arith.constant 0 : i32
    %c0_i32_1 = arith.constant 0 : i32
    return %c0_i32, %c0_i32_0 : i32, i32
  }
  func.func @transform_2(%arg0: i32) -> (i32, i32) {
    %c0_i32 = arith.constant 0 : i32
    %c0_i32_0 = arith.constant 0 : i32
    %c0_i32_1 = arith.constant 0 : i32
    return %c0_i32, %c0_i32_0 : i32, i32
  }
  func.func @transform_3(%arg0: i32) -> (i32, i32) {
    %c0_i32 = arith.constant 0 : i32
    %c0_i32_0 = arith.constant 0 : i32
    %c0_i32_1 = arith.constant 0 : i32
    return %c0_i32, %c0_i32_0 : i32, i32
  }
  func.func @transform_4(%arg0: i32) -> (i32, i32) {
    %c0_i32 = arith.constant 0 : i32
    %c0_i32_0 = arith.constant 0 : i32
    %c0_i32_1 = arith.constant 0 : i32
    return %c0_i32, %c0_i32_0 : i32, i32
  }
  func.func @transform_5(%arg0: i32) -> (i32, i32, i32) {
    %c0_i32 = arith.constant 0 : i32
    %c0_i32_0 = arith.constant 0 : i32
    %c0_i32_1 = arith.constant 0 : i32
    %c0_i32_2 = arith.constant 0 : i32
    return %c0_i32, %c0_i32_0, %c0_i32_1 : i32, i32, i32
  }
  func.func @transform_6(%arg0: i32) -> (i32, i32) {
    %c0_i32 = arith.constant 0 : i32
    %c0_i32_0 = arith.constant 0 : i32
    %c0_i32_1 = arith.constant 0 : i32
    return %c0_i32, %c0_i32_0 : i32, i32
  }
  func.func @transform_7(%arg0: i32) -> (i32, i32, i32, i32) {
    %c0_i32 = arith.constant 0 : i32
    %c0_i32_0 = arith.constant 0 : i32
    %c0_i32_1 = arith.constant 0 : i32
    %c0_i32_2 = arith.constant 0 : i32
    return %arg0, %c0_i32, %c0_i32_0, %c0_i32_1 : i32, i32, i32, i32
  }
  func.func @transform_8(%arg0: i32) -> (i32, i32) {
    %c0_i32 = arith.constant 0 : i32
    %c0_i32_0 = arith.constant 0 : i32
    %c0_i32_1 = arith.constant 0 : i32
    return %c0_i32, %c0_i32_0 : i32, i32
  }
  func.func @transform_9(%arg0: i32) -> (i32, i32) {
    %c0_i32 = arith.constant 0 : i32
    %c0_i32_0 = arith.constant 0 : i32
    %c0_i32_1 = arith.constant 0 : i32
    return %c0_i32, %c0_i32_0 : i32, i32
  }
}

</mosaic_0001>

<bundles_post_ra>
// kernel: residual_stack_forward.5
= control target key start
LH: loop header
LB: loop body
LE: loop exit
PB: predicated region body
PF: predicated region fallthrough
CT: control target
= control target key end

     0   :  { %s493_s21 = smov 0   ;;  %s530_s0 = inlined_call_operand.vmem [shape: f32[128,128], index: 0, kind: input, shape index: {}]   ;;  %s531_s1 = inlined_call_operand.vmem [shape: f32[1,128], index: 1, kind: input, shape index: {}]   ;;  %s532_s2 = inlined_call_operand.vmem [shape: f32[1,128], index: 2, kind: input, shape index: {}]   ;;  %s533_s3 = inlined_call_operand.vmem [shape: f32[1,128], index: 3, kind: input, shape index: {}]   ;;  %s534_s4 = inlined_call_operand.vmem [shape: f32[1,128], index: 4, kind: input, shape index: {}]   ;;  %s535_s5 = inlined_call_operand.vmem [shape: f32[128,128], index: 5, kind: input, shape index: {}]   ;;  %s536_s6 = inlined_call_operand.vmem [shape: f32[128,128], index: 6, kind: output, shape index: {}]  }
   0x1 LB: > { %s427_s22 = sadd.s32 4294967295, %s456_s21   ;;  %p431_p0 = scmp.ge.s32.totalorder %s456_s21, 1  ;;  %s456_s21 = sphi %s493_s21, %s16_s21  }
   0x2   : > { %p224_p1 = scmp.lt.s32.totalorder %s456_s21, 3 }
   0x4   : > { %p225_p2 = pnand %p431_p0, %p224_p1 }
   0x5   : > { %s432_s27 = sshll.u32 (!%p225_p2), %s427_s22, 3 }
   0x6   : > { %228 = sbr.rel (%p225_p2) target bundleno = 54 (0x36), region = 44  ;;  %p260_p3 = scmp.lt.s32.totalorder (!%p225_p2), %s432_s27, 15 }
   0xb   : > { %v277_v0 = vld [vmem:[%s531_s1] sm:$0x1]  ;;  %s538_s27 = smov (!%p260_p3, %s432_s27), 15  ;;  %v300_v8 = vlaneseq }
   0xc   : > { %v279_v1 = vld [vmem:[%s532_s2] sm:$0x1]  ;;  %v278_v2 = vmul.f32 0.0078125, %v277_v0  ;;  %s507_s28 = sshll.u32 %s538_s27, 3 }
   0xd   : > { %v280_v3 = vmul.f32 0.0078125, %v279_v1  ;;  %v301_v9 = vshrl.u32 %v300_v8, 7  ;;  %s263_s7 = scalar_lea.vmem %s530_s0, %s507_s28  ;;  %v284_v10 = vld [vmem:[%s533_s3] sm:$0x1]  ;;  %s269_s14 = scalar_lea.vmem %s535_s5, %s507_s28 }
   0xe   : > { %v281_v4 = vmul.f32 %v278_v2, %v278_v2  ;;  %v288_v14 = vld [vmem:[%s534_s4] sm:$0x1]  ;;  %v292_v16 = vld [vmem:[%s263_s7 + $0x8] sm:$0xff]  ;;  %v293_v17 = vld [vmem:[%s263_s7 + $0x10] sm:$0xff]  ;;  %s275_s17 = scalar_lea.vmem %s536_s6, %s507_s28 }
   0xf   : > { %v302_v11 = vsub.s32 0, %v301_v9  ;;  %v291_v15 = vld [vmem:[%s263_s7] sm:$0xff]  ;;  %v294_v18 = vld [vmem:[%s263_s7 + $0x18] sm:$0xff]  ;;  %v296_v22 = vld [vmem:[%s263_s7 + $0x28] sm:$0xff] }
  0x10   : > { %v282_v5 = vsub.f32 %v280_v3, %v281_v4  ;;  %v295_v21 = vld [vmem:[%s263_s7 + $0x20] sm:$0xff]  ;;  %v297_v23 = vld [vmem:[%s263_s7 + $0x30] sm:$0xff]  ;;  %v298_v24 = vld [vmem:[%s263_s7 + $0x38] sm:$0xff] }
  0x11   : > { %v335_v36 = vld [vmem:[%s269_s14] sm:$0xff]  ;;  %v336_v38 = vld [vmem:[%s269_s14 + $0x8] sm:$0xff]  ;;  %v337_v40 = vld [vmem:[%s269_s14 + $0x10] sm:$0xff] }
  0x12   : > { %v283_v6 = vmax.f32 %v282_v5, 0.0  ;;  %v338_v42 = vld [vmem:[%s269_s14 + $0x18] sm:$0xff]  ;;  %v339_v44 = vld [vmem:[%s269_s14 + $0x20] sm:$0xff]  ;;  %v340_v46 = vld [vmem:[%s269_s14 + $0x28] sm:$0xff] }
  0x13   : > { %v341_v53 = vld [vmem:[%s269_s14 + $0x30] sm:$0xff]  ;;  %v342_v54 = vld [vmem:[%s269_s14 + $0x38] sm:$0xff] }
  0x14   : > { %v285_v7 = vadd.f32 1e-05, %v283_v6 }
  0x16   : > { %448 = vrsqrt.f32 %v285_v7 }
  0x23   : > { %v449_v12 = vpop.eup %448 }
  0x24   : > { %v287_v13 = vmul.f32 %v449_v12, %v284_v10 }
  0x26   : > { %v289_v19 = vmul.f32 %v287_v13, %v278_v2  ;;  %v303_v20 = vrot.slane %v287_v13, %v302_v11 }
  0x28   : > { %v290_v25 = vsub.f32 %v288_v14, %v289_v19  ;;  %v305_v26 = vmul.f32 %v303_v20, %v291_v15  ;;  %v306_v27 = vmul.f32 %v303_v20, %v292_v16  ;;  %v307_v28 = vmul.f32 %v303_v20, %v293_v17 }
  0x29   : > { %v308_v29 = vmul.f32 %v303_v20, %v294_v18  ;;  %v309_v30 = vmul.f32 %v303_v20, %v295_v21  ;;  %v310_v31 = vmul.f32 %v303_v20, %v296_v22  ;;  %v311_v32 = vmul.f32 %v303_v20, %v297_v23 }
  0x2a   : > { %v317_v33 = vrot.slane %v290_v25, %v302_v11  ;;  %v312_v34 = vmul.f32 %v303_v20, %v298_v24 }
  0x2c   : > { %v319_v35 = vadd.f32 %v317_v33, %v305_v26  ;;  %v320_v37 = vadd.f32 %v317_v33, %v306_v27  ;;  %v321_v39 = vadd.f32 %v317_v33, %v307_v28  ;;  %v322_v41 = vadd.f32 %v317_v33, %v308_v29 }
  0x2d   : > { %v323_v43 = vadd.f32 %v317_v33, %v309_v30  ;;  %v324_v45 = vadd.f32 %v317_v33, %v310_v31  ;;  %v325_v47 = vadd.f32 %v317_v33, %v311_v32  ;;  %v326_v48 = vadd.f32 %v317_v33, %v312_v34 }
  0x2e   : > { %v327_v49 = vmax.f32 %v319_v35, 0.0  ;;  %v328_v50 = vmax.f32 %v320_v37, 0.0  ;;  %v329_v51 = vmax.f32 %v321_v39, 0.0  ;;  %v330_v52 = vmax.f32 %v322_v41, 0.0 }
  0x2f   : > { %v331_v55 = vmax.f32 %v323_v43, 0.0  ;;  %v332_v56 = vmax.f32 %v324_v45, 0.0  ;;  %v333_v57 = vmax.f32 %v325_v47, 0.0  ;;  %v334_v58 = vmax.f32 %v326_v48, 0.0 }
  0x30   : > { %v343_v59 = vadd.f32 %v335_v36, %v327_v49  ;;  %v344_v60 = vadd.f32 %v336_v38, %v328_v50  ;;  %v345_v61 = vadd.f32 %v337_v40, %v329_v51  ;;  %v346_v62 = vadd.f32 %v338_v42, %v330_v52 }
  0x31   : > { %v347_v63 = vadd.f32 %v339_v44, %v331_v55  ;;  %v348_v0 = vadd.f32 %v340_v46, %v332_v56  ;;  %v349_v1 = vadd.f32 %v341_v53, %v333_v57  ;;  %v350_v2 = vadd.f32 %v342_v54, %v334_v58 }
  0x32   : > { %351 = vst [vmem:[%s275_s17] sm:$0xff] %v343_v59  ;;  %352 = vst [vmem:[%s275_s17 + $0x8] sm:$0xff] %v344_v60 }
  0x33   : > { %353 = vst [vmem:[%s275_s17 + $0x10] sm:$0xff] %v345_v61  ;;  %354 = vst [vmem:[%s275_s17 + $0x18] sm:$0xff] %v346_v62 }
  0x34   : > { %355 = vst [vmem:[%s275_s17 + $0x20] sm:$0xff] %v347_v63  ;;  %356 = vst [vmem:[%s275_s17 + $0x28] sm:$0xff] %v348_v0 }
  0x35   : > { %357 = vst [vmem:[%s275_s17 + $0x30] sm:$0xff] %v349_v1  ;;  %358 = vst [vmem:[%s275_s17 + $0x38] sm:$0xff] %v350_v2 }
  0x36 PF: > { %s16_s21 = sadd.s32 1, %s456_s21  }
  0x37   : > { %p13_p4 = scmp.ge.s32.totalorder %s16_s21, 4  }
  0x39   :  { %15 = sbr.rel (!%p13_p4) target bundleno = 1 (0x1), region = 77 }

// kernel: residual_stack_forward.4
= control target key start
LH: loop header
LB: loop body
LE: loop exit
PB: predicated region body
PF: predicated region fallthrough
CT: control target
= control target key end

     0   :  { %s2583_s30 = smov 0   ;;  %s3050_s0 = inlined_call_operand.vmem [shape: f32[2,8,8,128], index: 0, kind: input, shape index: {}]   ;;  %s3051_s1 = inlined_call_operand.vmem [shape: f32[1,128], index: 1, kind: input, shape index: {}]   ;;  %s3052_s2 = inlined_call_operand.vmem [shape: f32[1,128], index: 2, kind: input, shape index: {}]   ;;  %s3053_s3 = inlined_call_operand.vmem [shape: f32[1,128], index: 3, kind: input, shape index: {}]   ;;  %s3054_s4 = inlined_call_operand.vmem [shape: f32[1,128], index: 4, kind: input, shape index: {}]   ;;  %s3055_s5 = inlined_call_operand.vmem [shape: bf16[9,128,128], index: 5, kind: input, shape index: {}]   ;;  %s3056_s6 = inlined_call_operand.vmem [shape: f32[1,128], index: 6, kind: input, shape index: {}]   ;;  %s3057_s7 = inlined_call_operand.vmem [shape: f32[2,8,8,128], index: 7, kind: output, shape index: {0}]   ;;  %s3058_s8 = inlined_call_operand.vmem [shape: f32[1,128], index: 8, kind: output, shape index: {1}]   ;;  %s3059_s9 = inlined_call_operand.vmem [shape: f32[1,128], index: 9, kind: output, shape index: {2}]  }
   0x1 LB: > { %s1886_s10 = sadd.s32 4294967295, %s2530_s30   ;;  %p1890_p0 = scmp.ge.s32.totalorder %s2530_s30, 1  ;;  %s2530_s30 = sphi %s2583_s30, %s20_s30  }
   0x2   : > { %p282_p1 = scmp.lt.s32.totalorder %s2530_s30, 3 }
   0x4   : > { %p283_p2 = pnand %p1890_p0, %p282_p1 }
   0x6   : > { %286 = sbr.rel (%p283_p2) target bundleno = 440 (0x1b8), region = 48 }
   0xb   : > { %p318_p3 = scmp.lt.s32.totalorder %s1886_s10, 1  ;;  %p1895_p4 = scmp.ne.s32.totalorder %s1886_s10, 0 }
   0xd   : > { %s319_s11 = scalar_select %p318_p3, %s1886_s10, 1 }
   0xe   : > { %332 = sbr.rel (%p1895_p4) target bundleno = 31 (0x1f), region = 52 }
   0xf   : > { %s2099_s12 = sshll.u32 %s319_s11, 6 }
  0x10   : > { %s2594_s15 = scalar_lea.vmem %s3050_s0, %s2099_s12  ;;  %s2599_s18 = scalar_lea.vmem %s3057_s7, %s2099_s12 }
  0x13   : > { %v2532_v0 = vmov 0.0  }
  0x14   : > { %333 = vst [vmem:[#allocation2] sm:$0xff] %v2532_v0  ;;  %334 = vst [vmem:[#allocation2 + $0x8] sm:$0x3] %v2532_v0 }
  0x15   : > { %335 = vst [vmem:[#allocation2 + $0x10] sm:$0xff] %v2532_v0  ;;  %336 = vst [vmem:[#allocation2 + $0x18] sm:$0x3] %v2532_v0 }
  0x16   : > { %337 = vst [vmem:[#allocation2 + $0x20] sm:$0xff] %v2532_v0  ;;  %338 = vst [vmem:[#allocation2 + $0x28] sm:$0x3] %v2532_v0 }
  0x17   : > { %339 = vst [vmem:[#allocation2 + $0x30] sm:$0xff] %v2532_v0  ;;  %340 = vst [vmem:[#allocation2 + $0x38] sm:$0x3] %v2532_v0 }
  0x18   : > { %341 = vst [vmem:[#allocation2 + $0x40] sm:$0xff] %v2532_v0  ;;  %342 = vst [vmem:[#allocation2 + $0x48] sm:$0x3] %v2532_v0 }
  0x19   : > { %343 = vst [vmem:[#allocation2 + $0x50] sm:$0xff] %v2532_v0  ;;  %344 = vst [vmem:[#allocation2 + $0x58] sm:$0x3] %v2532_v0 }
  0x1a   : > { %345 = vst [vmem:[#allocation2 + $0x60] sm:$0xff] %v2532_v0  ;;  %346 = vst [vmem:[#allocation2 + $0x68] sm:$0x3] %v2532_v0 }
  0x1b   : > { %347 = vst [vmem:[#allocation2 + $0x70] sm:$0xff] %v2532_v0  ;;  %348 = vst [vmem:[#allocation2 + $0x78] sm:$0x3] %v2532_v0 }
  0x1c   : > { %349 = vst [vmem:[#allocation2 + $0x80] sm:$0xff] %v2532_v0  ;;  %350 = vst [vmem:[#allocation2 + $0x88] sm:$0x3] %v2532_v0 }
  0x1d   : > { %351 = vst [vmem:[#allocation2 + $0x90] sm:$0xff] %v2532_v0  ;;  %352 = vst [vmem:[#allocation2 + $0x98] sm:$0x3] %v2532_v0 }
  0x1e   : > { %353 = vst [vmem:[%s3058_s8] sm:$0x1] %v2532_v0  ;;  %354 = vst [vmem:[%s3059_s9] sm:$0x1] %v2532_v0 }
  0x1f PF: > { %v2450_v1 = vld [vmem:[%s3055_s5 + $0x78] sm:$0xff]   ;;  %v2452_v3 = vld [vmem:[%s3055_s5 + $0x70] sm:$0xff]   ;;  %v2454_v5 = vld [vmem:[%s3055_s5 + $0x68] sm:$0xff]   ;;  %v378_v27 = vlaneseq }
  0x20   : > { %v2451_v2 = vld [vmem:[%s3055_s5 + $0x38] sm:$0xff]   ;;  %2209 = vmatprep.subr.bf16.mxu0 %v2450_v1  ;;  %v2453_v4 = vld [vmem:[%s3055_s5 + $0x30] sm:$0xff]   ;;  %v2455_v6 = vld [vmem:[%s3055_s5 + $0x28] sm:$0xff]  }
  0x21   : > { %2233 = vmatprep.subr.bf16.mxu1 %v2451_v2  ;;  %2210 = vmatpush3.bf16.msra.mxu0 %v2450_v1  ;;  %v2456_v7 = vld [vmem:[%s3055_s5 + $0x60] sm:$0xff]   ;;  %v2458_v9 = vld [vmem:[%s3055_s5 + $0x58] sm:$0xff]   ;;  %v2460_v11 = vld [vmem:[%s3055_s5 + $0x50] sm:$0xff]   ;;  %v379_v28 = vshrl.u32 %v378_v27, 7 }
  0x22   : > { %2234 = vmatpush3.bf16.msra.mxu1 %v2451_v2  ;;  %2211 = vmatprep.subr.bf16.mxu0 %v2452_v3  ;;  %v2457_v8 = vld [vmem:[%s3055_s5 + $0x20] sm:$0xff]   ;;  %v2459_v10 = vld [vmem:[%s3055_s5 + $0x18] sm:$0xff]   ;;  %v2461_v14 = vld [vmem:[%s3055_s5 + $0x10] sm:$0xff]  }
  0x23   : > { %2235 = vmatprep.subr.bf16.mxu1 %v2453_v4  ;;  %v355_v12 = vld [vmem:[%s3051_s1] sm:$0x1]  ;;  %v2462_v18 = vld [vmem:[%s3055_s5 + $0x48] sm:$0xff]   ;;  %v2664_v25 = vld [vmem:[%s3055_s5 + $0xb8] sm:$0xff]   ;;  %v380_v30 = vsub.s32 0, %v379_v28 }
  0x24   : > { %v357_v13 = vld [vmem:[%s3052_s2] sm:$0x1]  ;;  %v356_v15 = vmul.f32 0.0078125, %v355_v12  ;;  %v2463_v19 = vld [vmem:[%s3055_s5 + $0x8] sm:$0xff]   ;;  %v2669_v26 = vld [vmem:[%s3055_s5 + $0xf8] sm:$0xff]  }
  0x25   : > { %2212 = vmatpush3.bf16.msra.mxu0 %v2452_v3  ;;  %v358_v16 = vmul.f32 0.0078125, %v357_v13  ;;  %v2464_v21 = vld [vmem:[%s3055_s5 + $0x40] sm:$0xff]   ;;  %v370_v34 = vld [vmem:[%s2594_s15 + $0x8] sm:$0xff]  ;;  %v371_v35 = vld [vmem:[%s2594_s15 + $0x10] sm:$0xff] }
  0x26   : > { %2236 = vmatpush3.bf16.msra.mxu1 %v2453_v4  ;;  %2213 = vmatprep.subr.bf16.mxu0 %v2454_v5  ;;  %v359_v17 = vmul.f32 %v356_v15, %v356_v15  ;;  %v2465_v23 = vld [vmem:[%s3055_s5] sm:$0xff]   ;;  %v372_v37 = vld [vmem:[%s2594_s15 + $0x18] sm:$0xff]  ;;  %v374_v39 = vld [vmem:[%s2594_s15 + $0x28] sm:$0xff] }
  0x27   : > { %2237 = vmatprep.subr.bf16.mxu1 %v2455_v6  ;;  %v362_v29 = vld [vmem:[%s3053_s3] sm:$0x1]  ;;  %v375_v42 = vld [vmem:[%s2594_s15 + $0x30] sm:$0xff]  ;;  %v376_v43 = vld [vmem:[%s2594_s15 + $0x38] sm:$0xff] }
  0x28   : > { %v360_v20 = vsub.f32 %v358_v16, %v359_v17  ;;  %v366_v32 = vld [vmem:[%s3054_s4] sm:$0x1]  ;;  %v450_v58 = vld [vmem:[#allocation2 + $0x1] sm:$0xff] }
  0x29   : > { %2214 = vmatpush3.bf16.msra.mxu0 %v2454_v5  ;;  %v369_v33 = vld [vmem:[%s2594_s15] sm:$0xff] }
  0x2a   : > { %2238 = vmatpush3.bf16.msra.mxu1 %v2455_v6  ;;  %2215 = vmatprep.subr.bf16.mxu0 %v2456_v7  ;;  %v361_v22 = vmax.f32 %v360_v20, 0.0  ;;  %v373_v38 = vld [vmem:[%s2594_s15 + $0x20] sm:$0xff] }
  0x2b   : > { %2239 = vmatprep.subr.bf16.mxu1 %v2457_v8  ;;  %v705_v16 = vld [vmem:[#allocation2 + $0x2] sm:$0xff] }
  0x2c   : > { %v363_v24 = vadd.f32 1e-05, %v361_v22  ;;  %v2472_v27 = vld [vmem:[%s3055_s5 + $0xa0] sm:$0xff]  }
  0x2d   : > { %2216 = vmatpush3.bf16.msra.mxu0 %v2456_v7 }
  0x2e   : > { %2240 = vmatpush3.bf16.msra.mxu1 %v2457_v8  ;;  %2217 = vmatprep.subr.bf16.mxu0 %v2458_v9  ;;  %2522 = vrsqrt.f32 %v363_v24 }
  0x2f   : > { %2241 = vmatprep.subr.bf16.mxu1 %v2459_v10 }
  0x31   : > { %2218 = vmatpush3.bf16.msra.mxu0 %v2458_v9 }
  0x32   : > { %2242 = vmatpush3.bf16.msra.mxu1 %v2459_v10  ;;  %2219 = vmatprep.subr.bf16.mxu0 %v2460_v11  ;;  %v2468_v10 = vld [vmem:[%s3055_s5 + $0xb0] sm:$0xff]  }
  0x33   : > { %2243 = vmatprep.subr.bf16.mxu1 %v2461_v14 }
  0x35   : > { %2220 = vmatpush3.bf16.msra.mxu0 %v2460_v11 }
  0x36   : > { %2244 = vmatpush3.bf16.msra.mxu1 %v2461_v14  ;;  %2221 = vmatprep.subr.bf16.mxu0 %v2462_v18  ;;  %v422_v14 = vld [vmem:[#allocation2] sm:$0xff] }
  0x37   : > { %2245 = vmatprep.subr.bf16.mxu1 %v2463_v19 }
  0x39   : > { %2222 = vmatpush3.bf16.msra.mxu0 %v2462_v18 }
  0x3a   : > { %2246 = vmatpush3.bf16.msra.mxu1 %v2463_v19  ;;  %2223 = vmatprep.subr.bf16.mxu0 %v2464_v21 }
  0x3b   : > { %2247 = vmatprep.subr.bf16.mxu1 %v2465_v23  ;;  %v2523_v31 = vpop.eup %2522 }
  0x3c   : > { %v365_v36 = vmul.f32 %v2523_v31, %v362_v29  ;;  %v2471_v31 = vld [vmem:[%s3055_s5 + $0xe8] sm:$0xff]  }
  0x3d   : > { %2224 = vmatpush3.bf16.msra.mxu0 %v2464_v21 }
  0x3e   : > { %2248 = vmatpush3.bf16.msra.mxu1 %v2465_v23  ;;  %2257 = vmatprep.subr.bf16.mxu0 %v2664_v25  ;;  %v367_v40 = vmul.f32 %v365_v36, %v356_v15  ;;  %v381_v41 = vrot.slane %v365_v36, %v380_v30  ;;  %v2470_v15 = vld [vmem:[%s3055_s5 + $0xa8] sm:$0xff]   ;;  %v2476_v36 = vld [vmem:[%s3055_s5 + $0x90] sm:$0xff]  }
  0x3f   : > { %2281 = vmatprep.subr.bf16.mxu1 %v2669_v26 }
  0x40   : > { %v368_v44 = vsub.f32 %v366_v32, %v367_v40  ;;  %v383_v45 = vmul.f32 %v381_v41, %v369_v33  ;;  %v384_v46 = vmul.f32 %v381_v41, %v370_v34  ;;  %v385_v47 = vmul.f32 %v381_v41, %v371_v35  ;;  %v2474_v34 = vld [vmem:[%s3055_s5 + $0x98] sm:$0xff]   ;;  %v2477_v40 = vld [vmem:[%s3055_s5 + $0xd0] sm:$0xff]  }
  0x41   : > { %v386_v48 = vmul.f32 %v381_v41, %v372_v37  ;;  %v387_v49 = vmul.f32 %v381_v41, %v373_v38  ;;  %v388_v50 = vmul.f32 %v381_v41, %v374_v39  ;;  %v389_v51 = vmul.f32 %v381_v41, %v375_v42  ;;  %v2475_v38 = vld [vmem:[%s3055_s5 + $0xd8] sm:$0xff]   ;;  %v2478_v39 = vld [vmem:[%s3055_s5 + $0x88] sm:$0xff]  }
  0x42   : > { %v395_v52 = vrot.slane %v368_v44, %v380_v30  ;;  %v390_v53 = vmul.f32 %v381_v41, %v376_v43  ;;  %v2480_v41 = vld [vmem:[%s3055_s5 + $0x80] sm:$0xff]   ;;  %v2479_v42 = vld [vmem:[%s3055_s5 + $0xc8] sm:$0xff]  }
  0x44   : > { %v397_v54 = vadd.f32 %v395_v52, %v383_v45  ;;  %v398_v55 = vadd.f32 %v395_v52, %v384_v46  ;;  %v399_v56 = vadd.f32 %v395_v52, %v385_v47  ;;  %v400_v57 = vadd.f32 %v395_v52, %v386_v48  ;;  %v2482_v45 = vld [vmem:[%s3055_s5 + $0x138] sm:$0xff]  }
  0x45   : > { %v401_v59 = vadd.f32 %v395_v52, %v387_v49  ;;  %v402_v60 = vadd.f32 %v395_v52, %v388_v50  ;;  %v403_v61 = vadd.f32 %v395_v52, %v389_v51  ;;  %v404_v62 = vadd.f32 %v395_v52, %v390_v53  ;;  %v2481_v49 = vld [vmem:[%s3055_s5 + $0xc0] sm:$0xff]   ;;  %v2484_v50 = vld [vmem:[%s3055_s5 + $0x130] sm:$0xff]  }
  0x46   : > { %v2687_v63 = vmax.f32 %v397_v54, 0.0  ;;  %v2689_v0 = vmax.f32 %v398_v55, 0.0  ;;  %v2691_v1 = vmax.f32 %v399_v56, 0.0  ;;  %v2693_v2 = vmax.f32 %v400_v57, 0.0  ;;  %v2483_v54 = vld [vmem:[%s3055_s5 + $0x178] sm:$0xff]   ;;  %v2486_v55 = vld [vmem:[%s3055_s5 + $0x128] sm:$0xff]  }
  0x47   : > { %v2695_v3 = vmax.f32 %v401_v59, 0.0  ;;  %v2697_v4 = vmax.f32 %v402_v60, 0.0  ;;  %v2699_v5 = vmax.f32 %v403_v61, 0.0  ;;  %v2701_v6 = vmax.f32 %v404_v62, 0.0  ;;  %v2485_v59 = vld [vmem:[%s3055_s5 + $0x170] sm:$0xff]   ;;  %v2488_v60 = vld [vmem:[%s3055_s5 + $0x120] sm:$0xff]  }
  0x48   : > { %414 = vst [vmem:[#allocation2 + $0x11] sm:$0xff] %v2687_v63  ;;  %v458_v7 = vpack.c.bf16 %v2687_v63, %v450_v58  ;;  %415 = vst [vmem:[#allocation2 + $0x21] sm:$0xff] %v2689_v0  ;;  %v2709_v8 = vpack.c.bf16 %v2691_v1, %v2689_v0  ;;  %v1014_v9 = vpack.c.bf16 %v2693_v2, %v2691_v1 }
  0x49   : > { %416 = vst [vmem:[#allocation2 + $0x31] sm:$0xff] %v2691_v1  ;;  %417 = vst [vmem:[#allocation2 + $0x41] sm:$0xff] %v2693_v2  ;;  %v2720_v11 = vpack.c.bf16 %v2695_v3, %v2693_v2  ;;  %v1015_v12 = vpack.c.bf16 %v2697_v4, %v2695_v3  ;;  %v1016_v13 = vpack.c.bf16 %v2701_v6, %v2699_v5  ;;  %v2501_v1 = vld [vmem:[%s3055_s5 + $0x1f0] sm:$0xff]  }
  0x4a   : > { %418 = vst [vmem:[#allocation2 + $0x51] sm:$0xff] %v2695_v3  ;;  %419 = vst [vmem:[#allocation2 + $0x61] sm:$0xff] %v2697_v4  ;;  %2225 = vmatprep.mubr.bf16.mxu0 %v458_v7  ;;  %v2739_v20 = vpack.c.bf16 %v2699_v5, %v2697_v4  ;;  %v1013_v61 = vpack.c.bf16 %v2689_v0, %v2687_v63  ;;  %v2487_v7 = vld [vmem:[%s3055_s5 + $0x168] sm:$0xff]   ;;  %v2504_v3 = vld [vmem:[%s3055_s5 + $0x1a0] sm:$0xff]  }
  0x4b   : > { %420 = vst [vmem:[#allocation2 + $0x71] sm:$0xff] %v2699_v5  ;;  %421 = vst [vmem:[#allocation2 + $0x81] sm:$0xff] %v2701_v6  ;;  %2226 = vmatmul.mubr.bf16.vlgmr.msra.gmra.mxu0 %v2709_v8  ;;  %v2506_v5 = vld [vmem:[%s3055_s5 + $0x198] sm:$0xff]  }
  0x4c   : > { %2258 = vmatpush3.bf16.msra.mxu0 %v2664_v25  ;;  %2229 = vmatprep.mubr.bf16.mxu0 %v2720_v11  ;;  %v2469_v25 = vld [vmem:[%s3055_s5 + $0xf0] sm:$0xff]  }
  0x4d   : > { %2259 = vmatprep.subr.bf16.mxu0 %v2468_v10 }
  0x4f   : > { %v423_v17 = vld [vmem:[#allocation2 + $0x10] sm:$0xff]  ;;  %v424_v18 = vld [vmem:[#allocation2 + $0x20] sm:$0xff] }
  0x50   : > { %v2735_v19 = vld [vmem:[#allocation2 + $0x30] sm:$0xff]  ;;  %v430_v21 = vpack.c.bf16 %v423_v17, %v422_v14  ;;  %2260 = vmatpush3.bf16.msra.mxu0 %v2468_v10  ;;  %v2744_v23 = vld [vmem:[#allocation2 + $0x40] sm:$0xff]  ;;  %v863_v37 = vpack.c.bf16 %v424_v18, %v423_v17  ;;  %v2490_v10 = vld [vmem:[%s3055_s5 + $0x118] sm:$0xff]  }
  0x51   : > { %v2742_v22 = vpack.c.bf16 %v2735_v19, %v424_v18  ;;  %v2746_v24 = vld [vmem:[#allocation2 + $0x50] sm:$0xff]  ;;  %2261 = vmatprep.subr.bf16.mxu0 %v2470_v15  ;;  %v2767_v32 = vld [vmem:[#allocation2 + $0x60] sm:$0xff]  ;;  %v864_v56 = vpack.c.bf16 %v2744_v23, %v2735_v19  ;;  %v2494_v17 = vld [vmem:[%s3055_s5 + $0x108] sm:$0xff]  }
  0x52   : > { %v2754_v28 = vld [vmem:[#allocation2 + $0x12] sm:$0xff]  ;;  %2249 = vmatprep.mubr.bf16.mxu1 %v430_v21  ;;  %v2758_v29 = vpack.c.bf16 %v2746_v24, %v2744_v23  ;;  %v707_v43 = vld [vmem:[#allocation2 + $0x22] sm:$0xff]  ;;  %v865_v58 = vpack.c.bf16 %v2767_v32, %v2746_v24 }
  0x53   : > { %v713_v30 = vpack.c.bf16 %v2754_v28, %v705_v16  ;;  %2250 = vmatmul.mubr.bf16.vlgmr.msra.gmra.mxu1 %v2742_v22  ;;  %2230 = vmatmul.mubr.bf16.gmra.mxu0 %v2739_v20  ;;  %v2769_v33 = vld [vmem:[#allocation2 + $0x70] sm:$0xff]  ;;  %v2809_v47 = vld [vmem:[#allocation2 + $0x42] sm:$0xff]  ;;  %v1163_v0 = vpack.c.bf16 %v707_v43, %v2754_v28  ;;  %v2491_v16 = vld [vmem:[%s3055_s5 + $0x158] sm:$0xff]  }
  0x54   : > { %2282 = vmatpush3.bf16.msra.mxu1 %v2669_v26  ;;  %2262 = vmatpush3.bf16.msra.mxu0 %v2470_v15  ;;  %v2777_v35 = vpack.c.bf16 %v2769_v33, %v2767_v32  ;;  %v2473_v26 = vld [vmem:[%s3055_s5 + $0xe0] sm:$0xff]   ;;  %v2801_v44 = vld [vmem:[#allocation2 + $0x32] sm:$0xff]  ;;  %v2495_v21 = vld [vmem:[%s3055_s5 + $0x148] sm:$0xff]  }
  0x55   : > { %2283 = vmatprep.subr.bf16.mxu1 %v2469_v25  ;;  %2263 = vmatprep.subr.bf16.mxu0 %v2472_v27  ;;  %v2807_v46 = vpack.c.bf16 %v2801_v44, %v707_v43  ;;  %v2811_v48 = vld [vmem:[#allocation2 + $0x52] sm:$0xff]  ;;  %v2824_v52 = vld [vmem:[#allocation2 + $0x62] sm:$0xff] }
  0x56   : > { %2253 = vmatprep.mubr.bf16.mxu1 %v2758_v29  ;;  %2273 = vmatprep.mubr.bf16.mxu0 %v713_v30  ;;  %v2821_v51 = vpack.c.bf16 %v2811_v48, %v2809_v47  ;;  %v2826_v53 = vld [vmem:[#allocation2 + $0x72] sm:$0xff]  ;;  %v2852_v62 = vld [vmem:[#allocation2 + $0x80] sm:$0xff]  ;;  %v2502_v28 = vld [vmem:[%s3055_s5 + $0x1a8] sm:$0xff]   ;;  %v1164_v30 = vpack.c.bf16 %v2809_v47, %v2801_v44  ;;  %v1165_v2 = vpack.c.bf16 %v2824_v52, %v2811_v48 }
  0x57   : > { %v2839_v57 = vpack.c.bf16 %v2826_v53, %v2824_v52  ;;  %v866_v63 = vpack.c.bf16 %v2852_v62, %v2769_v33  ;;  %v2489_v14 = vld [vmem:[%s3055_s5 + $0x160] sm:$0xff]   ;;  %v2492_v15 = vld [vmem:[%s3055_s5 + $0x110] sm:$0xff]   ;;  %v2498_v23 = vld [vmem:[%s3055_s5 + $0x1b8] sm:$0xff]  }
  0x58   : > { %2284 = vmatpush3.bf16.msra.mxu1 %v2469_v25  ;;  %2264 = vmatpush3.bf16.msra.mxu0 %v2472_v27  ;;  %v2493_v18 = vld [vmem:[%s3055_s5 + $0x150] sm:$0xff]   ;;  %v2496_v19 = vld [vmem:[%s3055_s5 + $0x100] sm:$0xff]   ;;  %v2499_v27 = vld [vmem:[%s3055_s5 + $0x1f8] sm:$0xff]  }
  0x59   : > { %2285 = vmatprep.subr.bf16.mxu1 %v2471_v31  ;;  %2265 = vmatprep.subr.bf16.mxu0 %v2474_v34  ;;  %v2497_v24 = vld [vmem:[%s3055_s5 + $0x140] sm:$0xff]   ;;  %v2500_v25 = vld [vmem:[%s3055_s5 + $0x1b0] sm:$0xff]   ;;  %v2510_v32 = vld [vmem:[%s3055_s5 + $0x188] sm:$0xff]  }
  0x5a   : > { %v2918_v4 = vld [vmem:[#allocation2 + $0x82] sm:$0xff]  ;;  %v2509_v33 = vld [vmem:[%s3055_s5 + $0x1d0] sm:$0xff]  }
  0x5b   : > { %2254 = vmatmul.mubr.bf16.gmra.mxu1 %v2777_v35  ;;  %v1613_v43 = vld [vmem:[#allocation2 + $0x92] sm:$0xff] }
  0x5c   : > { %2286 = vmatpush3.bf16.msra.mxu1 %v2471_v31  ;;  %2266 = vmatpush3.bf16.msra.mxu0 %v2474_v34  ;;  %v2507_v31 = vld [vmem:[%s3055_s5 + $0x1d8] sm:$0xff]   ;;  %v2511_v34 = vld [vmem:[%s3055_s5 + $0x1c8] sm:$0xff]   ;;  %v1617_v44 = vpack.c.bf16 %v1613_v43, %v2918_v4 }
  0x5d   : > { %2287 = vmatprep.subr.bf16.mxu1 %v2473_v26  ;;  %2267 = vmatprep.subr.bf16.mxu0 %v2476_v36 }
  0x5e   : > { %2297 = vmatprep.mubr.bf16.mxu1 %v863_v37  ;;  %v2515_v37 = vld [vmem:[%s3055_s5 + $0x230] sm:$0xff]  }
  0x60   : > { %2288 = vmatpush3.bf16.msra.mxu1 %v2473_v26  ;;  %2268 = vmatpush3.bf16.msra.mxu0 %v2476_v36  ;;  %v2514_v26 = vld [vmem:[%s3055_s5 + $0x238] sm:$0xff]   ;;  %v2513_v36 = vld [vmem:[%s3055_s5 + $0x1c0] sm:$0xff]  }
  0x61   : > { %2289 = vmatprep.subr.bf16.mxu1 %v2475_v38  ;;  %2269 = vmatprep.subr.bf16.mxu0 %v2478_v39 }
  0x64   : > { %2290 = vmatpush3.bf16.msra.mxu1 %v2475_v38  ;;  %2270 = vmatpush3.bf16.msra.mxu0 %v2478_v39  ;;  %v1313_v38 = vld [vmem:[#allocation2 + $0x90] sm:$0xff]  ;;  %v2516_v39 = vld [vmem:[%s3055_s5 + $0x228] sm:$0xff]  }
  0x65   : > { %2291 = vmatprep.subr.bf16.mxu1 %v2477_v40  ;;  %2271 = vmatprep.subr.bf16.mxu0 %v2480_v41 }
  0x68   : > { %2292 = vmatpush3.bf16.msra.mxu1 %v2477_v40  ;;  %2272 = vmatpush3.bf16.msra.mxu0 %v2480_v41  ;;  %v1317_v40 = vpack.c.bf16 %v1313_v38, %v2852_v62 }
  0x69   : > { %2293 = vmatprep.subr.bf16.mxu1 %v2479_v42  ;;  %2305 = vmatprep.subr.bf16.mxu0 %v2482_v45 }
  0x6b   : > { %2274 = vmatmul.mubr.bf16.vlgmr.msra.gmra.mxu0 %v2807_v46 }
  0x6c   : > { %2294 = vmatpush3.bf16.msra.mxu1 %v2479_v42  ;;  %2306 = vmatpush3.bf16.msra.mxu0 %v2482_v45  ;;  %v2521_v42 = vld [vmem:[%s3055_s5 + $0x200] sm:$0xff]  }
  0x6d   : > { %2295 = vmatprep.subr.bf16.mxu1 %v2481_v49  ;;  %2307 = vmatprep.subr.bf16.mxu0 %v2484_v50 }
  0x6e   : > { %2277 = vmatprep.mubr.bf16.mxu0 %v2821_v51 }
  0x70   : > { %2296 = vmatpush3.bf16.msra.mxu1 %v2481_v49  ;;  %2308 = vmatpush3.bf16.msra.mxu0 %v2484_v50 }
  0x71   : > { %2329 = vmatprep.subr.bf16.mxu1 %v2483_v54  ;;  %2309 = vmatprep.subr.bf16.mxu0 %v2486_v55 }
  0x73   : > { %2298 = vmatmul.mubr.bf16.vlgmr.msra.gmra.mxu1 %v864_v56  ;;  %2278 = vmatmul.mubr.bf16.gmra.mxu0 %v2839_v57 }
  0x74   : > { %2330 = vmatpush3.bf16.msra.mxu1 %v2483_v54  ;;  %2301 = vmatprep.mubr.bf16.mxu1 %v865_v58 }
  0x75   : > { %2331 = vmatprep.subr.bf16.mxu1 %v2485_v59  ;;  %2310 = vmatpush3.bf16.msra.mxu0 %v2486_v55 }
  0x76   : > { %2311 = vmatprep.subr.bf16.mxu0 %v2488_v60  ;;  %2321 = vmatprep.mubr.bf16.mxu0 %v1013_v61 }
  0x78   : > { %2332 = vmatpush3.bf16.msra.mxu1 %v2485_v59 }
  0x79   : > { %2333 = vmatprep.subr.bf16.mxu1 %v2487_v7  ;;  %2312 = vmatpush3.bf16.msra.mxu0 %v2488_v60 }
  0x7a   : > { %2313 = vmatprep.subr.bf16.mxu0 %v2490_v10 }
  0x7b   : > { %2302 = vmatmul.mubr.bf16.gmra.mxu1 %v866_v63 }
  0x7c   : > { %2334 = vmatpush3.bf16.msra.mxu1 %v2487_v7  ;;  %2345 = vmatprep.mubr.bf16.mxu1 %v1163_v0 }
  0x7d   : > { %2335 = vmatprep.subr.bf16.mxu1 %v2489_v14  ;;  %2314 = vmatpush3.bf16.msra.mxu0 %v2490_v10 }
  0x7e   : > { %2315 = vmatprep.subr.bf16.mxu0 %v2492_v15 }
  0x80   : > { %2336 = vmatpush3.bf16.msra.mxu1 %v2489_v14 }
  0x81   : > { %2337 = vmatprep.subr.bf16.mxu1 %v2491_v16  ;;  %2316 = vmatpush3.bf16.msra.mxu0 %v2492_v15 }
  0x82   : > { %2317 = vmatprep.subr.bf16.mxu0 %v2494_v17 }
  0x84   : > { %2338 = vmatpush3.bf16.msra.mxu1 %v2491_v16 }
  0x85   : > { %2339 = vmatprep.subr.bf16.mxu1 %v2493_v18  ;;  %2318 = vmatpush3.bf16.msra.mxu0 %v2494_v17 }
  0x86   : > { %2319 = vmatprep.subr.bf16.mxu0 %v2496_v19 }
  0x88   : > { %2340 = vmatpush3.bf16.msra.mxu1 %v2493_v18 }
  0x89   : > { %2341 = vmatprep.subr.bf16.mxu1 %v2495_v21  ;;  %2320 = vmatpush3.bf16.msra.mxu0 %v2496_v19 }
  0x8a   : > { %2353 = vmatprep.subr.bf16.mxu0 %v2498_v23 }
  0x8c   : > { %2342 = vmatpush3.bf16.msra.mxu1 %v2495_v21  ;;  %2322 = vmatmul.mubr.bf16.vlgmr.msra.gmra.mxu0 %v1014_v9  ;;  %v2503_v9 = vld [vmem:[%s3055_s5 + $0x1e8] sm:$0xff]  }
  0x8d   : > { %2343 = vmatprep.subr.bf16.mxu1 %v2497_v24  ;;  %2354 = vmatpush3.bf16.msra.mxu0 %v2498_v23 }
  0x8e   : > { %2355 = vmatprep.subr.bf16.mxu0 %v2500_v25  ;;  %2325 = vmatprep.mubr.bf16.mxu0 %v1015_v12  ;;  %v1166_v12 = vpack.c.bf16 %v2918_v4, %v2826_v53 }
  0x90   : > { %2344 = vmatpush3.bf16.msra.mxu1 %v2497_v24 }
  0x91   : > { %2377 = vmatprep.subr.bf16.mxu1 %v2499_v27  ;;  %2356 = vmatpush3.bf16.msra.mxu0 %v2500_v25 }
  0x92   : > { %2357 = vmatprep.subr.bf16.mxu0 %v2502_v28 }
  0x93   : > { %2346 = vmatmul.mubr.bf16.vlgmr.msra.gmra.mxu1 %v1164_v30 }
  0x94   : > { %2378 = vmatpush3.bf16.msra.mxu1 %v2499_v27  ;;  %2326 = vmatmul.mubr.bf16.gmra.mxu0 %v1016_v13  ;;  %v2505_v13 = vld [vmem:[%s3055_s5 + $0x1e0] sm:$0xff]  }
  0x95   : > { %2379 = vmatprep.subr.bf16.mxu1 %v2501_v1  ;;  %2349 = vmatprep.mubr.bf16.mxu1 %v1165_v2 }
  0x96   : > { %2358 = vmatpush3.bf16.msra.mxu0 %v2502_v28  ;;  %2369 = vmatprep.mubr.bf16.mxu0 %v2742_v22  ;;  %v2508_v22 = vld [vmem:[%s3055_s5 + $0x190] sm:$0xff]  }
  0x97   : > { %2359 = vmatprep.subr.bf16.mxu0 %v2504_v3 }
  0x98   : > { %2380 = vmatpush3.bf16.msra.mxu1 %v2501_v1 }
  0x99   : > { %2381 = vmatprep.subr.bf16.mxu1 %v2503_v9 }
  0x9a   : > { %2360 = vmatpush3.bf16.msra.mxu0 %v2504_v3 }
  0x9b   : > { %2350 = vmatmul.mubr.bf16.gmra.mxu1 %v1166_v12  ;;  %2361 = vmatprep.subr.bf16.mxu0 %v2506_v5 }
  0x9c   : > { %2382 = vmatpush3.bf16.msra.mxu1 %v2503_v9  ;;  %2393 = vmatprep.mubr.bf16.mxu1 %v2709_v8  ;;  %v2512_v8 = vld [vmem:[%s3055_s5 + $0x180] sm:$0xff]  }
  0x9d   : > { %2383 = vmatprep.subr.bf16.mxu1 %v2505_v13 }
  0x9e   : > { %2362 = vmatpush3.bf16.msra.mxu0 %v2506_v5 }
  0x9f   : > { %2363 = vmatprep.subr.bf16.mxu0 %v2508_v22 }
  0xa0   : > { %2384 = vmatpush3.bf16.msra.mxu1 %v2505_v13 }
  0xa1   : > { %2385 = vmatprep.subr.bf16.mxu1 %v2507_v31 }
  0xa2   : > { %2364 = vmatpush3.bf16.msra.mxu0 %v2508_v22 }
  0xa3   : > { %2365 = vmatprep.subr.bf16.mxu0 %v2510_v32 }
  0xa4   : > { %2386 = vmatpush3.bf16.msra.mxu1 %v2507_v31 }
  0xa5   : > { %2387 = vmatprep.subr.bf16.mxu1 %v2509_v33 }
  0xa6   : > { %2366 = vmatpush3.bf16.msra.mxu0 %v2510_v32 }
  0xa7   : > { %2367 = vmatprep.subr.bf16.mxu0 %v2512_v8 }
  0xa8   : > { %2388 = vmatpush3.bf16.msra.mxu1 %v2509_v33 }
  0xa9   : > { %2389 = vmatprep.subr.bf16.mxu1 %v2511_v34 }
  0xaa   : > { %2368 = vmatpush3.bf16.msra.mxu0 %v2512_v8 }
  0xab   : > { %2401 = vmatprep.subr.bf16.mxu0 %v2514_v26 }
  0xac   : > { %2390 = vmatpush3.bf16.msra.mxu1 %v2511_v34 }
  0xad   : > { %2391 = vmatprep.subr.bf16.mxu1 %v2513_v36  ;;  %2370 = vmatmul.mubr.bf16.vlgmr.msra.gmra.mxu0 %v2758_v29  ;;  %v2517_v29 = vld [vmem:[%s3055_s5 + $0x220] sm:$0xff]  }
  0xae   : > { %2402 = vmatpush3.bf16.msra.mxu0 %v2514_v26  ;;  %2373 = vmatprep.mubr.bf16.mxu0 %v2777_v35  ;;  %v1463_v35 = vld [vmem:[#allocation2 + $0x91] sm:$0xff] }
  0xaf   : > { %2403 = vmatprep.subr.bf16.mxu0 %v2515_v37  ;;  %v1467_v41 = vpack.c.bf16 %v1463_v35, %v2701_v6  ;;  %v2520_v6 = vld [vmem:[%s3055_s5 + $0x208] sm:$0xff]  }
  0xb0   : > { %2392 = vmatpush3.bf16.msra.mxu1 %v2513_v36 }
  0xb1   : > { %2425 = vmatprep.subr.bf16.mxu1 %v2514_v26 }
  0xb2   : > { %2404 = vmatpush3.bf16.msra.mxu0 %v2515_v37 }
  0xb3   : > { %2394 = vmatmul.mubr.bf16.vlgmr.msra.gmra.mxu1 %v2720_v11  ;;  %2405 = vmatprep.subr.bf16.mxu0 %v2516_v39  ;;  %v2518_v11 = vld [vmem:[%s3055_s5 + $0x218] sm:$0xff]  }
  0xb4   : > { %2433 = vmatpush3.bf16.msra.mxu1 %v2514_v26  ;;  %2397 = vmatprep.mubr.bf16.mxu1 %v2739_v20  ;;  %v2519_v20 = vld [vmem:[%s3055_s5 + $0x210] sm:$0xff]  }
  0xb5   : > { %2426 = vmatprep.subr.bf16.mxu1 %v2515_v37  ;;  %2374 = vmatmul.mubr.bf16.gmra.mxu0 %v1317_v40 }
  0xb6   : > { %2406 = vmatpush3.bf16.msra.mxu0 %v2516_v39  ;;  %2417 = vmatprep.mubr.bf16.mxu0 %v2807_v46 }
  0xb7   : > { %2407 = vmatprep.subr.bf16.mxu0 %v2517_v29 }
  0xb8   : > { %2434 = vmatpush3.bf16.msra.mxu1 %v2515_v37 }
  0xb9   : > { %2427 = vmatprep.subr.bf16.mxu1 %v2516_v39 }
  0xba   : > { %2408 = vmatpush3.bf16.msra.mxu0 %v2517_v29 }
  0xbb   : > { %2398 = vmatmul.mubr.bf16.gmra.mxu1 %v1467_v41  ;;  %2409 = vmatprep.subr.bf16.mxu0 %v2518_v11 }
  0xbc   : > { %2435 = vmatpush3.bf16.msra.mxu1 %v2516_v39  ;;  %2421 = vmatprep.mubr.bf16.mxu1 %v2839_v57 }
  0xbd   : > { %2428 = vmatprep.subr.bf16.mxu1 %v2517_v29 }
  0xbe   : > { %2410 = vmatpush3.bf16.msra.mxu0 %v2518_v11 }
  0xbf   : > { %2411 = vmatprep.subr.bf16.mxu0 %v2519_v20 }
  0xc0   : > { %2436 = vmatpush3.bf16.msra.mxu1 %v2517_v29 }
  0xc1   : > { %2429 = vmatprep.subr.bf16.mxu1 %v2518_v11 }
  0xc2   : > { %2412 = vmatpush3.bf16.msra.mxu0 %v2519_v20 }
  0xc3   : > { %2413 = vmatprep.subr.bf16.mxu0 %v2520_v6 }
  0xc4   : > { %2437 = vmatpush3.bf16.msra.mxu1 %v2518_v11 }
  0xc5   : > { %2430 = vmatprep.subr.bf16.mxu1 %v2519_v20 }
  0xc6   : > { %2414 = vmatpush3.bf16.msra.mxu0 %v2520_v6 }
  0xc7   : > { %2415 = vmatprep.subr.bf16.mxu0 %v2521_v42 }
  0xc8   : > { %2438 = vmatpush3.bf16.msra.mxu1 %v2519_v20 }
  0xc9   : > { %2431 = vmatprep.subr.bf16.mxu1 %v2520_v6 }
  0xca   : > { %2416 = vmatpush3.bf16.msra.mxu0 %v2521_v42 }
  0xcc   : > { %2439 = vmatpush3.bf16.msra.mxu1 %v2520_v6 }
  0xcd   : > { %2432 = vmatprep.subr.bf16.mxu1 %v2521_v42  ;;  %2418 = vmatmul.mubr.bf16.vlgmr.msra.gmra.mxu0 %v2821_v51 }
  0xd0   : > { %2440 = vmatpush3.bf16.msra.mxu1 %v2521_v42 }
  0xd3   : > { %2422 = vmatmul.mubr.bf16.vlgmr.msra.gmra.mxu1 %v1617_v44 }
 0x10b   : > { %v2227_v45 = vpop.f32.mrf.mxu0 }
 0x10d   : > { %v561_v46 = vpop.f32.mrf.mxu0 }
 0x10f   : > { %v2228_v48 = vpop.f32.mrf.mxu0 }
 0x111   : > { %v564_v50 = vpop.f32.mrf.mxu0 }
 0x113   : > { %v2251_v47 = vpop.f32.mrf.mxu1  ;;  %v2231_v53 = vpop.f32.mrf.mxu0 }
 0x114   : > { %v683_v35 = vadd.f32 %v2251_v47, %v2227_v45 }
 0x115   : > { %v674_v49 = vpop.f32.mrf.mxu1  ;;  %v577_v55 = vpop.f32.mrf.mxu0 }
 0x116   : > { %v675_v11 = vadd.f32 %v674_v49, %v561_v46 }
 0x117   : > { %v2252_v52 = vpop.f32.mrf.mxu1  ;;  %v2988_v57 = vpop.f32.mrf.mxu0 }
 0x118   : > { %3060 = vst [vmem:[#allocation3_spill] sm:$0xff] %v2988_v57  ;;  %v686_v42 = vadd.f32 %v2252_v52, %v2228_v48 }
 0x119   : > { %v677_v54 = vpop.f32.mrf.mxu1  ;;  %v2990_v59 = vpop.f32.mrf.mxu0 }
 0x11a   : > { %3061 = vst [vmem:[#allocation4_spill] sm:$0xff] %v2990_v59 }
 0x11b   : > { %v2255_v56 = vpop.f32.mrf.mxu1 }
 0x11d   : > { %v690_v58 = vpop.f32.mrf.mxu1 }
 0x11f   : > { %v2992_v51 = vpop.f32.mrf.mxu1  ;;  %v3072_v47 = vld [vmem:[#allocation3_spill] sm:$0xff] }
 0x120   : > { %3062 = vst [vmem:[#allocation5_spill] sm:$0xff] %v2992_v51 }
 0x121   : > { %v2994_v61 = vpop.f32.mrf.mxu1 }
 0x122   : > { %3063 = vst [vmem:[#allocation6_spill] sm:$0xff] %v2994_v61 }
 0x127   : > { %v3073_v46 = vld [vmem:[#allocation5_spill] sm:$0xff] }
 0x128   : > { %v702_v49 = vadd.f32 %v3073_v46, %v3072_v47 }
 0x12b   : > { %v2275_v60 = vpop.f32.mrf.mxu0 }
 0x12c   : > { %v849_v20 = vadd.f32 %v2275_v60, %v683_v35 }
 0x12d   : > { %v816_v62 = vpop.f32.mrf.mxu0 }
 0x12e   : > { %v847_v43 = vadd.f32 %v816_v62, %v675_v11 }
 0x12f   : > { %v2276_v10 = vpop.f32.mrf.mxu0 }
 0x131   : > { %v819_v0 = vpop.f32.mrf.mxu0 }
 0x133   : > { %v2299_v7 = vpop.f32.mrf.mxu1  ;;  %v2279_v15 = vpop.f32.mrf.mxu0 }
 0x134   : > { %v999_v44 = vadd.f32 %v2299_v7, %v849_v20  ;;  %v3075_v7 = vld [vmem:[#allocation6_spill] sm:$0xff] }
 0x135   : > { %v966_v63 = vpop.f32.mrf.mxu1  ;;  %v832_v17 = vpop.f32.mrf.mxu0 }
 0x137   : > { %v2300_v14 = vpop.f32.mrf.mxu1  ;;  %v2280_v19 = vpop.f32.mrf.mxu0 }
 0x139   : > { %v969_v16 = vpop.f32.mrf.mxu1  ;;  %v2996_v23 = vpop.f32.mrf.mxu0 }
 0x13a   : > { %3064 = vst [vmem:[#allocation7_spill] sm:$0xff] %v2996_v23 }
 0x13b   : > { %v2303_v18 = vpop.f32.mrf.mxu1 }
 0x13d   : > { %v982_v21 = vpop.f32.mrf.mxu1 }
 0x13f   : > { %v2998_v24 = vpop.f32.mrf.mxu1 }
 0x140   : > { %3065 = vst [vmem:[#allocation8_spill] sm:$0xff] %v2998_v24  ;;  %v691_v24 = vadd.f32 %v690_v58, %v577_v55  ;;  %v854_v55 = vadd.f32 %v2280_v19, %v702_v49 }
 0x141   : > { %v3000_v27 = vpop.f32.mrf.mxu1 }
 0x142   : > { %3066 = vst [vmem:[#allocation9_spill] sm:$0xff] %v3000_v27  ;;  %v851_v48 = vadd.f32 %v832_v17, %v691_v24 }
 0x144   : > { %v1001_v58 = vadd.f32 %v982_v21, %v851_v48 }
 0x14c   : > { %v2323_v25 = vpop.f32.mrf.mxu0 }
 0x14d   : > { %v1149_v27 = vadd.f32 %v2323_v25, %v999_v44 }
 0x14e   : > { %v1116_v28 = vpop.f32.mrf.mxu0 }
 0x150   : > { %v2324_v1 = vpop.f32.mrf.mxu0 }
 0x152   : > { %v1119_v3 = vpop.f32.mrf.mxu0 }
 0x153   : > { %v2347_v30 = vpop.f32.mrf.mxu1 }
 0x154   : > { %v2327_v9 = vpop.f32.mrf.mxu0  ;;  %v1299_v45 = vadd.f32 %v2347_v30, %v1149_v27 }
 0x155   : > { %v1266_v2 = vpop.f32.mrf.mxu1 }
 0x156   : > { %v1132_v5 = vpop.f32.mrf.mxu0 }
 0x157   : > { %v2348_v4 = vpop.f32.mrf.mxu1 }
 0x158   : > { %v3002_v22 = vpop.f32.mrf.mxu0 }
 0x159   : > { %v1269_v12 = vpop.f32.mrf.mxu1  ;;  %3067 = vst [vmem:[#allocation10_spill] sm:$0xff] %v3002_v22  ;;  %v850_v22 = vadd.f32 %v2276_v10, %v686_v42 }
 0x15a   : > { %v3006_v32 = vpop.f32.mrf.mxu0 }
 0x15b   : > { %v2351_v13 = vpop.f32.mrf.mxu1  ;;  %3069 = vst [vmem:[#allocation12_spill] sm:$0xff] %v3006_v32  ;;  %v678_v32 = vadd.f32 %v677_v54, %v564_v50  ;;  %v1000_v59 = vadd.f32 %v2300_v14, %v850_v22 }
 0x15d   : > { %v3004_v31 = vpop.f32.mrf.mxu1  ;;  %v848_v23 = vadd.f32 %v819_v0, %v678_v32  ;;  %v1150_v50 = vadd.f32 %v2324_v1, %v1000_v59 }
 0x15e   : > { %3068 = vst [vmem:[#allocation11_spill] sm:$0xff] %v3004_v31  ;;  %v699_v31 = vadd.f32 %v2255_v56, %v2231_v53  ;;  %v3074_v56 = vld [vmem:[#allocation4_spill] sm:$0xff] }
 0x15f   : > { %v3008_v33 = vpop.f32.mrf.mxu1  ;;  %v998_v60 = vadd.f32 %v969_v16, %v848_v23  ;;  %v694_v10 = vadd.f32 %v3075_v7, %v3074_v56  ;;  %v1300_v14 = vadd.f32 %v2348_v4, %v1150_v50  ;;  %v3077_v16 = vld [vmem:[#allocation8_spill] sm:$0xff] }
 0x160   : > { %3070 = vst [vmem:[#allocation13_spill] sm:$0xff] %v3008_v33  ;;  %v853_v51 = vadd.f32 %v2279_v15, %v699_v31  ;;  %v1004_v17 = vadd.f32 %v3077_v16, %v854_v55  ;;  %v3079_v4 = vld [vmem:[#allocation10_spill] sm:$0xff] }
 0x161   : > { %v3010_v34 = vpop.f32.mrf.mxu1 }
 0x162   : > { %3071 = vst [vmem:[#allocation14_spill] sm:$0xff] %v3010_v34  ;;  %v997_v34 = vadd.f32 %v966_v63, %v847_v43  ;;  %v1003_v62 = vadd.f32 %v2303_v18, %v853_v51  ;;  %v1148_v63 = vadd.f32 %v1119_v3, %v998_v60  ;;  %v1151_v51 = vadd.f32 %v1132_v5, %v1001_v58  ;;  %v2096_v18 = vld [vmem:[%s3056_s6] ss:$0 sm:$0xff] }
 0x164   : > { %v1147_v57 = vadd.f32 %v1116_v28, %v997_v34  ;;  %v1153_v15 = vadd.f32 %v2327_v9, %v1003_v62  ;;  %v3076_v28 = vld [vmem:[#allocation7_spill] sm:$0xff]  ;;  %v1298_v23 = vadd.f32 %v1269_v12, %v1148_v63  ;;  %v1154_v9 = vadd.f32 %v3079_v4, %v1004_v17 }
 0x165   : > { %v852_v30 = vadd.f32 %v3076_v28, %v694_v10  ;;  %v3080_v22 = vld [vmem:[#allocation11_spill] sm:$0xff] }
 0x166   : > { %v1297_v54 = vadd.f32 %v1266_v2, %v1147_v57  ;;  %v1303_v19 = vadd.f32 %v2351_v13, %v1153_v15  ;;  %v3078_v2 = vld [vmem:[#allocation9_spill] sm:$0xff]  ;;  %v1301_v31 = vadd.f32 %v3080_v22, %v1151_v51 }
 0x167   : > { %v1002_v3 = vadd.f32 %v3078_v2, %v852_v30  ;;  %v3082_v11 = vld [vmem:[#allocation13_spill] sm:$0xff] }
 0x168   : > { %v1304_v13 = vadd.f32 %v3082_v11, %v1154_v9 }
 0x16d   : > { %v2371_v8 = vpop.f32.mrf.mxu0 }
 0x16e   : > { %v1450_v53 = vadd.f32 %v2371_v8, %v1299_v45 }
 0x16f   : > { %v1417_v26 = vpop.f32.mrf.mxu0 }
 0x170   : > { %v1448_v25 = vadd.f32 %v1417_v26, %v1297_v54 }
 0x171   : > { %v2372_v37 = vpop.f32.mrf.mxu0 }
 0x172   : > { %v1451_v21 = vadd.f32 %v2372_v37, %v1300_v14 }
 0x173   : > { %v2395_v36 = vpop.f32.mrf.mxu1  ;;  %v1420_v39 = vpop.f32.mrf.mxu0 }
 0x174   : > { %v1600_v27 = vadd.f32 %v2395_v36, %v1450_v53  ;;  %v1449_v32 = vadd.f32 %v1420_v39, %v1298_v23  ;;  %v3081_v36 = vld [vmem:[#allocation12_spill] sm:$0xff]  ;;  %v3083_v39 = vld [vmem:[#allocation14_spill] sm:$0xff] }
 0x175   : > { %v1567_v38 = vpop.f32.mrf.mxu1  ;;  %v2375_v29 = vpop.f32.mrf.mxu0  ;;  %v1152_v35 = vadd.f32 %v3081_v36, %v1002_v3  ;;  %v1779_v36 = vld [vmem:[%s3058_s8] sm:$0x1] }
 0x176   : > { %v1598_v24 = vadd.f32 %v1567_v38, %v1448_v25  ;;  %v1454_v8 = vadd.f32 %v2375_v29, %v1303_v19 }
 0x177   : > { %v2396_v40 = vpop.f32.mrf.mxu1  ;;  %v1433_v6 = vpop.f32.mrf.mxu0  ;;  %v1302_v47 = vadd.f32 %v3083_v39, %v1152_v35 }
 0x178   : > { %v1601_v5 = vadd.f32 %v2396_v40, %v1451_v21  ;;  %v1452_v37 = vadd.f32 %v1433_v6, %v1301_v31 }
 0x179   : > { %v1570_v41 = vpop.f32.mrf.mxu1  ;;  %v2376_v61 = vpop.f32.mrf.mxu0 }
 0x17a   : > { %v1599_v42 = vadd.f32 %v1570_v41, %v1449_v32  ;;  %v1455_v40 = vadd.f32 %v2376_v61, %v1304_v13 }
 0x17b   : > { %v2399_v33 = vpop.f32.mrf.mxu1  ;;  %v1436_v0 = vpop.f32.mrf.mxu0 }
 0x17c   : > { %v1604_v43 = vadd.f32 %v2399_v33, %v1454_v8  ;;  %v1453_v62 = vadd.f32 %v1436_v0, %v1302_v47 }
 0x17d   : > { %v1583_v52 = vpop.f32.mrf.mxu1 }
 0x17e   : > { %v1602_v49 = vadd.f32 %v1583_v52, %v1452_v37 }
 0x17f   : > { %v2400_v59 = vpop.f32.mrf.mxu1 }
 0x180   : > { %v1605_v33 = vadd.f32 %v2400_v59, %v1455_v40 }
 0x181   : > { %v1586_v38 = vpop.f32.mrf.mxu1 }
 0x182   : > { %v1603_v61 = vadd.f32 %v1586_v38, %v1453_v62  ;;  %v1795_v38 = vld [vmem:[%s3059_s9] sm:$0x1] }
 0x18d   : > { %v2419_v57 = vpop.f32.mrf.mxu0 }
 0x18e   : > { %v1750_v1 = vadd.f32 %v2419_v57, %v1600_v27 }
 0x18f   : > { %v1717_v12 = vpop.f32.mrf.mxu0 }
 0x190   : > { %v1765_v34 = vadd.f32 %v2096_v18, %v1750_v1  ;;  %v1748_v26 = vadd.f32 %v1717_v12, %v1598_v24 }
 0x191   : > { %v2420_v20 = vpop.f32.mrf.mxu0 }
 0x192   : > { %1773 = vst [vmem:[%s2599_s18 + $0x10] sm:$0xff] %v1765_v34  ;;  %v1763_v44 = vadd.f32 %v2096_v18, %v1748_v26  ;;  %v1751_v45 = vadd.f32 %v2420_v20, %v1601_v5  ;;  %v1798_v25 = vmul.f32 %v1765_v34, %v1765_v34 }
 0x193   : > { %v2423_v29 = vpop.f32.mrf.mxu1  ;;  %v1720_v46 = vpop.f32.mrf.mxu0 }
 0x194   : > { %v1754_v60 = vadd.f32 %v2423_v29, %v1604_v43  ;;  %1771 = vst [vmem:[%s2599_s18] sm:$0xff] %v1763_v44  ;;  %v1766_v48 = vadd.f32 %v2096_v18, %v1751_v45  ;;  %v1749_v6 = vadd.f32 %v1720_v46, %v1599_v42  ;;  %v1796_v55 = vmul.f32 %v1763_v44, %v1763_v44 }
 0x195   : > { %v1733_v50 = vpop.f32.mrf.mxu1 }
 0x196   : > { %v1769_v41 = vadd.f32 %v2096_v18, %v1754_v60  ;;  %v1752_v54 = vadd.f32 %v1733_v50, %v1602_v49  ;;  %1774 = vst [vmem:[%s2599_s18 + $0x18] sm:$0xff] %v1766_v48  ;;  %v1764_v53 = vadd.f32 %v2096_v18, %v1749_v6  ;;  %v1799_v16 = vmul.f32 %v1766_v48, %v1766_v48 }
 0x197   : > { %v2424_v56 = vpop.f32.mrf.mxu1 }
 0x198   : > { %1777 = vst [vmem:[%s2599_s18 + $0x30] sm:$0xff] %v1769_v41  ;;  %v1767_v7 = vadd.f32 %v2096_v18, %v1752_v54  ;;  %v1755_v10 = vadd.f32 %v2424_v56, %v1605_v33  ;;  %1772 = vst [vmem:[%s2599_s18 + $0x8] sm:$0xff] %v1764_v53  ;;  %v1780_v52 = vadd.f32 %v1764_v53, %v1763_v44 }
 0x199   : > { %v1797_v58 = vmul.f32 %v1764_v53, %v1764_v53  ;;  %v1736_v63 = vpop.f32.mrf.mxu1  ;;  %v1802_v1 = vmul.f32 %v1769_v41, %v1769_v41 }
 0x19a   : > { %1775 = vst [vmem:[%s2599_s18 + $0x20] sm:$0xff] %v1767_v7  ;;  %v1770_v0 = vadd.f32 %v2096_v18, %v1755_v10  ;;  %v1781_v14 = vadd.f32 %v1780_v52, %v1765_v34  ;;  %v1753_v15 = vadd.f32 %v1736_v63, %v1603_v61  ;;  %v1800_v51 = vmul.f32 %v1767_v7, %v1767_v7 }
 0x19b   : > { %v1804_v27 = vadd.f32 %v1797_v58, %v1796_v55 }
 0x19c   : > { %1778 = vst [vmem:[%s2599_s18 + $0x38] sm:$0xff] %v1770_v0  ;;  %v1768_v28 = vadd.f32 %v2096_v18, %v1753_v15  ;;  %v1782_v30 = vadd.f32 %v1781_v14, %v1766_v48  ;;  %v1803_v4 = vmul.f32 %v1770_v0, %v1770_v0 }
 0x19d   : > { %v1805_v17 = vadd.f32 %v1804_v27, %v1798_v25 }
 0x19e   : > { %1776 = vst [vmem:[%s2599_s18 + $0x28] sm:$0xff] %v1768_v28  ;;  %v1783_v23 = vadd.f32 %v1782_v30, %v1767_v7  ;;  %v1801_v59 = vmul.f32 %v1768_v28, %v1768_v28 }
 0x19f   : > { %v1806_v57 = vadd.f32 %v1805_v17, %v1799_v16 }
 0x1a0   : > { %v1784_v19 = vadd.f32 %v1783_v23, %v1768_v28 }
 0x1a1   : > { %v1807_v21 = vadd.f32 %v1806_v57, %v1800_v51 }
 0x1a2   : > { %v1785_v24 = vadd.f32 %v1784_v19, %v1769_v41 }
 0x1a3   : > { %v1808_v2 = vadd.f32 %v1807_v21, %v1801_v59 }
 0x1a4   : > { %v1786_v3 = vadd.f32 %v1785_v24, %v1770_v0 }
 0x1a5   : > { %v1809_v9 = vadd.f32 %v1808_v2, %v1802_v1 }
 0x1a6   : > { %v1787_v22 = vrot.slane %v1786_v3, 4 }
 0x1a7   : > { %v1810_v31 = vadd.f32 %v1809_v9, %v1803_v4 }
 0x1a8   : > { %v1788_v32 = vadd.f32 %v1787_v22, %v1786_v3 }
 0x1a9   : > { %v1811_v18 = vrot.slane %v1810_v31, 4 }
 0x1aa   : > { %v1789_v12 = vrot.slane %v1788_v32, 2 }
 0x1ab   : > { %v1812_v5 = vadd.f32 %v1811_v18, %v1810_v31 }
 0x1ac   : > { %v1790_v8 = vadd.f32 %v1789_v12, %v1788_v32 }
 0x1ad   : > { %v1813_v34 = vrot.slane %v1812_v5, 2 }
 0x1ae   : > { %v1791_v26 = vrot.slane %v1790_v8, 1 }
 0x1af   : > { %v1814_v35 = vadd.f32 %v1813_v34, %v1812_v5 }
 0x1b0   : > { %v1792_v11 = vadd.f32 %v1791_v26, %v1790_v8 }
 0x1b1   : > { %v1815_v13 = vrot.slane %v1814_v35, 1 }
 0x1b2   : > { %v1793_v37 = vadd.f32 %v1792_v11, %v1779_v36 }
 0x1b3   : > { %v1816_v20 = vadd.f32 %v1815_v13, %v1814_v35 }
 0x1b4   : > { %1794 = vst [vmem:[%s3058_s8] sm:$0x1] %v1793_v37 }
 0x1b5   : > { %v1817_v42 = vadd.f32 %v1816_v20, %v1795_v38 }
 0x1b7   : > { %1818 = vst [vmem:[%s3059_s9] sm:$0x1] %v1817_v42 }
 0x1b8 PF: > { %s20_s30 = sadd.s32 1, %s2530_s30  }
 0x1b9   : > { %p17_p5 = scmp.ge.s32.totalorder %s20_s30, 4  }
 0x1bb   :  { %19 = sbr.rel (!%p17_p5) target bundleno = 1 (0x1), region = 108 }

// kernel: residual_stack_forward.3
= control target key start
LH: loop header
LB: loop body
LE: loop exit
PB: predicated region body
PF: predicated region fallthrough
CT: control target
= control target key end

     0   :  { %s6657_s27 = smov 0   ;;  %s8451_s0 = inlined_call_operand.vmem [shape: f32[2,16,16,128], index: 0, kind: input, shape index: {}]   ;;  %s8452_s1 = inlined_call_operand.vmem [shape: bf16[9,128,128], index: 1, kind: input, shape index: {}]   ;;  %s8453_s2 = inlined_call_operand.vmem [shape: f32[1,128], index: 2, kind: input, shape index: {}]   ;;  %s8454_s3 = inlined_call_operand.vmem [shape: bf16[9,128,128], index: 3, kind: input, shape index: {}]   ;;  %s8455_s4 = inlined_call_operand.vmem [shape: f32[1,128], index: 4, kind: input, shape index: {}]   ;;  %s8456_s5 = inlined_call_operand.vmem [shape: f32[2,8,8,128], index: 5, kind: output, shape index: {0}]   ;;  %s8457_s6 = inlined_call_operand.vmem [shape: f32[2,8,8,128], index: 6, kind: output, shape index: {1}]   ;;  %s8458_s7 = inlined_call_operand.vmem [shape: f32[1,128], index: 7, kind: output, shape index: {2}]   ;;  %s8459_s8 = inlined_call_operand.vmem [shape: f32[1,128], index: 8, kind: output, shape index: {3}]  }
   0x1 LB: > { %s5041_s28 = sadd.s32 4294967295, %s6608_s27   ;;  %p5045_p0 = scmp.ge.s32.totalorder %s6608_s27, 1  ;;  %s6608_s27 = sphi %s6657_s27, %s19_s27  }
   0x2   : > { %p259_p1 = scmp.lt.s32.totalorder %s6608_s27, 3 }
   0x4   : > { %p260_p2 = pnand %p5045_p0, %p259_p1 }
   0x6   : > { %263 = sbr.rel (%p260_p2) target bundleno = 1010 (0x3f2), region = 40 }
   0xb   : > { %p298_p3 = scmp.lt.s32.totalorder %s5041_s28, 1  ;;  %p5052_p4 = scmp.ne.s32.totalorder %s5041_s28, 0 }
   0xd   : > { %s299_s29 = scalar_select %p298_p3, %s5041_s28, 1 }
   0xe   : > { %317 = sbr.rel (%p5052_p4) target bundleno = 84 (0x54), region = 44 }
   0xf   : > { %s5457_s30 = sshll.u32 %s299_s29, 8  ;;  %s5458_s9 = sshll.u32 %s299_s29, 6 }
  0x10   : > { %s6668_s12 = scalar_lea.vmem %s8451_s0, %s5457_s30  ;;  %s6673_s15 = scalar_lea.vmem %s8456_s5, %s5458_s9 }
  0x11   : > { %s6678_s18 = scalar_lea.vmem %s8457_s6, %s5458_s9 }
  0x13   : > { %v6610_v0 = vmov 0.0   ;;  %v6611_v1 = vmov -inf  }
  0x14   : > { %318 = vst [vmem:[#allocation2] sm:$0xff] %v6610_v0  ;;  %319 = vst [vmem:[#allocation2 + $0x8] sm:$0xff] %v6610_v0 }
  0x15   : > { %320 = vst [vmem:[#allocation2 + $0x10] sm:$0x3] %v6610_v0  ;;  %321 = vst [vmem:[#allocation2 + $0x18] sm:$0xff] %v6610_v0 }
  0x16   : > { %322 = vst [vmem:[#allocation2 + $0x20] sm:$0xff] %v6610_v0  ;;  %323 = vst [vmem:[#allocation2 + $0x28] sm:$0x3] %v6610_v0 }
  0x17   : > { %324 = vst [vmem:[#allocation2 + $0x30] sm:$0xff] %v6610_v0  ;;  %325 = vst [vmem:[#allocation2 + $0x38] sm:$0xff] %v6610_v0 }
  0x18   : > { %326 = vst [vmem:[#allocation2 + $0x40] sm:$0x3] %v6610_v0  ;;  %327 = vst [vmem:[#allocation2 + $0x48] sm:$0xff] %v6610_v0 }
  0x19   : > { %328 = vst [vmem:[#allocation2 + $0x50] sm:$0xff] %v6610_v0  ;;  %329 = vst [vmem:[#allocation2 + $0x58] sm:$0x3] %v6610_v0 }
  0x1a   : > { %330 = vst [vmem:[#allocation2 + $0x60] sm:$0xff] %v6610_v0  ;;  %331 = vst [vmem:[#allocation2 + $0x68] sm:$0xff] %v6610_v0 }
  0x1b   : > { %332 = vst [vmem:[#allocation2 + $0x70] sm:$0x3] %v6610_v0  ;;  %333 = vst [vmem:[#allocation2 + $0x78] sm:$0xff] %v6610_v0 }
  0x1c   : > { %334 = vst [vmem:[#allocation2 + $0x80] sm:$0xff] %v6610_v0  ;;  %335 = vst [vmem:[#allocation2 + $0x88] sm:$0x3] %v6610_v0 }
  0x1d   : > { %336 = vst [vmem:[#allocation2 + $0x90] sm:$0xff] %v6610_v0  ;;  %337 = vst [vmem:[#allocation2 + $0x98] sm:$0xff] %v6610_v0 }
  0x1e   : > { %338 = vst [vmem:[#allocation2 + $0xa0] sm:$0x3] %v6610_v0  ;;  %339 = vst [vmem:[#allocation2 + $0xa8] sm:$0xff] %v6610_v0 }
  0x1f   : > { %340 = vst [vmem:[#allocation2 + $0xb0] sm:$0xff] %v6610_v0  ;;  %341 = vst [vmem:[#allocation2 + $0xb8] sm:$0x3] %v6610_v0 }
  0x20   : > { %342 = vst [vmem:[#allocation2 + $0xc0] sm:$0xff] %v6610_v0  ;;  %343 = vst [vmem:[#allocation2 + $0xc8] sm:$0xff] %v6610_v0 }
  0x21   : > { %344 = vst [vmem:[#allocation2 + $0xd0] sm:$0x3] %v6610_v0  ;;  %345 = vst [vmem:[#allocation2 + $0xd8] sm:$0xff] %v6610_v0 }
  0x22   : > { %346 = vst [vmem:[#allocation2 + $0xe0] sm:$0xff] %v6610_v0  ;;  %347 = vst [vmem:[#allocation2 + $0xe8] sm:$0x3] %v6610_v0 }
  0x23   : > { %348 = vst [vmem:[#allocation2 + $0xf0] sm:$0xff] %v6610_v0  ;;  %349 = vst [vmem:[#allocation2 + $0xf8] sm:$0xff] %v6610_v0 }
  0x24   : > { %350 = vst [vmem:[#allocation2 + $0x100] sm:$0x3] %v6610_v0  ;;  %351 = vst [vmem:[#allocation2 + $0x108] sm:$0xff] %v6610_v0 }
  0x25   : > { %352 = vst [vmem:[#allocation2 + $0x110] sm:$0xff] %v6610_v0  ;;  %353 = vst [vmem:[#allocation2 + $0x118] sm:$0x3] %v6610_v0 }
  0x26   : > { %354 = vst [vmem:[#allocation2 + $0x120] sm:$0xff] %v6610_v0  ;;  %355 = vst [vmem:[#allocation2 + $0x128] sm:$0xff] %v6610_v0 }
  0x27   : > { %356 = vst [vmem:[#allocation2 + $0x130] sm:$0x3] %v6610_v0  ;;  %357 = vst [vmem:[#allocation2 + $0x138] sm:$0xff] %v6610_v0 }
  0x28   : > { %358 = vst [vmem:[#allocation2 + $0x140] sm:$0xff] %v6610_v0  ;;  %359 = vst [vmem:[#allocation2 + $0x148] sm:$0x3] %v6610_v0 }
  0x29   : > { %360 = vst [vmem:[#allocation2 + $0x150] sm:$0xff] %v6610_v0  ;;  %361 = vst [vmem:[#allocation2 + $0x158] sm:$0xff] %v6610_v0 }
  0x2a   : > { %362 = vst [vmem:[#allocation2 + $0x160] sm:$0x3] %v6610_v0  ;;  %363 = vst [vmem:[#allocation2 + $0x168] sm:$0xff] %v6610_v0 }
  0x2b   : > { %364 = vst [vmem:[#allocation2 + $0x170] sm:$0xff] %v6610_v0  ;;  %365 = vst [vmem:[#allocation2 + $0x178] sm:$0x3] %v6610_v0 }
  0x2c   : > { %366 = vst [vmem:[#allocation2 + $0x180] sm:$0xff] %v6610_v0  ;;  %367 = vst [vmem:[#allocation2 + $0x188] sm:$0xff] %v6610_v0 }
  0x2d   : > { %368 = vst [vmem:[#allocation2 + $0x190] sm:$0x3] %v6610_v0  ;;  %369 = vst [vmem:[#allocation2 + $0x198] sm:$0xff] %v6610_v0 }
  0x2e   : > { %370 = vst [vmem:[#allocation2 + $0x1a0] sm:$0xff] %v6610_v0  ;;  %371 = vst [vmem:[#allocation2 + $0x1a8] sm:$0x3] %v6610_v0 }
  0x2f   : > { %426 = vst [vmem:[#allocation4] sm:$0xff] %v6610_v0  ;;  %427 = vst [vmem:[#allocation4 + $0x8] sm:$0x3] %v6610_v0 }
  0x30   : > { %428 = vst [vmem:[#allocation4 + $0x10] sm:$0xff] %v6610_v0  ;;  %429 = vst [vmem:[#allocation4 + $0x18] sm:$0x3] %v6610_v0 }
  0x31   : > { %430 = vst [vmem:[#allocation4 + $0x20] sm:$0xff] %v6610_v0  ;;  %431 = vst [vmem:[#allocation4 + $0x28] sm:$0x3] %v6610_v0 }
  0x32   : > { %432 = vst [vmem:[#allocation4 + $0x30] sm:$0xff] %v6610_v0  ;;  %433 = vst [vmem:[#allocation4 + $0x38] sm:$0x3] %v6610_v0 }
  0x33   : > { %434 = vst [vmem:[#allocation4 + $0x40] sm:$0xff] %v6610_v0  ;;  %435 = vst [vmem:[#allocation4 + $0x48] sm:$0x3] %v6610_v0 }
  0x34   : > { %436 = vst [vmem:[#allocation4 + $0x50] sm:$0xff] %v6610_v0  ;;  %437 = vst [vmem:[#allocation4 + $0x58] sm:$0x3] %v6610_v0 }
  0x35   : > { %438 = vst [vmem:[#allocation4 + $0x60] sm:$0xff] %v6610_v0  ;;  %439 = vst [vmem:[#allocation4 + $0x68] sm:$0x3] %v6610_v0 }
  0x36   : > { %440 = vst [vmem:[#allocation4 + $0x70] sm:$0xff] %v6610_v0  ;;  %441 = vst [vmem:[#allocation4 + $0x78] sm:$0x3] %v6610_v0 }
  0x37   : > { %442 = vst [vmem:[#allocation4 + $0x80] sm:$0xff] %v6610_v0  ;;  %443 = vst [vmem:[#allocation4 + $0x88] sm:$0x3] %v6610_v0 }
  0x38   : > { %444 = vst [vmem:[#allocation4 + $0x90] sm:$0xff] %v6610_v0  ;;  %445 = vst [vmem:[#allocation4 + $0x98] sm:$0x3] %v6610_v0 }
  0x39   : > { %446 = vst [vmem:[%s8458_s7] sm:$0x1] %v6610_v0  ;;  %447 = vst [vmem:[%s8459_s8] sm:$0x1] %v6610_v0 }
  0x3a   : > { %372 = vst [vmem:[#allocation3] sm:$0xff] %v6611_v1  ;;  %373 = vst [vmem:[#allocation3 + $0x8] sm:$0xff] %v6611_v1 }
  0x3b   : > { %374 = vst [vmem:[#allocation3 + $0x10] sm:$0x3] %v6611_v1  ;;  %375 = vst [vmem:[#allocation3 + $0x18] sm:$0xff] %v6611_v1 }
  0x3c   : > { %376 = vst [vmem:[#allocation3 + $0x20] sm:$0xff] %v6611_v1  ;;  %377 = vst [vmem:[#allocation3 + $0x28] sm:$0x3] %v6611_v1 }
  0x3d   : > { %378 = vst [vmem:[#allocation3 + $0x30] sm:$0xff] %v6611_v1  ;;  %379 = vst [vmem:[#allocation3 + $0x38] sm:$0xff] %v6611_v1 }
  0x3e   : > { %380 = vst [vmem:[#allocation3 + $0x40] sm:$0x3] %v6611_v1  ;;  %381 = vst [vmem:[#allocation3 + $0x48] sm:$0xff] %v6611_v1 }
  0x3f   : > { %382 = vst [vmem:[#allocation3 + $0x50] sm:$0xff] %v6611_v1  ;;  %383 = vst [vmem:[#allocation3 + $0x58] sm:$0x3] %v6611_v1 }
  0x40   : > { %384 = vst [vmem:[#allocation3 + $0x60] sm:$0xff] %v6611_v1  ;;  %385 = vst [vmem:[#allocation3 + $0x68] sm:$0xff] %v6611_v1 }
  0x41   : > { %386 = vst [vmem:[#allocation3 + $0x70] sm:$0x3] %v6611_v1  ;;  %387 = vst [vmem:[#allocation3 + $0x78] sm:$0xff] %v6611_v1 }
  0x42   : > { %388 = vst [vmem:[#allocation3 + $0x80] sm:$0xff] %v6611_v1  ;;  %389 = vst [vmem:[#allocation3 + $0x88] sm:$0x3] %v6611_v1 }
  0x43   : > { %390 = vst [vmem:[#allocation3 + $0x90] sm:$0xff] %v6611_v1  ;;  %391 = vst [vmem:[#allocation3 + $0x98] sm:$0xff] %v6611_v1 }
  0x44   : > { %392 = vst [vmem:[#allocation3 + $0xa0] sm:$0x3] %v6611_v1  ;;  %393 = vst [vmem:[#allocation3 + $0xa8] sm:$0xff] %v6611_v1 }
  0x45   : > { %394 = vst [vmem:[#allocation3 + $0xb0] sm:$0xff] %v6611_v1  ;;  %395 = vst [vmem:[#allocation3 + $0xb8] sm:$0x3] %v6611_v1 }
  0x46   : > { %396 = vst [vmem:[#allocation3 + $0xc0] sm:$0xff] %v6611_v1  ;;  %397 = vst [vmem:[#allocation3 + $0xc8] sm:$0xff] %v6611_v1 }
  0x47   : > { %398 = vst [vmem:[#allocation3 + $0xd0] sm:$0x3] %v6611_v1  ;;  %399 = vst [vmem:[#allocation3 + $0xd8] sm:$0xff] %v6611_v1 }
  0x48   : > { %400 = vst [vmem:[#allocation3 + $0xe0] sm:$0xff] %v6611_v1  ;;  %401 = vst [vmem:[#allocation3 + $0xe8] sm:$0x3] %v6611_v1 }
  0x49   : > { %402 = vst [vmem:[#allocation3 + $0xf0] sm:$0xff] %v6611_v1  ;;  %403 = vst [vmem:[#allocation3 + $0xf8] sm:$0xff] %v6611_v1 }
  0x4a   : > { %404 = vst [vmem:[#allocation3 + $0x100] sm:$0x3] %v6611_v1  ;;  %405 = vst [vmem:[#allocation3 + $0x108] sm:$0xff] %v6611_v1 }
  0x4b   : > { %406 = vst [vmem:[#allocation3 + $0x110] sm:$0xff] %v6611_v1  ;;  %407 = vst [vmem:[#allocation3 + $0x118] sm:$0x3] %v6611_v1 }
  0x4c   : > { %408 = vst [vmem:[#allocation3 + $0x120] sm:$0xff] %v6611_v1  ;;  %409 = vst [vmem:[#allocation3 + $0x128] sm:$0xff] %v6611_v1 }
  0x4d   : > { %410 = vst [vmem:[#allocation3 + $0x130] sm:$0x3] %v6611_v1  ;;  %411 = vst [vmem:[#allocation3 + $0x138] sm:$0xff] %v6611_v1 }
  0x4e   : > { %412 = vst [vmem:[#allocation3 + $0x140] sm:$0xff] %v6611_v1  ;;  %413 = vst [vmem:[#allocation3 + $0x148] sm:$0x3] %v6611_v1 }
  0x4f   : > { %414 = vst [vmem:[#allocation3 + $0x150] sm:$0xff] %v6611_v1  ;;  %415 = vst [vmem:[#allocation3 + $0x158] sm:$0xff] %v6611_v1 }
  0x50   : > { %416 = vst [vmem:[#allocation3 + $0x160] sm:$0x3] %v6611_v1  ;;  %417 = vst [vmem:[#allocation3 + $0x168] sm:$0xff] %v6611_v1 }
  0x51   : > { %418 = vst [vmem:[#allocation3 + $0x170] sm:$0xff] %v6611_v1  ;;  %419 = vst [vmem:[#allocation3 + $0x178] sm:$0x3] %v6611_v1 }
  0x52   : > { %420 = vst [vmem:[#allocation3 + $0x180] sm:$0xff] %v6611_v1  ;;  %421 = vst [vmem:[#allocation3 + $0x188] sm:$0xff] %v6611_v1 }
  0x53   : > { %422 = vst [vmem:[#allocation3 + $0x190] sm:$0x3] %v6611_v1 }
  0x54 PF: > { %v6458_v2 = vld [vmem:[%s8452_s1 + $0x78] sm:$0xff]   ;;  %v6460_v4 = vld [vmem:[%s8452_s1 + $0x70] sm:$0xff]   ;;  %v6462_v6 = vld [vmem:[%s8452_s1 + $0x68] sm:$0xff]  }
  0x55   : > { %v6459_v3 = vld [vmem:[%s8452_s1 + $0x38] sm:$0xff]   ;;  %5784 = vmatprep.subr.bf16.mxu0 %v6458_v2  ;;  %v6461_v5 = vld [vmem:[%s8452_s1 + $0x30] sm:$0xff]   ;;  %v6463_v7 = vld [vmem:[%s8452_s1 + $0x28] sm:$0xff]  }
  0x56   : > { %5832 = vmatprep.subr.bf16.mxu1 %v6459_v3  ;;  %5785 = vmatpush3.bf16.msra.mxu0 %v6458_v2  ;;  %v6464_v8 = vld [vmem:[%s8452_s1 + $0x60] sm:$0xff]   ;;  %v6466_v10 = vld [vmem:[%s8452_s1 + $0x58] sm:$0xff]   ;;  %v6468_v12 = vld [vmem:[%s8452_s1 + $0x50] sm:$0xff]  }
  0x57   : > { %5833 = vmatpush3.bf16.msra.mxu1 %v6459_v3  ;;  %5786 = vmatprep.subr.bf16.mxu0 %v6460_v4  ;;  %v6465_v9 = vld [vmem:[%s8452_s1 + $0x20] sm:$0xff]   ;;  %v6467_v11 = vld [vmem:[%s8452_s1 + $0x18] sm:$0xff]   ;;  %v6469_v13 = vld [vmem:[%s8452_s1 + $0x10] sm:$0xff]  }
  0x58   : > { %5834 = vmatprep.subr.bf16.mxu1 %v6461_v5  ;;  %v577_v14 = vld [vmem:[#allocation2 + $0x1] sm:$0xff]  ;;  %v578_v15 = vld [vmem:[#allocation2 + $0x9] sm:$0xff]  ;;  %v451_v24 = vld [vmem:[%s6668_s12 + $0x18] sm:$0xff] }
  0x59   : > { %v513_v16 = vld [vmem:[#allocation2] sm:$0xff]  ;;  %v609_v17 = vpack.c.bf16 %v578_v15, %v577_v14  ;;  %v514_v18 = vld [vmem:[#allocation2 + $0x8] sm:$0xff]  ;;  %v450_v23 = vld [vmem:[%s6668_s12 + $0x10] sm:$0xff]  ;;  %484 = vst [vmem:[#allocation2 + $0x39] sm:$0xff] %v451_v24 }
  0x5a   : > { %5787 = vmatpush3.bf16.msra.mxu0 %v6460_v4  ;;  %v448_v19 = vld [vmem:[%s6668_s12] sm:$0xff]  ;;  %v449_v20 = vld [vmem:[%s6668_s12 + $0x8] sm:$0xff]  ;;  %v545_v22 = vpack.c.bf16 %v514_v18, %v513_v16  ;;  %483 = vst [vmem:[#allocation2 + $0x31] sm:$0xff] %v450_v23  ;;  %v6817_v28 = vld [vmem:[%s6668_s12 + $0x30] sm:$0xff]  ;;  %v6877_v49 = vpack.c.bf16 %v451_v24, %v450_v23 }
  0x5b   : > { %5835 = vmatpush3.bf16.msra.mxu1 %v6461_v5  ;;  %5788 = vmatprep.subr.bf16.mxu0 %v6462_v6  ;;  %v6470_v21 = vld [vmem:[%s8452_s1 + $0x48] sm:$0xff]   ;;  %481 = vst [vmem:[#allocation2 + $0x19] sm:$0xff] %v448_v19  ;;  %482 = vst [vmem:[#allocation2 + $0x21] sm:$0xff] %v449_v20  ;;  %v6806_v25 = vld [vmem:[%s6668_s12 + $0x20] sm:$0xff]  ;;  %v6872_v47 = vpack.c.bf16 %v449_v20, %v448_v19 }
  0x5c   : > { %5836 = vmatprep.subr.bf16.mxu1 %v6463_v7  ;;  %5800 = vmatprep.mubr.bf16.mxu0 %v609_v17  ;;  %v6809_v26 = vld [vmem:[%s6668_s12 + $0x28] sm:$0xff]  ;;  %485 = vst [vmem:[#allocation2 + $0x49] sm:$0xff] %v6806_v25  ;;  %v6820_v29 = vld [vmem:[%s6668_s12 + $0x38] sm:$0xff]  ;;  %487 = vst [vmem:[#allocation2 + $0x61] sm:$0xff] %v6817_v28 }
  0x5d   : > { %v6471_v27 = vld [vmem:[%s8452_s1 + $0x8] sm:$0xff]   ;;  %5848 = vmatprep.mubr.bf16.mxu1 %v545_v22  ;;  %486 = vst [vmem:[#allocation2 + $0x51] sm:$0xff] %v6809_v26  ;;  %488 = vst [vmem:[#allocation2 + $0x69] sm:$0xff] %v6820_v29  ;;  %v6825_v30 = vld [vmem:[%s6668_s12 + $0x40] sm:$0xff]  ;;  %v6914_v63 = vpack.c.bf16 %v6809_v26, %v6806_v25  ;;  %v6921_v1 = vpack.c.bf16 %v6820_v29, %v6817_v28 }
  0x5e   : > { %5789 = vmatpush3.bf16.msra.mxu0 %v6462_v6  ;;  %v6828_v31 = vld [vmem:[%s6668_s12 + $0x48] sm:$0xff]  ;;  %v6472_v32 = vld [vmem:[%s8452_s1 + $0x40] sm:$0xff]   ;;  %489 = vst [vmem:[#allocation2 + $0x79] sm:$0xff] %v6825_v30  ;;  %v6836_v33 = vld [vmem:[%s6668_s12 + $0x50] sm:$0xff] }
  0x5f   : > { %5837 = vmatpush3.bf16.msra.mxu1 %v6463_v7  ;;  %5790 = vmatprep.subr.bf16.mxu0 %v6464_v8  ;;  %490 = vst [vmem:[#allocation2 + $0x81] sm:$0xff] %v6828_v31  ;;  %v6839_v34 = vld [vmem:[%s6668_s12 + $0x58] sm:$0xff]  ;;  %491 = vst [vmem:[#allocation2 + $0x91] sm:$0xff] %v6836_v33  ;;  %v6843_v35 = vld [vmem:[%s6668_s12 + $0x60] sm:$0xff]  ;;  %v6959_v15 = vpack.c.bf16 %v6828_v31, %v6825_v30 }
  0x60   : > { %5838 = vmatprep.subr.bf16.mxu1 %v6465_v9  ;;  %v6846_v36 = vld [vmem:[%s6668_s12 + $0x68] sm:$0xff]  ;;  %v6473_v37 = vld [vmem:[%s8452_s1] sm:$0xff]   ;;  %492 = vst [vmem:[#allocation2 + $0x99] sm:$0xff] %v6839_v34  ;;  %493 = vst [vmem:[#allocation2 + $0xa9] sm:$0xff] %v6843_v35  ;;  %v6971_v19 = vpack.c.bf16 %v6839_v34, %v6836_v33 }
  0x61   : > { %494 = vst [vmem:[#allocation2 + $0xb1] sm:$0xff] %v6846_v36  ;;  %v6855_v38 = vld [vmem:[%s6668_s12 + $0x70] sm:$0xff]  ;;  %v6474_v40 = vld [vmem:[%s8452_s1 + $0xb8] sm:$0xff]   ;;  %v6865_v43 = vld [vmem:[%s6668_s12 + $0x80] sm:$0xff]  ;;  %v7003_v31 = vpack.c.bf16 %v6846_v36, %v6843_v35 }
  0x62   : > { %5791 = vmatpush3.bf16.msra.mxu0 %v6464_v8  ;;  %v515_v39 = vld [vmem:[#allocation2 + $0x18] sm:$0xff]  ;;  %495 = vst [vmem:[#allocation2 + $0xc1] sm:$0xff] %v6855_v38  ;;  %v516_v41 = vld [vmem:[#allocation2 + $0x20] sm:$0xff]  ;;  %v517_v44 = vld [vmem:[#allocation2 + $0x30] sm:$0xff] }
  0x63   : > { %5839 = vmatpush3.bf16.msra.mxu1 %v6465_v9  ;;  %5792 = vmatprep.subr.bf16.mxu0 %v6466_v10  ;;  %v6862_v42 = vld [vmem:[%s6668_s12 + $0x78] sm:$0xff]  ;;  %v6869_v46 = vld [vmem:[%s6668_s12 + $0x88] sm:$0xff]  ;;  %497 = vst [vmem:[#allocation2 + $0xd9] sm:$0xff] %v6865_v43  ;;  %v6875_v48 = vpack.c.bf16 %v516_v41, %v515_v39  ;;  %v6475_v51 = vld [vmem:[%s8452_s1 + $0xb0] sm:$0xff]  }
  0x64   : > { %5840 = vmatprep.subr.bf16.mxu1 %v6467_v11  ;;  %v518_v45 = vld [vmem:[#allocation2 + $0x38] sm:$0xff]  ;;  %496 = vst [vmem:[#allocation2 + $0xc9] sm:$0xff] %v6862_v42  ;;  %498 = vst [vmem:[#allocation2 + $0xe1] sm:$0xff] %v6869_v46  ;;  %v519_v53 = vld [vmem:[#allocation2 + $0x48] sm:$0xff]  ;;  %v7009_v33 = vpack.c.bf16 %v6862_v42, %v6855_v38 }
  0x65   : > { %v6879_v50 = vpack.c.bf16 %v518_v45, %v517_v44  ;;  %v6479_v52 = vld [vmem:[%s8452_s1 + $0xf8] sm:$0xff]   ;;  %v6476_v54 = vld [vmem:[%s8452_s1 + $0xa8] sm:$0xff]   ;;  %v6480_v55 = vld [vmem:[%s8452_s1 + $0xf0] sm:$0xff]   ;;  %v7033_v44 = vpack.c.bf16 %v6869_v46, %v6865_v43 }
  0x66   : > { %5793 = vmatpush3.bf16.msra.mxu0 %v6466_v10  ;;  %v6896_v56 = vld [vmem:[%s6668_s12 + $0x90] sm:$0xff]  ;;  %v6899_v57 = vld [vmem:[%s6668_s12 + $0x98] sm:$0xff]  ;;  %v521_v59 = vld [vmem:[#allocation2 + $0x60] sm:$0xff] }
  0x67   : > { %5841 = vmatpush3.bf16.msra.mxu1 %v6467_v11  ;;  %5794 = vmatprep.subr.bf16.mxu0 %v6468_v12  ;;  %v520_v58 = vld [vmem:[#allocation2 + $0x50] sm:$0xff]  ;;  %499 = vst [vmem:[#allocation2 + $0xf1] sm:$0xff] %v6896_v56  ;;  %500 = vst [vmem:[#allocation2 + $0xf9] sm:$0xff] %v6899_v57  ;;  %v6906_v60 = vld [vmem:[%s6668_s12 + $0xa0] sm:$0xff] }
  0x68   : > { %5842 = vmatprep.subr.bf16.mxu1 %v6469_v13  ;;  %v522_v61 = vld [vmem:[#allocation2 + $0x68] sm:$0xff]  ;;  %501 = vst [vmem:[#allocation2 + $0x109] sm:$0xff] %v6906_v60  ;;  %v6917_v0 = vpack.c.bf16 %v520_v58, %v519_v53  ;;  %v6477_v2 = vld [vmem:[%s8452_s1 + $0xa0] sm:$0xff]   ;;  %v6932_v5 = vld [vmem:[%s6668_s12 + $0xb0] sm:$0xff] }
  0x69   : > { %v6909_v62 = vld [vmem:[%s6668_s12 + $0xa8] sm:$0xff]  ;;  %v6926_v3 = vpack.c.bf16 %v522_v61, %v521_v59  ;;  %v6935_v6 = vld [vmem:[%s6668_s12 + $0xb8] sm:$0xff]  ;;  %503 = vst [vmem:[#allocation2 + $0x121] sm:$0xff] %v6932_v5  ;;  %v6939_v7 = vld [vmem:[%s6668_s12 + $0xc0] sm:$0xff] }
  0x6a   : > { %5795 = vmatpush3.bf16.msra.mxu0 %v6468_v12  ;;  %502 = vst [vmem:[#allocation2 + $0x111] sm:$0xff] %v6909_v62  ;;  %v6482_v4 = vld [vmem:[%s8452_s1 + $0xe8] sm:$0xff]   ;;  %v523_v9 = vld [vmem:[#allocation2 + $0x78] sm:$0xff]  ;;  %504 = vst [vmem:[#allocation2 + $0x129] sm:$0xff] %v6935_v6  ;;  %v7062_v58 = vpack.c.bf16 %v6935_v6, %v6932_v5 }
  0x6b   : > { %5843 = vmatpush3.bf16.msra.mxu1 %v6469_v13  ;;  %5796 = vmatprep.subr.bf16.mxu0 %v6470_v21  ;;  %v6942_v8 = vld [vmem:[%s6668_s12 + $0xc8] sm:$0xff]  ;;  %505 = vst [vmem:[#allocation2 + $0x139] sm:$0xff] %v6939_v7  ;;  %v524_v10 = vld [vmem:[#allocation2 + $0x80] sm:$0xff]  ;;  %v525_v12 = vld [vmem:[#allocation2 + $0x90] sm:$0xff] }
  0x6c   : > { %5844 = vmatprep.subr.bf16.mxu1 %v6471_v27  ;;  %506 = vst [vmem:[#allocation2 + $0x141] sm:$0xff] %v6942_v8  ;;  %v6483_v11 = vld [vmem:[%s8452_s1 + $0xe0] sm:$0xff]   ;;  %v6478_v13 = vld [vmem:[%s8452_s1 + $0x98] sm:$0xff]   ;;  %v6962_v16 = vld [vmem:[%s6668_s12 + $0xd0] sm:$0xff]  ;;  %v6967_v18 = vpack.c.bf16 %v524_v10, %v523_v9 }
  0x6d   : > { %v526_v14 = vld [vmem:[#allocation2 + $0x98] sm:$0xff]  ;;  %507 = vst [vmem:[#allocation2 + $0x151] sm:$0xff] %v6962_v16  ;;  %v6976_v20 = vld [vmem:[%s6668_s12 + $0xe0] sm:$0xff]  ;;  %v6481_v23 = vld [vmem:[%s8452_s1 + $0x90] sm:$0xff]  }
  0x6e   : > { %5797 = vmatpush3.bf16.msra.mxu0 %v6470_v21  ;;  %v6965_v17 = vld [vmem:[%s6668_s12 + $0xd8] sm:$0xff]  ;;  %v6979_v21 = vld [vmem:[%s6668_s12 + $0xe8] sm:$0xff]  ;;  %v6981_v22 = vpack.c.bf16 %v526_v14, %v525_v12  ;;  %509 = vst [vmem:[#allocation2 + $0x169] sm:$0xff] %v6976_v20  ;;  %v6486_v26 = vld [vmem:[%s8452_s1 + $0xd0] sm:$0xff]  }
  0x6f   : > { %5845 = vmatpush3.bf16.msra.mxu1 %v6471_v27  ;;  %5798 = vmatprep.subr.bf16.mxu0 %v6472_v32  ;;  %508 = vst [vmem:[#allocation2 + $0x159] sm:$0xff] %v6965_v17  ;;  %510 = vst [vmem:[#allocation2 + $0x171] sm:$0xff] %v6979_v21  ;;  %v6485_v24 = vld [vmem:[%s8452_s1 + $0xd8] sm:$0xff]   ;;  %v527_v25 = vld [vmem:[#allocation2 + $0xa8] sm:$0xff]  ;;  %v7080_v10 = vpack.c.bf16 %v6965_v17, %v6962_v16  ;;  %v7092_v16 = vpack.c.bf16 %v6979_v21, %v6976_v20 }
  0x70   : > { %5846 = vmatprep.subr.bf16.mxu1 %v6473_v37  ;;  %v528_v27 = vld [vmem:[#allocation2 + $0xb0] sm:$0xff]  ;;  %v529_v28 = vld [vmem:[#allocation2 + $0xc0] sm:$0xff]  ;;  %v530_v29 = vld [vmem:[#allocation2 + $0xc8] sm:$0xff] }
  0x71   : > { %v6484_v30 = vld [vmem:[%s8452_s1 + $0x88] sm:$0xff]   ;;  %v7011_v34 = vpack.c.bf16 %v530_v29, %v529_v28  ;;  %v6489_v36 = vld [vmem:[%s8452_s1 + $0xc0] sm:$0xff]   ;;  %v531_v38 = vld [vmem:[#allocation2 + $0xd8] sm:$0xff] }
  0x72   : > { %5799 = vmatpush3.bf16.msra.mxu0 %v6472_v32  ;;  %v7005_v32 = vpack.c.bf16 %v528_v27, %v527_v25  ;;  %v6488_v35 = vld [vmem:[%s8452_s1 + $0xc8] sm:$0xff]   ;;  %v532_v39 = vld [vmem:[#allocation2 + $0xe0] sm:$0xff]  ;;  %v534_v41 = vld [vmem:[#allocation2 + $0xf8] sm:$0xff] }
  0x73   : > { %5847 = vmatpush3.bf16.msra.mxu1 %v6473_v37  ;;  %5880 = vmatprep.subr.bf16.mxu0 %v6474_v40  ;;  %v6487_v37 = vld [vmem:[%s8452_s1 + $0x80] sm:$0xff]   ;;  %v7029_v42 = vld [vmem:[%s8452_s1 + $0x138] sm:$0xff]   ;;  %v7035_v45 = vpack.c.bf16 %v532_v39, %v531_v38  ;;  %v535_v43 = vld [vmem:[#allocation2 + $0x108] sm:$0xff] }
  0x74   : > { %5928 = vmatprep.subr.bf16.mxu1 %v6479_v52  ;;  %v7047_v53 = vld [vmem:[%s8452_s1 + $0x178] sm:$0xff]   ;;  %v536_v46 = vld [vmem:[#allocation2 + $0x110] sm:$0xff]  ;;  %v1060_v12 = vld [vmem:[#allocation2 + $0x2] sm:$0xff] }
  0x75   : > { %5801 = vmatmul.mubr.bf16.vlgmr.msra.gmra.mxu0 %v6872_v47  ;;  %v539_v61 = vld [vmem:[#allocation2 + $0x138] sm:$0xff]  ;;  %v478_v5 = vld [vmem:[%s6668_s12 + $0xf0] sm:$0xff]  ;;  %v1063_v25 = vld [vmem:[#allocation2 + $0x22] sm:$0xff] }
  0x76   : > { %5849 = vmatmul.mubr.bf16.vlgmr.msra.gmra.mxu1 %v6875_v48  ;;  %5881 = vmatpush3.bf16.msra.mxu0 %v6474_v40  ;;  %v533_v40 = vld [vmem:[#allocation2 + $0xf0] sm:$0xff]  ;;  %v479_v6 = vld [vmem:[%s6668_s12 + $0xf8] sm:$0xff]  ;;  %511 = vst [vmem:[#allocation2 + $0x181] sm:$0xff] %v478_v5  ;;  %v6498_v38 = vld [vmem:[%s8452_s1 + $0x168] sm:$0xff]  }
  0x77   : > { %5804 = vmatprep.mubr.bf16.mxu0 %v6877_v49  ;;  %5852 = vmatprep.mubr.bf16.mxu1 %v6879_v50  ;;  %512 = vst [vmem:[#allocation2 + $0x189] sm:$0xff] %v479_v6  ;;  %v544_v14 = vld [vmem:[#allocation2 + $0x170] sm:$0xff]  ;;  %v1065_v27 = vld [vmem:[#allocation2 + $0x3a] sm:$0xff] }
  0x78   : > { %5882 = vmatprep.subr.bf16.mxu0 %v6475_v51  ;;  %5929 = vmatpush3.bf16.msra.mxu1 %v6479_v52  ;;  %v7041_v52 = vpack.c.bf16 %v534_v41, %v533_v40  ;;  %v6491_v20 = vld [vmem:[%s8452_s1 + $0x130] sm:$0xff]   ;;  %v1070_v40 = vld [vmem:[#allocation2 + $0x7a] sm:$0xff]  ;;  %v1071_v41 = vld [vmem:[#allocation2 + $0x82] sm:$0xff] }
  0x79   : > { %5930 = vmatprep.subr.bf16.mxu1 %v6480_v55  ;;  %v1066_v21 = vld [vmem:[#allocation2 + $0x4a] sm:$0xff] }
  0x7a   : > { %5883 = vmatpush3.bf16.msra.mxu0 %v6475_v51  ;;  %v7039_v51 = vpack.c.bf16 %v6899_v57, %v6896_v56  ;;  %v7056_v56 = vpack.c.bf16 %v6909_v62, %v6906_v60  ;;  %v7058_v57 = vpack.c.bf16 %v536_v46, %v535_v43  ;;  %v541_v60 = vld [vmem:[#allocation2 + $0x150] sm:$0xff]  ;;  %v542_v62 = vld [vmem:[#allocation2 + $0x158] sm:$0xff]  ;;  %v6499_v43 = vld [vmem:[%s8452_s1 + $0x160] sm:$0xff]  }
  0x7b   : > { %5884 = vmatprep.subr.bf16.mxu0 %v6476_v54  ;;  %v6494_v46 = vld [vmem:[%s8452_s1 + $0x118] sm:$0xff]  }
  0x7c   : > { %5931 = vmatpush3.bf16.msra.mxu1 %v6480_v55  ;;  %v538_v55 = vld [vmem:[#allocation2 + $0x128] sm:$0xff] }
  0x7d   : > { %5805 = vmatmul.mubr.bf16.gmra.mxu0 %v6914_v63  ;;  %5932 = vmatprep.subr.bf16.mxu1 %v6482_v4 }
  0x7e   : > { %5853 = vmatmul.mubr.bf16.gmra.mxu1 %v6917_v0  ;;  %5808 = vmatprep.mubr.bf16.mxu0 %v6921_v1 }
  0x7f   : > { %5856 = vmatprep.mubr.bf16.mxu1 %v6926_v3  ;;  %5885 = vmatpush3.bf16.msra.mxu0 %v6476_v54  ;;  %v537_v54 = vld [vmem:[#allocation2 + $0x120] sm:$0xff] }
  0x80   : > { %5886 = vmatprep.subr.bf16.mxu0 %v6477_v2  ;;  %5933 = vmatpush3.bf16.msra.mxu1 %v6482_v4  ;;  %v7064_v59 = vpack.c.bf16 %v538_v55, %v537_v54  ;;  %v7072_v4 = vpack.c.bf16 %v6942_v8, %v6939_v7  ;;  %v543_v7 = vld [vmem:[#allocation2 + $0x168] sm:$0xff]  ;;  %v7087_v8 = vpack.c.bf16 %v479_v6, %v478_v5  ;;  %v6501_v54 = vld [vmem:[%s8452_s1 + $0x158] sm:$0xff]   ;;  %v6502_v5 = vld [vmem:[%s8452_s1 + $0x150] sm:$0xff]  }
  0x81   : > { %5934 = vmatprep.subr.bf16.mxu1 %v6483_v11  ;;  %v7094_v17 = vpack.c.bf16 %v544_v14, %v543_v7  ;;  %v7141_v55 = vpack.c.bf16 %v1071_v41, %v1070_v40  ;;  %v6500_v6 = vld [vmem:[%s8452_s1 + $0x108] sm:$0xff]   ;;  %v1088_v40 = vld [vmem:[#allocation2 + $0x152] sm:$0xff] }
  0x82   : > { %v1079_v14 = vld [vmem:[#allocation2 + $0xe2] sm:$0xff] }
  0x83   : > { %5887 = vmatpush3.bf16.msra.mxu0 %v6477_v2  ;;  %v540_v2 = vld [vmem:[#allocation2 + $0x140] sm:$0xff] }
  0x84   : > { %5888 = vmatprep.subr.bf16.mxu0 %v6478_v13  ;;  %5935 = vmatpush3.bf16.msra.mxu1 %v6483_v11  ;;  %v7076_v9 = vpack.c.bf16 %v540_v2, %v539_v61  ;;  %v7082_v11 = vpack.c.bf16 %v542_v62, %v541_v60  ;;  %v1075_v2 = vld [vmem:[#allocation2 + $0xb2] sm:$0xff]  ;;  %v1076_v60 = vld [vmem:[#allocation2 + $0xc2] sm:$0xff]  ;;  %v1077_v62 = vld [vmem:[#allocation2 + $0xca] sm:$0xff] }
  0x85   : > { %5809 = vmatmul.mubr.bf16.gmra.mxu0 %v6959_v15  ;;  %5936 = vmatprep.subr.bf16.mxu1 %v6485_v24  ;;  %v7163_v7 = vpack.c.bf16 %v1077_v62, %v1076_v60  ;;  %v2289_v60 = vld [vmem:[#allocation2 + $0x60] sm:$0xff]  ;;  %v2290_v62 = vld [vmem:[#allocation2 + $0x68] sm:$0xff] }
  0x86   : > { %5857 = vmatmul.mubr.bf16.gmra.mxu1 %v6967_v18  ;;  %5812 = vmatprep.mubr.bf16.mxu0 %v6971_v19 }
  0x87   : > { %5860 = vmatprep.mubr.bf16.mxu1 %v6981_v22  ;;  %5889 = vmatpush3.bf16.msra.mxu0 %v6478_v13  ;;  %v1061_v13 = vld [vmem:[#allocation2 + $0xa] sm:$0xff] }
  0x88   : > { %5890 = vmatprep.subr.bf16.mxu0 %v6481_v23  ;;  %5937 = vmatpush3.bf16.msra.mxu1 %v6485_v24  ;;  %v1062_v24 = vld [vmem:[#allocation2 + $0x1a] sm:$0xff] }
  0x89   : > { %5938 = vmatprep.subr.bf16.mxu1 %v6486_v26  ;;  %v7099_v28 = vpack.c.bf16 %v1063_v25, %v1062_v24  ;;  %v1081_v24 = vld [vmem:[#allocation2 + $0xfa] sm:$0xff] }
  0x8a   : > { %v6505_v25 = vld [vmem:[%s8452_s1 + $0x140] sm:$0xff]  }
  0x8b   : > { %5891 = vmatpush3.bf16.msra.mxu0 %v6481_v23  ;;  %v1092_v23 = vpack.c.bf16 %v1061_v13, %v1060_v12  ;;  %v6504_v12 = vld [vmem:[%s8452_s1 + $0x148] sm:$0xff]  }
  0x8c   : > { %5892 = vmatprep.subr.bf16.mxu0 %v6484_v30  ;;  %5939 = vmatpush3.bf16.msra.mxu1 %v6486_v26  ;;  %v1064_v26 = vld [vmem:[#allocation2 + $0x32] sm:$0xff] }
  0x8d   : > { %5813 = vmatmul.mubr.bf16.gmra.mxu0 %v7003_v31  ;;  %5940 = vmatprep.subr.bf16.mxu1 %v6488_v35  ;;  %v7101_v29 = vpack.c.bf16 %v1065_v27, %v1064_v26  ;;  %v6506_v26 = vld [vmem:[%s8452_s1 + $0x1b8] sm:$0xff]  }
  0x8e   : > { %5861 = vmatmul.mubr.bf16.gmra.mxu1 %v7005_v32  ;;  %5816 = vmatprep.mubr.bf16.mxu0 %v7009_v33  ;;  %v6511_v27 = vld [vmem:[%s8452_s1 + $0x1f8] sm:$0xff]  }
  0x8f   : > { %5864 = vmatprep.mubr.bf16.mxu1 %v7011_v34  ;;  %5893 = vmatpush3.bf16.msra.mxu0 %v6484_v30  ;;  %v6496_v30 = vld [vmem:[%s8452_s1 + $0x170] sm:$0xff]  }
  0x90   : > { %5894 = vmatprep.subr.bf16.mxu0 %v6487_v37  ;;  %5941 = vmatpush3.bf16.msra.mxu1 %v6488_v35  ;;  %v1069_v35 = vld [vmem:[#allocation2 + $0x6a] sm:$0xff] }
  0x91   : > { %5942 = vmatprep.subr.bf16.mxu1 %v6489_v36 }
  0x93   : > { %5895 = vmatpush3.bf16.msra.mxu0 %v6487_v37  ;;  %v1068_v37 = vld [vmem:[#allocation2 + $0x62] sm:$0xff] }
  0x94   : > { %5976 = vmatprep.subr.bf16.mxu0 %v7029_v42  ;;  %5943 = vmatpush3.bf16.msra.mxu1 %v6489_v36  ;;  %v6492_v36 = vld [vmem:[%s8452_s1 + $0x128] sm:$0xff]  }
  0x95   : > { %5817 = vmatmul.mubr.bf16.gmra.mxu0 %v7033_v44  ;;  %6024 = vmatprep.subr.bf16.mxu1 %v7047_v53 }
  0x96   : > { %5865 = vmatmul.mubr.bf16.gmra.mxu1 %v7035_v45  ;;  %5820 = vmatprep.mubr.bf16.mxu0 %v7039_v51 }
  0x97   : > { %5868 = vmatprep.mubr.bf16.mxu1 %v7041_v52 }
  0x9d   : > { %5821 = vmatmul.mubr.bf16.gmra.mxu0 %v7056_v56 }
  0x9e   : > { %5869 = vmatmul.mubr.bf16.gmra.mxu1 %v7058_v57  ;;  %5824 = vmatprep.mubr.bf16.mxu0 %v7062_v58 }
  0x9f   : > { %5872 = vmatprep.mubr.bf16.mxu1 %v7064_v59 }
  0xa5   : > { %5825 = vmatmul.mubr.bf16.gmra.mxu0 %v7072_v4 }
  0xa6   : > { %5873 = vmatmul.mubr.bf16.gmra.mxu1 %v7076_v9  ;;  %5828 = vmatprep.mubr.bf16.mxu0 %v7080_v10 }
  0xa7   : > { %5876 = vmatprep.mubr.bf16.mxu1 %v7082_v11 }
  0xad   : > { %5829 = vmatmul.mubr.bf16.gmra.mxu0 %v7092_v16 }
  0xae   : > { %5877 = vmatmul.mubr.bf16.gmra.mxu1 %v7094_v17  ;;  %5896 = vmatprep.mubr.bf16.mxu0 %v1092_v23  ;;  %v1080_v23 = vld [vmem:[#allocation2 + $0xf2] sm:$0xff] }
  0xaf   : > { %5944 = vmatprep.mubr.bf16.mxu1 %v6875_v48  ;;  %v1067_v48 = vld [vmem:[#allocation2 + $0x52] sm:$0xff] }
  0xb0   : > { %v7121_v39 = vpack.c.bf16 %v1067_v48, %v1066_v21  ;;  %v7183_v21 = vpack.c.bf16 %v1081_v24, %v1080_v23  ;;  %v1085_v48 = vld [vmem:[#allocation2 + $0x12a] sm:$0xff]  ;;  %v2291_v23 = vld [vmem:[#allocation2 + $0x78] sm:$0xff] }
  0xb5   : > { %5897 = vmatmul.mubr.bf16.vlgmr.msra.gmra.mxu0 %v7099_v28 }
  0xb6   : > { %5977 = vmatpush3.bf16.msra.mxu0 %v7029_v42  ;;  %5945 = vmatmul.mubr.bf16.vlgmr.msra.gmra.mxu1 %v6879_v50  ;;  %v7123_v50 = vpack.c.bf16 %v1069_v35, %v1068_v37  ;;  %v6493_v42 = vld [vmem:[%s8452_s1 + $0x120] sm:$0xff]  }
  0xb7   : > { %5900 = vmatprep.mubr.bf16.mxu0 %v7101_v29  ;;  %5978 = vmatprep.subr.bf16.mxu0 %v6491_v20 }
  0xb8   : > { %5948 = vmatprep.mubr.bf16.mxu1 %v6917_v0  ;;  %6025 = vmatpush3.bf16.msra.mxu1 %v7047_v53  ;;  %v1072_v0 = vld [vmem:[#allocation2 + $0x92] sm:$0xff]  ;;  %v1073_v53 = vld [vmem:[#allocation2 + $0x9a] sm:$0xff] }
  0xb9   : > { %6026 = vmatprep.subr.bf16.mxu1 %v6496_v30  ;;  %v7143_v61 = vpack.c.bf16 %v1073_v53, %v1072_v0  ;;  %v1091_v0 = vld [vmem:[#allocation2 + $0x172] sm:$0xff]  ;;  %v1396_v53 = vld [vmem:[#allocation2 + $0x180] sm:$0xff] }
  0xba   : > { %5979 = vmatpush3.bf16.msra.mxu0 %v6491_v20 }
  0xbb   : > { %5980 = vmatprep.subr.bf16.mxu0 %v6492_v36 }
  0xbc   : > { %6027 = vmatpush3.bf16.msra.mxu1 %v6496_v30  ;;  %v1083_v30 = vld [vmem:[#allocation2 + $0x112] sm:$0xff] }
  0xbd   : > { %5901 = vmatmul.mubr.bf16.gmra.mxu0 %v7121_v39  ;;  %6028 = vmatprep.subr.bf16.mxu1 %v6498_v38 }
  0xbe   : > { %5949 = vmatmul.mubr.bf16.gmra.mxu1 %v6926_v3  ;;  %5904 = vmatprep.mubr.bf16.mxu0 %v7123_v50  ;;  %v1074_v3 = vld [vmem:[#allocation2 + $0xaa] sm:$0xff] }
  0xbf   : > { %5952 = vmatprep.mubr.bf16.mxu1 %v6967_v18  ;;  %5981 = vmatpush3.bf16.msra.mxu0 %v6492_v36  ;;  %v6497_v18 = vld [vmem:[%s8452_s1 + $0x110] sm:$0xff]   ;;  %v7161_v13 = vpack.c.bf16 %v1075_v2, %v1074_v3  ;;  %v1086_v36 = vld [vmem:[#allocation2 + $0x13a] sm:$0xff] }
  0xc0   : > { %5982 = vmatprep.subr.bf16.mxu0 %v6493_v42  ;;  %6029 = vmatpush3.bf16.msra.mxu1 %v6498_v38  ;;  %v1087_v38 = vld [vmem:[#allocation2 + $0x142] sm:$0xff]  ;;  %v2288_v2 = vld [vmem:[#allocation2 + $0x50] sm:$0xff] }
  0xc1   : > { %6030 = vmatprep.subr.bf16.mxu1 %v6499_v43  ;;  %v7197_v41 = vpack.c.bf16 %v1087_v38, %v1086_v36 }
  0xc3   : > { %5983 = vmatpush3.bf16.msra.mxu0 %v6493_v42  ;;  %v1090_v42 = vld [vmem:[#allocation2 + $0x16a] sm:$0xff] }
  0xc4   : > { %5984 = vmatprep.subr.bf16.mxu0 %v6494_v46  ;;  %6031 = vmatpush3.bf16.msra.mxu1 %v6499_v43  ;;  %v7205_v43 = vpack.c.bf16 %v1091_v0, %v1090_v42 }
  0xc5   : > { %5905 = vmatmul.mubr.bf16.gmra.mxu0 %v7141_v55  ;;  %6032 = vmatprep.subr.bf16.mxu1 %v6501_v54 }
  0xc6   : > { %5953 = vmatmul.mubr.bf16.gmra.mxu1 %v6981_v22  ;;  %5908 = vmatprep.mubr.bf16.mxu0 %v7143_v61  ;;  %v1078_v22 = vld [vmem:[#allocation2 + $0xda] sm:$0xff] }
  0xc7   : > { %5956 = vmatprep.mubr.bf16.mxu1 %v7005_v32  ;;  %5985 = vmatpush3.bf16.msra.mxu0 %v6494_v46  ;;  %v6503_v32 = vld [vmem:[%s8452_s1 + $0x100] sm:$0xff]   ;;  %v7181_v20 = vpack.c.bf16 %v1079_v14, %v1078_v22  ;;  %v6508_v46 = vld [vmem:[%s8452_s1 + $0x1a8] sm:$0xff]   ;;  %v6523_v22 = vld [vmem:[%s8452_s1 + $0x230] sm:$0xff]  }
  0xc8   : > { %5986 = vmatprep.subr.bf16.mxu0 %v6497_v18  ;;  %6033 = vmatpush3.bf16.msra.mxu1 %v6501_v54  ;;  %v6522_v54 = vld [vmem:[%s8452_s1 + $0x238] sm:$0xff]  }
  0xc9   : > { %6034 = vmatprep.subr.bf16.mxu1 %v6502_v5 }
  0xcb   : > { %5987 = vmatpush3.bf16.msra.mxu0 %v6497_v18  ;;  %v2594_v18 = vld [vmem:[#allocation2 + $0x51] sm:$0xff] }
  0xcc   : > { %5988 = vmatprep.subr.bf16.mxu0 %v6500_v6  ;;  %6035 = vmatpush3.bf16.msra.mxu1 %v6502_v5 }
  0xcd   : > { %5909 = vmatmul.mubr.bf16.gmra.mxu0 %v7161_v13  ;;  %6036 = vmatprep.subr.bf16.mxu1 %v6504_v12 }
  0xce   : > { %5957 = vmatmul.mubr.bf16.gmra.mxu1 %v7011_v34  ;;  %5912 = vmatprep.mubr.bf16.mxu0 %v7163_v7  ;;  %v1082_v34 = vld [vmem:[#allocation2 + $0x10a] sm:$0xff] }
  0xcf   : > { %5960 = vmatprep.mubr.bf16.mxu1 %v7035_v45  ;;  %5989 = vmatpush3.bf16.msra.mxu0 %v6500_v6  ;;  %v1084_v45 = vld [vmem:[#allocation2 + $0x122] sm:$0xff]  ;;  %v7189_v37 = vpack.c.bf16 %v1083_v30, %v1082_v34  ;;  %v2293_v34 = vld [vmem:[#allocation2 + $0x90] sm:$0xff]  ;;  %v2294_v30 = vld [vmem:[#allocation2 + $0x98] sm:$0xff] }
  0xd0   : > { %5990 = vmatprep.subr.bf16.mxu0 %v6503_v32  ;;  %6037 = vmatpush3.bf16.msra.mxu1 %v6504_v12  ;;  %v7191_v35 = vpack.c.bf16 %v1085_v48, %v1084_v45  ;;  %v2595_v6 = vld [vmem:[#allocation2 + $0x61] sm:$0xff]  ;;  %v2596_v12 = vld [vmem:[#allocation2 + $0x69] sm:$0xff] }
  0xd1   : > { %6038 = vmatprep.subr.bf16.mxu1 %v6505_v25  ;;  %v2625_v14 = vpack.c.bf16 %v2596_v12, %v2595_v6  ;;  %v6524_v45 = vld [vmem:[%s8452_s1 + $0x228] sm:$0xff]   ;;  %v2300_v6 = vld [vmem:[#allocation2 + $0xe0] sm:$0xff] }
  0xd2   : > { %v2605_v12 = vld [vmem:[#allocation2 + $0xd9] sm:$0xff] }
  0xd3   : > { %5991 = vmatpush3.bf16.msra.mxu0 %v6503_v32 }
  0xd4   : > { %6039 = vmatpush3.bf16.msra.mxu1 %v6505_v25  ;;  %6072 = vmatprep.subr.bf16.mxu0 %v6506_v26  ;;  %v2292_v25 = vld [vmem:[#allocation2 + $0x80] sm:$0xff] }
  0xd5   : > { %5913 = vmatmul.mubr.bf16.gmra.mxu0 %v7181_v20  ;;  %6120 = vmatprep.subr.bf16.mxu1 %v6511_v27 }
  0xd6   : > { %5961 = vmatmul.mubr.bf16.gmra.mxu1 %v7041_v52  ;;  %5916 = vmatprep.mubr.bf16.mxu0 %v7183_v21  ;;  %v1089_v52 = vld [vmem:[#allocation2 + $0x15a] sm:$0xff] }
  0xd7   : > { %5964 = vmatprep.mubr.bf16.mxu1 %v7058_v57  ;;  %v7199_v57 = vpack.c.bf16 %v1089_v52, %v1088_v40  ;;  %v2320_v40 = vpack.c.bf16 %v2292_v25, %v2291_v23  ;;  %v2608_v25 = vld [vmem:[#allocation2 + $0xf9] sm:$0xff] }
  0xdd   : > { %5917 = vmatmul.mubr.bf16.gmra.mxu0 %v7189_v37 }
  0xde   : > { %5965 = vmatmul.mubr.bf16.gmra.mxu1 %v7064_v59  ;;  %5920 = vmatprep.mubr.bf16.mxu0 %v7191_v35  ;;  %v1397_v59 = vld [vmem:[#allocation2 + $0x188] sm:$0xff] }
  0xdf   : > { %5968 = vmatprep.mubr.bf16.mxu1 %v7076_v9  ;;  %v7207_v9 = vpack.c.bf16 %v1397_v59, %v1396_v53 }
  0xe5   : > { %5921 = vmatmul.mubr.bf16.gmra.mxu0 %v7197_v41 }
  0xe6   : > { %5969 = vmatmul.mubr.bf16.gmra.mxu1 %v7082_v11  ;;  %5924 = vmatprep.mubr.bf16.mxu0 %v7199_v57  ;;  %v6507_v11 = vld [vmem:[%s8452_s1 + $0x1b0] sm:$0xff]  }
  0xe7   : > { %5972 = vmatprep.mubr.bf16.mxu1 %v7094_v17  ;;  %v6512_v17 = vld [vmem:[%s8452_s1 + $0x1f0] sm:$0xff]  }
  0xed   : > { %5925 = vmatmul.mubr.bf16.gmra.mxu0 %v7205_v43 }
  0xee   : > { %5973 = vmatmul.mubr.bf16.gmra.mxu1 %v7207_v9  ;;  %5992 = vmatprep.mubr.bf16.mxu0 %v6872_v47  ;;  %v6514_v47 = vld [vmem:[%s8452_s1 + $0x1e8] sm:$0xff]  }
  0xef   : > { %6040 = vmatprep.mubr.bf16.mxu1 %v7099_v28  ;;  %v6515_v28 = vld [vmem:[%s8452_s1 + $0x1e0] sm:$0xff]  }
  0xf5   : > { %5993 = vmatmul.mubr.bf16.vlgmr.msra.gmra.mxu0 %v6877_v49  ;;  %v6509_v49 = vld [vmem:[%s8452_s1 + $0x1a0] sm:$0xff]  }
  0xf6   : > { %6073 = vmatpush3.bf16.msra.mxu0 %v6506_v26  ;;  %6041 = vmatmul.mubr.bf16.vlgmr.msra.gmra.mxu1 %v7101_v29  ;;  %v6517_v29 = vld [vmem:[%s8452_s1 + $0x1d8] sm:$0xff]  }
  0xf7   : > { %5996 = vmatprep.mubr.bf16.mxu0 %v6914_v63  ;;  %6074 = vmatprep.subr.bf16.mxu0 %v6507_v11  ;;  %v6510_v63 = vld [vmem:[%s8452_s1 + $0x198] sm:$0xff]  }
  0xf8   : > { %6044 = vmatprep.mubr.bf16.mxu1 %v7121_v39  ;;  %6121 = vmatpush3.bf16.msra.mxu1 %v6511_v27  ;;  %v6516_v39 = vld [vmem:[%s8452_s1 + $0x188] sm:$0xff]   ;;  %v2597_v26 = vld [vmem:[#allocation2 + $0x79] sm:$0xff] }
  0xf9   : > { %6122 = vmatprep.subr.bf16.mxu1 %v6512_v17  ;;  %v2598_v27 = vld [vmem:[#allocation2 + $0x81] sm:$0xff] }
  0xfa   : > { %6075 = vmatpush3.bf16.msra.mxu0 %v6507_v11 }
  0xfb   : > { %6076 = vmatprep.subr.bf16.mxu0 %v6508_v46 }
  0xfc   : > { %6123 = vmatpush3.bf16.msra.mxu1 %v6512_v17 }
  0xfd   : > { %5997 = vmatmul.mubr.bf16.gmra.mxu0 %v6921_v1  ;;  %6124 = vmatprep.subr.bf16.mxu1 %v6514_v47  ;;  %v6513_v1 = vld [vmem:[%s8452_s1 + $0x190] sm:$0xff]  }
  0xfe   : > { %6045 = vmatmul.mubr.bf16.gmra.mxu1 %v7123_v50  ;;  %6000 = vmatprep.mubr.bf16.mxu0 %v6959_v15  ;;  %v6518_v15 = vld [vmem:[%s8452_s1 + $0x1d0] sm:$0xff]   ;;  %v6521_v50 = vld [vmem:[%s8452_s1 + $0x1c0] sm:$0xff]  }
  0xff   : > { %6048 = vmatprep.mubr.bf16.mxu1 %v7141_v55  ;;  %6077 = vmatpush3.bf16.msra.mxu0 %v6508_v46  ;;  %v2591_v55 = vld [vmem:[#allocation2 + $0x31] sm:$0xff] }
 0x100   : > { %6078 = vmatprep.subr.bf16.mxu0 %v6509_v49  ;;  %6125 = vmatpush3.bf16.msra.mxu1 %v6514_v47  ;;  %v2295_v47 = vld [vmem:[#allocation2 + $0xa8] sm:$0xff] }
 0x101   : > { %6126 = vmatprep.subr.bf16.mxu1 %v6515_v28 }
 0x103   : > { %6079 = vmatpush3.bf16.msra.mxu0 %v6509_v49  ;;  %v2296_v49 = vld [vmem:[#allocation2 + $0xb0] sm:$0xff] }
 0x104   : > { %6080 = vmatprep.subr.bf16.mxu0 %v6510_v63  ;;  %6127 = vmatpush3.bf16.msra.mxu1 %v6515_v28  ;;  %v2601_v28 = vld [vmem:[#allocation2 + $0xa9] sm:$0xff] }
 0x105   : > { %6001 = vmatmul.mubr.bf16.gmra.mxu0 %v6971_v19  ;;  %6128 = vmatprep.subr.bf16.mxu1 %v6517_v29  ;;  %v6520_v19 = vld [vmem:[%s8452_s1 + $0x1c8] sm:$0xff]  }
 0x106   : > { %6049 = vmatmul.mubr.bf16.gmra.mxu1 %v7143_v61  ;;  %6004 = vmatprep.mubr.bf16.mxu0 %v7003_v31  ;;  %v6519_v31 = vld [vmem:[%s8452_s1 + $0x180] sm:$0xff]  }
 0x107   : > { %6052 = vmatprep.mubr.bf16.mxu1 %v7161_v13  ;;  %6081 = vmatpush3.bf16.msra.mxu0 %v6510_v63 }
 0x108   : > { %6082 = vmatprep.subr.bf16.mxu0 %v6513_v1  ;;  %6129 = vmatpush3.bf16.msra.mxu1 %v6517_v29 }
 0x109   : > { %6130 = vmatprep.subr.bf16.mxu1 %v6518_v15 }
 0x10b   : > { %6083 = vmatpush3.bf16.msra.mxu0 %v6513_v1  ;;  %v2602_v1 = vld [vmem:[#allocation2 + $0xb1] sm:$0xff] }
 0x10c   : > { %6084 = vmatprep.subr.bf16.mxu0 %v6516_v39  ;;  %6131 = vmatpush3.bf16.msra.mxu1 %v6518_v15  ;;  %v2297_v15 = vld [vmem:[#allocation2 + $0xc0] sm:$0xff] }
 0x10d   : > { %6005 = vmatmul.mubr.bf16.gmra.mxu0 %v7009_v33  ;;  %6132 = vmatprep.subr.bf16.mxu1 %v6520_v19  ;;  %v2008_v33 = vld [vmem:[#allocation2 + $0x182] sm:$0xff] }
 0x10e   : > { %6053 = vmatmul.mubr.bf16.gmra.mxu1 %v7163_v7  ;;  %6008 = vmatprep.mubr.bf16.mxu0 %v7033_v44  ;;  %v2009_v44 = vld [vmem:[#allocation2 + $0x18a] sm:$0xff]  ;;  %v2319_v7 = vpack.c.bf16 %v2290_v62, %v2289_v60 }
 0x10f   : > { %6056 = vmatprep.mubr.bf16.mxu1 %v7181_v20  ;;  %6085 = vmatpush3.bf16.msra.mxu0 %v6516_v39  ;;  %v7286_v61 = vpack.c.bf16 %v2009_v44, %v2008_v33  ;;  %v2298_v39 = vld [vmem:[#allocation2 + $0xc8] sm:$0xff] }
 0x110   : > { %6086 = vmatprep.subr.bf16.mxu0 %v6519_v31  ;;  %6133 = vmatpush3.bf16.msra.mxu1 %v6520_v19 }
 0x111   : > { %6134 = vmatprep.subr.bf16.mxu1 %v6521_v50 }
 0x113   : > { %6087 = vmatpush3.bf16.msra.mxu0 %v6519_v31  ;;  %v2603_v31 = vld [vmem:[#allocation2 + $0xc1] sm:$0xff] }
 0x114   : > { %6135 = vmatpush3.bf16.msra.mxu1 %v6521_v50  ;;  %6168 = vmatprep.subr.bf16.mxu0 %v6522_v54  ;;  %v2604_v50 = vld [vmem:[#allocation2 + $0xc9] sm:$0xff] }
 0x115   : > { %6009 = vmatmul.mubr.bf16.gmra.mxu0 %v7039_v51  ;;  %v2285_v51 = vld [vmem:[#allocation2 + $0x30] sm:$0xff] }
 0x116   : > { %6057 = vmatmul.mubr.bf16.gmra.mxu1 %v7183_v21  ;;  %6012 = vmatprep.mubr.bf16.mxu0 %v7056_v56  ;;  %v2286_v56 = vld [vmem:[#allocation2 + $0x38] sm:$0xff] }
 0x117   : > { %6060 = vmatprep.mubr.bf16.mxu1 %v7189_v37  ;;  %v2317_v3 = vpack.c.bf16 %v2286_v56, %v2285_v51  ;;  %v2599_v37 = vld [vmem:[#allocation2 + $0x91] sm:$0xff]  ;;  %v2322_v51 = vpack.c.bf16 %v2296_v49, %v2295_v47  ;;  %v2305_v49 = vld [vmem:[#allocation2 + $0x120] sm:$0xff] }
 0x118   : > { %v2610_v47 = vld [vmem:[#allocation2 + $0x111] sm:$0xff] }
 0x11d   : > { %6013 = vmatmul.mubr.bf16.gmra.mxu0 %v7062_v58  ;;  %v2592_v58 = vld [vmem:[#allocation2 + $0x39] sm:$0xff] }
 0x11e   : > { %6061 = vmatmul.mubr.bf16.gmra.mxu1 %v7191_v35  ;;  %6016 = vmatprep.mubr.bf16.mxu0 %v7072_v4  ;;  %v2623_v4 = vpack.c.bf16 %v2592_v58, %v2591_v55  ;;  %v2600_v35 = vld [vmem:[#allocation2 + $0x99] sm:$0xff]  ;;  %v2628_v55 = vpack.c.bf16 %v2602_v1, %v2601_v28  ;;  %v2323_v58 = vpack.c.bf16 %v2298_v39, %v2297_v15  ;;  %v2306_v28 = vld [vmem:[#allocation2 + $0x128] sm:$0xff] }
 0x11f   : > { %6064 = vmatprep.mubr.bf16.mxu1 %v7197_v41  ;;  %v2626_v41 = vpack.c.bf16 %v2598_v27, %v2597_v26  ;;  %v2627_v53 = vpack.c.bf16 %v2600_v35, %v2599_v37  ;;  %v6528_v26 = vld [vmem:[%s8452_s1 + $0x208] sm:$0xff]  }
 0x120   : > { %v2611_v1 = vld [vmem:[#allocation2 + $0x121] sm:$0xff]  ;;  %v2612_v15 = vld [vmem:[#allocation2 + $0x129] sm:$0xff] }
 0x125   : > { %6017 = vmatmul.mubr.bf16.gmra.mxu0 %v7080_v10  ;;  %v2287_v10 = vld [vmem:[#allocation2 + $0x48] sm:$0xff] }
 0x126   : > { %6065 = vmatmul.mubr.bf16.gmra.mxu1 %v7199_v57  ;;  %6020 = vmatprep.mubr.bf16.mxu0 %v7092_v16  ;;  %v2593_v16 = vld [vmem:[#allocation2 + $0x49] sm:$0xff]  ;;  %v2318_v5 = vpack.c.bf16 %v2288_v2, %v2287_v10  ;;  %v2321_v57 = vpack.c.bf16 %v2294_v30, %v2293_v34  ;;  %v2629_v10 = vpack.c.bf16 %v2604_v50, %v2603_v31 }
 0x127   : > { %6068 = vmatprep.mubr.bf16.mxu1 %v7205_v43  ;;  %v2624_v13 = vpack.c.bf16 %v2594_v18, %v2593_v16  ;;  %v6525_v43 = vld [vmem:[%s8452_s1 + $0x220] sm:$0xff]   ;;  %v6527_v16 = vld [vmem:[%s8452_s1 + $0x210] sm:$0xff]  }
 0x12d   : > { %6021 = vmatmul.mubr.bf16.gmra.mxu0 %v7087_v8 }
 0x12e   : > { %6069 = vmatmul.mubr.bf16.gmra.mxu1 %v7286_v61  ;;  %6088 = vmatprep.mubr.bf16.mxu0 %v2317_v3 }
 0x12f   : > { %6136 = vmatprep.mubr.bf16.mxu1 %v2623_v4 }
 0x135   : > { %v5802_v32 = vpop.f32.mrf.mxu0  ;;  %6089 = vmatmul.mubr.bf16.vlgmr.msra.gmra.mxu0 %v2318_v5  ;;  %v2299_v5 = vld [vmem:[#allocation2 + $0xd8] sm:$0xff] }
 0x136   : > { %v5850_v24 = vpop.f32.mrf.mxu1  ;;  %6169 = vmatpush3.bf16.msra.mxu0 %v6522_v54  ;;  %6137 = vmatmul.mubr.bf16.vlgmr.msra.gmra.mxu1 %v2624_v13  ;;  %v6526_v54 = vld [vmem:[%s8452_s1 + $0x218] sm:$0xff]   ;;  %v2324_v34 = vpack.c.bf16 %v2300_v6, %v2299_v5 }
 0x137   : > { %v7293_v20 = vadd.f32 %v5850_v24, %v5802_v32  ;;  %v724_v21 = vpop.f32.mrf.mxu0  ;;  %6092 = vmatprep.mubr.bf16.mxu0 %v2319_v7  ;;  %6170 = vmatprep.subr.bf16.mxu0 %v6523_v22  ;;  %v2302_v32 = vld [vmem:[#allocation2 + $0xf8] sm:$0xff] }
 0x138   : > { %v933_v48 = vpop.f32.mrf.mxu1  ;;  %6140 = vmatprep.mubr.bf16.mxu1 %v2625_v14  ;;  %v2301_v14 = vld [vmem:[#allocation2 + $0xf0] sm:$0xff] }
 0x139   : > { %v7298_v36 = vadd.f32 %v933_v48, %v724_v21  ;;  %v5803_v38 = vpop.f32.mrf.mxu0  ;;  %v2607_v24 = vld [vmem:[#allocation2 + $0xf1] sm:$0xff]  ;;  %v2325_v48 = vpack.c.bf16 %v2302_v32, %v2301_v14 }
 0x13a   : > { %v5851_v52 = vpop.f32.mrf.mxu1  ;;  %6171 = vmatpush3.bf16.msra.mxu0 %v6523_v22  ;;  %v2606_v22 = vld [vmem:[#allocation2 + $0xe1] sm:$0xff]  ;;  %v2615_v32 = vld [vmem:[#allocation2 + $0x151] sm:$0xff] }
 0x13b   : > { %v7300_v42 = vadd.f32 %v5851_v52, %v5803_v38  ;;  %v727_v0 = vpop.f32.mrf.mxu0  ;;  %6172 = vmatprep.subr.bf16.mxu0 %v6524_v45  ;;  %v2631_v38 = vpack.c.bf16 %v2608_v25, %v2607_v24  ;;  %v6529_v52 = vld [vmem:[%s8452_s1 + $0x200] sm:$0xff]  }
 0x13c   : > { %v936_v59 = vpop.f32.mrf.mxu1 }
 0x13d   : > { %v7305_v11 = vadd.f32 %v936_v59, %v727_v0  ;;  %v5806_v17 = vpop.f32.mrf.mxu0  ;;  %6093 = vmatmul.mubr.bf16.gmra.mxu0 %v2320_v40  ;;  %v2304_v59 = vld [vmem:[#allocation2 + $0x110] sm:$0xff] }
 0x13e   : > { %v5854_v46 = vpop.f32.mrf.mxu1  ;;  %6141 = vmatmul.mubr.bf16.gmra.mxu1 %v2626_v41  ;;  %6096 = vmatprep.mubr.bf16.mxu0 %v2321_v57 }
 0x13f   : > { %v7307_v63 = vadd.f32 %v5854_v46, %v5806_v17  ;;  %v740_v29 = vpop.f32.mrf.mxu0  ;;  %6144 = vmatprep.mubr.bf16.mxu1 %v2627_v53  ;;  %6173 = vmatpush3.bf16.msra.mxu0 %v6524_v45  ;;  %v2630_v45 = vpack.c.bf16 %v2606_v22, %v2605_v12  ;;  %v2303_v53 = vld [vmem:[#allocation2 + $0x108] sm:$0xff]  ;;  %v2310_v22 = vld [vmem:[#allocation2 + $0x158] sm:$0xff] }
 0x140   : > { %v949_v19 = vpop.f32.mrf.mxu1  ;;  %6174 = vmatprep.subr.bf16.mxu0 %v6525_v43  ;;  %v2326_v31 = vpack.c.bf16 %v2304_v59, %v2303_v53  ;;  %v2614_v12 = vld [vmem:[#allocation2 + $0x141] sm:$0xff] }
 0x141   : > { %v7312_v33 = vadd.f32 %v949_v19, %v740_v29  ;;  %v5807_v44 = vpop.f32.mrf.mxu0 }
 0x142   : > { %v5855_v56 = vpop.f32.mrf.mxu1 }
 0x143   : > { %v7314_v3 = vadd.f32 %v5855_v56, %v5807_v44  ;;  %v743_v4 = vpop.f32.mrf.mxu0  ;;  %6175 = vmatpush3.bf16.msra.mxu0 %v6525_v43  ;;  %v2609_v43 = vld [vmem:[#allocation2 + $0x109] sm:$0xff]  ;;  %v2327_v44 = vpack.c.bf16 %v2306_v28, %v2305_v49 }
 0x144   : > { %v952_v2 = vpop.f32.mrf.mxu1  ;;  %6176 = vmatprep.subr.bf16.mxu0 %v6526_v54 }
 0x145   : > { %v7319_v18 = vadd.f32 %v952_v2, %v743_v4  ;;  %v5810_v60 = vpop.f32.mrf.mxu0  ;;  %6097 = vmatmul.mubr.bf16.gmra.mxu0 %v2322_v51 }
 0x146   : > { %v5858_v62 = vpop.f32.mrf.mxu1  ;;  %6145 = vmatmul.mubr.bf16.gmra.mxu1 %v2628_v55  ;;  %6100 = vmatprep.mubr.bf16.mxu0 %v2323_v58  ;;  %v2633_v55 = vpack.c.bf16 %v2612_v15, %v2611_v1 }
 0x147   : > { %v7321_v13 = vadd.f32 %v5858_v62, %v5810_v60  ;;  %v756_v7 = vpop.f32.mrf.mxu0  ;;  %6148 = vmatprep.mubr.bf16.mxu1 %v2629_v10  ;;  %6177 = vmatpush3.bf16.msra.mxu0 %v6526_v54  ;;  %v2632_v54 = vpack.c.bf16 %v2610_v47, %v2609_v43  ;;  %v2308_v60 = vld [vmem:[#allocation2 + $0x140] sm:$0xff]  ;;  %v2617_v43 = vld [vmem:[#allocation2 + $0x169] sm:$0xff] }
 0x148   : > { %v965_v23 = vpop.f32.mrf.mxu1  ;;  %6178 = vmatprep.subr.bf16.mxu0 %v6527_v16  ;;  %v2613_v62 = vld [vmem:[#allocation2 + $0x139] sm:$0xff] }
 0x149   : > { %v7326_v27 = vadd.f32 %v965_v23, %v756_v7  ;;  %v5811_v21 = vpop.f32.mrf.mxu0  ;;  %v2309_v7 = vld [vmem:[#allocation2 + $0x150] sm:$0xff]  ;;  %v2616_v23 = vld [vmem:[#allocation2 + $0x159] sm:$0xff] }
 0x14a   : > { %v5859_v30 = vpop.f32.mrf.mxu1 }
 0x14b   : > { %v7328_v37 = vadd.f32 %v5859_v30, %v5811_v21  ;;  %v759_v35 = vpop.f32.mrf.mxu0  ;;  %6179 = vmatpush3.bf16.msra.mxu0 %v6527_v16  ;;  %v2307_v16 = vld [vmem:[#allocation2 + $0x138] sm:$0xff]  ;;  %v2329_v30 = vpack.c.bf16 %v2310_v22, %v2309_v7 }
 0x14c   : > { %v968_v40 = vpop.f32.mrf.mxu1  ;;  %6180 = vmatprep.subr.bf16.mxu0 %v6528_v26 }
 0x14d   : > { %v7333_v41 = vadd.f32 %v968_v40, %v759_v35  ;;  %v5814_v57 = vpop.f32.mrf.mxu0  ;;  %6101 = vmatmul.mubr.bf16.gmra.mxu0 %v2324_v34  ;;  %v2634_v34 = vpack.c.bf16 %v2614_v12, %v2613_v62  ;;  %v2635_v35 = vpack.c.bf16 %v2616_v23, %v2615_v32  ;;  %v2898_v62 = vld [vmem:[#allocation2 + $0x3a] sm:$0xff] }
 0x14e   : > { %v5862_v0 = vpop.f32.mrf.mxu1  ;;  %6149 = vmatmul.mubr.bf16.gmra.mxu1 %v2630_v45  ;;  %6104 = vmatprep.mubr.bf16.mxu0 %v2325_v48 }
 0x14f   : > { %v7335_v17 = vadd.f32 %v5862_v0, %v5814_v57  ;;  %v772_v46 = vpop.f32.mrf.mxu0  ;;  %6152 = vmatprep.mubr.bf16.mxu1 %v2631_v38  ;;  %6181 = vmatpush3.bf16.msra.mxu0 %v6528_v26  ;;  %v2328_v26 = vpack.c.bf16 %v2308_v60, %v2307_v16  ;;  %v2311_v57 = vld [vmem:[#allocation2 + $0x168] sm:$0xff]  ;;  %v2312_v0 = vld [vmem:[#allocation2 + $0x170] sm:$0xff] }
 0x150   : > { %v981_v29 = vpop.f32.mrf.mxu1  ;;  %6182 = vmatprep.subr.bf16.mxu0 %v6529_v52  ;;  %v2622_v16 = vld [vmem:[#allocation2 + $0x1a1] sm:$0xff]  ;;  %v2897_v60 = vld [vmem:[#allocation2 + $0x32] sm:$0xff] }
 0x151   : > { %v7337_v39 = vadd.f32 %v981_v29, %v772_v46  ;;  %v5815_v19 = vpop.f32.mrf.mxu0  ;;  %v2618_v46 = vld [vmem:[#allocation2 + $0x171] sm:$0xff]  ;;  %v2330_v29 = vpack.c.bf16 %v2312_v0, %v2311_v57  ;;  %v2929_v23 = vpack.c.bf16 %v2898_v62, %v2897_v60  ;;  %v2906_v60 = vld [vmem:[#allocation2 + $0x9a] sm:$0xff] }
 0x152   : > { %v5863_v50 = vpop.f32.mrf.mxu1  ;;  %v2636_v15 = vpack.c.bf16 %v2618_v46, %v2617_v43  ;;  %v2902_v57 = vld [vmem:[#allocation2 + $0x6a] sm:$0xff] }
 0x153   : > { %v7339_v51 = vadd.f32 %v5863_v50, %v5815_v19  ;;  %v775_v56 = vpop.f32.mrf.mxu0  ;;  %6183 = vmatpush3.bf16.msra.mxu0 %v6529_v52 }
 0x154   : > { %v984_v58 = vpop.f32.mrf.mxu1 }
 0x155   : > { %v7341_v4 = vadd.f32 %v984_v58, %v775_v56  ;;  %v5818_v10 = vpop.f32.mrf.mxu0  ;;  %6105 = vmatmul.mubr.bf16.gmra.mxu0 %v2326_v31  ;;  %v2315_v56 = vld [vmem:[#allocation2 + $0x198] sm:$0xff] }
 0x156   : > { %v5866_v2 = vpop.f32.mrf.mxu1  ;;  %6153 = vmatmul.mubr.bf16.gmra.mxu1 %v2632_v54  ;;  %6108 = vmatprep.mubr.bf16.mxu0 %v2327_v44  ;;  %v2621_v58 = vld [vmem:[#allocation2 + $0x199] sm:$0xff] }
 0x157   : > { %v7343_v5 = vadd.f32 %v5866_v2, %v5818_v10  ;;  %v788_v6 = vpop.f32.mrf.mxu0  ;;  %6156 = vmatprep.mubr.bf16.mxu1 %v2633_v55  ;;  %v2316_v55 = vld [vmem:[#allocation2 + $0x1a0] sm:$0xff]  ;;  %v2638_v32 = vpack.c.bf16 %v2622_v16, %v2621_v58  ;;  %v2905_v16 = vld [vmem:[#allocation2 + $0x92] sm:$0xff] }
 0x158   : > { %v997_v14 = vpop.f32.mrf.mxu1  ;;  %v2332_v22 = vpack.c.bf16 %v2316_v55, %v2315_v56  ;;  %v2903_v55 = vld [vmem:[#allocation2 + $0x7a] sm:$0xff]  ;;  %v2904_v58 = vld [vmem:[#allocation2 + $0x82] sm:$0xff] }
 0x159   : > { %v7345_v24 = vadd.f32 %v997_v14, %v788_v6  ;;  %v5819_v25 = vpop.f32.mrf.mxu0 }
 0x15a   : > { %v5867_v21 = vpop.f32.mrf.mxu1 }
 0x15b   : > { %v7347_v45 = vadd.f32 %v5867_v21, %v5819_v25  ;;  %v7349_v48 = vpop.f32.mrf.mxu0 }
 0x15c   : > { %v7351_v38 = vpop.f32.mrf.mxu1 }
 0x15d   : > { %v5822_v40 = vpop.f32.mrf.mxu0  ;;  %6109 = vmatmul.mubr.bf16.gmra.mxu0 %v2328_v26 }
 0x15e   : > { %v5870_v52 = vpop.f32.mrf.mxu1  ;;  %6157 = vmatmul.mubr.bf16.gmra.mxu1 %v2634_v34  ;;  %6112 = vmatprep.mubr.bf16.mxu0 %v2329_v30  ;;  %v2899_v34 = vld [vmem:[#allocation2 + $0x4a] sm:$0xff]  ;;  %v2900_v30 = vld [vmem:[#allocation2 + $0x52] sm:$0xff] }
 0x15f   : > { %v7353_v53 = vadd.f32 %v5870_v52, %v5822_v40  ;;  %v804_v59 = vpop.f32.mrf.mxu0  ;;  %6160 = vmatprep.mubr.bf16.mxu1 %v2635_v35  ;;  %v2901_v52 = vld [vmem:[#allocation2 + $0x62] sm:$0xff]  ;;  %v2930_v46 = vpack.c.bf16 %v2900_v30, %v2899_v34 }
 0x160   : > { %v1013_v47 = vpop.f32.mrf.mxu1 }
 0x161   : > { %v7355_v49 = vadd.f32 %v1013_v47, %v804_v59  ;;  %v5823_v28 = vpop.f32.mrf.mxu0 }
 0x162   : > { %v5871_v1 = vpop.f32.mrf.mxu1 }
 0x163   : > { %v7357_v19 = vadd.f32 %v5871_v1, %v5823_v28  ;;  %v7359_v31 = vpop.f32.mrf.mxu0  ;;  %v2931_v28 = vpack.c.bf16 %v2902_v57, %v2901_v52 }
 0x164   : > { %v7361_v50 = vpop.f32.mrf.mxu1 }
 0x165   : > { %v5826_v54 = vpop.f32.mrf.mxu0  ;;  %6113 = vmatmul.mubr.bf16.gmra.mxu0 %v2330_v29 }
 0x166   : > { %v5874_v44 = vpop.f32.mrf.mxu1  ;;  %6161 = vmatmul.mubr.bf16.gmra.mxu1 %v2636_v15  ;;  %6116 = vmatprep.mubr.bf16.mxu0 %v7207_v9 }
 0x167   : > { %v7364_v10 = vadd.f32 %v5874_v44, %v5826_v54  ;;  %v820_v2 = vpop.f32.mrf.mxu0  ;;  %6164 = vmatprep.mubr.bf16.mxu1 %v7087_v8 }
 0x168   : > { %v1029_v6 = vpop.f32.mrf.mxu1 }
 0x169   : > { %v7367_v12 = vadd.f32 %v1029_v6, %v820_v2  ;;  %v5827_v7 = vpop.f32.mrf.mxu0 }
 0x16a   : > { %v5875_v14 = vpop.f32.mrf.mxu1 }
 0x16b   : > { %v7369_v9 = vadd.f32 %v5875_v14, %v5827_v7  ;;  %v7371_v25 = vpop.f32.mrf.mxu0  ;;  %v2932_v14 = vpack.c.bf16 %v2904_v58, %v2903_v55 }
 0x16c   : > { %v7373_v26 = vpop.f32.mrf.mxu1 }
 0x16d   : > { %v5830_v21 = vpop.f32.mrf.mxu0  ;;  %6117 = vmatmul.mubr.bf16.gmra.mxu0 %v2332_v22 }
 0x16e   : > { %v5878_v8 = vpop.f32.mrf.mxu1  ;;  %6165 = vmatmul.mubr.bf16.gmra.mxu1 %v2638_v32  ;;  %6184 = vmatprep.mubr.bf16.mxu0 %v2929_v23 }
 0x16f   : > { %v7375_v35 = vadd.f32 %v5878_v8, %v5830_v21  ;;  %v836_v40 = vpop.f32.mrf.mxu0 }
 0x170   : > { %v1045_v0 = vpop.f32.mrf.mxu1 }
 0x171   : > { %v7377_v59 = vadd.f32 %v1045_v0, %v836_v40  ;;  %v5831_v43 = vpop.f32.mrf.mxu0  ;;  %v2907_v0 = vld [vmem:[#allocation2 + $0xaa] sm:$0xff] }
 0x172   : > { %v5879_v47 = vpop.f32.mrf.mxu1 }
 0x173   : > { %v7379_v29 = vadd.f32 %v5879_v47, %v5831_v43  ;;  %v7381_v1 = vpop.f32.mrf.mxu0  ;;  %v2910_v47 = vld [vmem:[#allocation2 + $0xca] sm:$0xff] }
 0x174   : > { %v7383_v15 = vpop.f32.mrf.mxu1 }
 0x175   : > { %v5898_v54 = vpop.f32.mrf.mxu0  ;;  %6185 = vmatmul.mubr.bf16.vlgmr.msra.gmra.mxu0 %v2930_v46  ;;  %v2909_v46 = vld [vmem:[#allocation2 + $0xc2] sm:$0xff] }
 0x176   : > { %v1336_v44 = vadd.f32 %v5898_v54, %v7293_v20  ;;  %v5946_v56 = vpop.f32.mrf.mxu1  ;;  %6188 = vmatprep.mubr.bf16.mxu0 %v2931_v28  ;;  %v2933_v20 = vpack.c.bf16 %v2906_v60, %v2905_v16 }
 0x177   : > { %v1207_v2 = vpop.f32.mrf.mxu0 }
 0x178   : > { %v1334_v62 = vadd.f32 %v1207_v2, %v7298_v36  ;;  %v7387_v6 = vadd.f32 %v5946_v56, %v1336_v44  ;;  %v1513_v7 = vpop.f32.mrf.mxu1 }
 0x179   : > { %v5899_v22 = vpop.f32.mrf.mxu0 }
 0x17a   : > { %v1337_v32 = vadd.f32 %v5899_v22, %v7300_v42  ;;  %v7390_v23 = vadd.f32 %v1513_v7, %v1334_v62  ;;  %v5947_v21 = vpop.f32.mrf.mxu1  ;;  %v2908_v42 = vld [vmem:[#allocation2 + $0xb2] sm:$0xff] }
 0x17b   : > { %v1210_v8 = vpop.f32.mrf.mxu0  ;;  %v2934_v56 = vpack.c.bf16 %v2908_v42, %v2907_v0 }
 0x17c   : > { %v7393_v34 = vadd.f32 %v1210_v8, %v7305_v11  ;;  %v7395_v30 = vadd.f32 %v5947_v21, %v1337_v32  ;;  %v7397_v40 = vpop.f32.mrf.mxu1  ;;  %v2911_v32 = vld [vmem:[#allocation2 + $0xda] sm:$0xff] }
 0x17d   : > { %v5902_v36 = vpop.f32.mrf.mxu0  ;;  %6189 = vmatmul.mubr.bf16.gmra.mxu0 %v2932_v14  ;;  %v2914_v8 = vld [vmem:[#allocation2 + $0xfa] sm:$0xff] }
 0x17e   : > { %v1340_v52 = vadd.f32 %v5902_v36, %v7307_v63  ;;  %v5950_v57 = vpop.f32.mrf.mxu1  ;;  %6192 = vmatprep.mubr.bf16.mxu0 %v2933_v20  ;;  %v2935_v63 = vpack.c.bf16 %v2910_v47, %v2909_v46  ;;  %v2913_v20 = vld [vmem:[#allocation2 + $0xf2] sm:$0xff] }
 0x17f   : > { %v1223_v43 = vpop.f32.mrf.mxu0 }
 0x180   : > { %v1338_v28 = vadd.f32 %v1223_v43, %v7312_v33  ;;  %v7401_v54 = vadd.f32 %v5950_v57, %v1340_v52  ;;  %v1529_v11 = vpop.f32.mrf.mxu1 }
 0x181   : > { %v5903_v44 = vpop.f32.mrf.mxu0 }
 0x182   : > { %v1341_v55 = vadd.f32 %v5903_v44, %v7314_v3  ;;  %v7404_v58 = vadd.f32 %v1529_v11, %v1338_v28  ;;  %v5951_v2 = vpop.f32.mrf.mxu1  ;;  %v2912_v3 = vld [vmem:[#allocation2 + $0xe2] sm:$0xff] }
 0x183   : > { %v1226_v16 = vpop.f32.mrf.mxu0  ;;  %v2936_v0 = vpack.c.bf16 %v2912_v3, %v2911_v32 }
 0x184   : > { %v7407_v60 = vadd.f32 %v1226_v16, %v7319_v18  ;;  %v7409_v62 = vadd.f32 %v5951_v2, %v1341_v55  ;;  %v7411_v7 = vpop.f32.mrf.mxu1  ;;  %v2915_v2 = vld [vmem:[#allocation2 + $0x10a] sm:$0xff]  ;;  %v2917_v16 = vld [vmem:[#allocation2 + $0x122] sm:$0xff] }
 0x185   : > { %v5906_v33 = vpop.f32.mrf.mxu0  ;;  %6193 = vmatmul.mubr.bf16.gmra.mxu0 %v2934_v56 }
 0x186   : > { %v1344_v22 = vadd.f32 %v5906_v33, %v7321_v13  ;;  %v5954_v14 = vpop.f32.mrf.mxu1  ;;  %6196 = vmatprep.mubr.bf16.mxu0 %v2935_v63  ;;  %v2937_v13 = vpack.c.bf16 %v2914_v8, %v2913_v20  ;;  %v2918_v33 = vld [vmem:[#allocation2 + $0x12a] sm:$0xff] }
 0x187   : > { %v1239_v21 = vpop.f32.mrf.mxu0 }
 0x188   : > { %v1342_v36 = vadd.f32 %v1239_v21, %v7326_v27  ;;  %v7415_v52 = vadd.f32 %v5954_v14, %v1344_v22  ;;  %v1545_v18 = vpop.f32.mrf.mxu1 }
 0x189   : > { %v5907_v57 = vpop.f32.mrf.mxu0 }
 0x18a   : > { %v1345_v42 = vadd.f32 %v5907_v57, %v7328_v37  ;;  %v7418_v43 = vadd.f32 %v1545_v18, %v1342_v36  ;;  %v5955_v46 = vpop.f32.mrf.mxu1  ;;  %v2916_v37 = vld [vmem:[#allocation2 + $0x112] sm:$0xff] }
 0x18b   : > { %v1242_v47 = vpop.f32.mrf.mxu0  ;;  %v2938_v3 = vpack.c.bf16 %v2916_v37, %v2915_v2 }
 0x18c   : > { %v7421_v28 = vadd.f32 %v1242_v47, %v7333_v41  ;;  %v7423_v11 = vadd.f32 %v5955_v46, %v1345_v42  ;;  %v7425_v44 = vpop.f32.mrf.mxu1 }
 0x18d   : > { %8462 = vst [vmem:[#allocation5_spill] sm:$0xff] %v7425_v44  ;;  %v5910_v27 = vpop.f32.mrf.mxu0  ;;  %6197 = vmatmul.mubr.bf16.gmra.mxu0 %v2936_v0 }
 0x18e   : > { %v1348_v56 = vadd.f32 %v5910_v27, %v7335_v17  ;;  %v5958_v55 = vpop.f32.mrf.mxu1  ;;  %6200 = vmatprep.mubr.bf16.mxu0 %v2937_v13  ;;  %v2939_v17 = vpack.c.bf16 %v2918_v33, %v2917_v16  ;;  %v2919_v13 = vld [vmem:[#allocation2 + $0x13a] sm:$0xff]  ;;  %v2921_v27 = vld [vmem:[#allocation2 + $0x152] sm:$0xff] }
 0x18f   : > { %v1255_v63 = vpop.f32.mrf.mxu0 }
 0x190   : > { %v1346_v22 = vadd.f32 %v1255_v63, %v7337_v39  ;;  %v7429_v14 = vadd.f32 %v5958_v55, %v1348_v56  ;;  %v1561_v41 = vpop.f32.mrf.mxu1  ;;  %v2922_v56 = vld [vmem:[#allocation2 + $0x15a] sm:$0xff] }
 0x191   : > { %v5911_v32 = vpop.f32.mrf.mxu0 }
 0x192   : > { %v1349_v21 = vadd.f32 %v5911_v32, %v7339_v51  ;;  %v7432_v20 = vadd.f32 %v1561_v41, %v1346_v22  ;;  %v5959_v8 = vpop.f32.mrf.mxu1  ;;  %v2920_v51 = vld [vmem:[#allocation2 + $0x142] sm:$0xff] }
 0x193   : > { %v1258_v36 = vpop.f32.mrf.mxu0  ;;  %v2940_v63 = vpack.c.bf16 %v2920_v51, %v2919_v13 }
 0x194   : > { %v7435_v18 = vadd.f32 %v1258_v36, %v7341_v4  ;;  %v7437_v57 = vadd.f32 %v5959_v8, %v1349_v21  ;;  %v7439_v0 = vpop.f32.mrf.mxu1  ;;  %v2924_v36 = vld [vmem:[#allocation2 + $0x172] sm:$0xff] }
 0x195   : > { %v5914_v39 = vpop.f32.mrf.mxu0  ;;  %6201 = vmatmul.mubr.bf16.gmra.mxu0 %v2938_v3 }
 0x196   : > { %v1352_v42 = vadd.f32 %v5914_v39, %v7343_v5  ;;  %v5962_v46 = vpop.f32.mrf.mxu1  ;;  %6204 = vmatprep.mubr.bf16.mxu0 %v2939_v17  ;;  %v2941_v5 = vpack.c.bf16 %v2922_v56, %v2921_v27  ;;  %v2923_v17 = vld [vmem:[#allocation2 + $0x16a] sm:$0xff] }
 0x197   : > { %v1271_v47 = vpop.f32.mrf.mxu0  ;;  %v2942_v51 = vpack.c.bf16 %v2924_v36, %v2923_v17 }
 0x198   : > { %v1350_v55 = vadd.f32 %v1271_v47, %v7345_v24  ;;  %v7443_v2 = vadd.f32 %v5962_v46, %v1352_v42  ;;  %v1577_v4 = vpop.f32.mrf.mxu1 }
 0x199   : > { %v5915_v37 = vpop.f32.mrf.mxu0 }
 0x19a   : > { %v1353_v16 = vadd.f32 %v5915_v37, %v7347_v45  ;;  %v7446_v33 = vadd.f32 %v1577_v4, %v1350_v55  ;;  %v5963_v22 = vpop.f32.mrf.mxu1 }
 0x19b   : > { %v7448_v41 = vpop.f32.mrf.mxu0 }
 0x19c   : > { %v7450_v32 = vadd.f32 %v5963_v22, %v1353_v16  ;;  %v7452_v3 = vpop.f32.mrf.mxu1  ;;  %v2927_v16 = vld [vmem:[#allocation2 + $0x19a] sm:$0xff]  ;;  %v2928_v22 = vld [vmem:[#allocation2 + $0x1a2] sm:$0xff] }
 0x19d   : > { %v5918_v21 = vpop.f32.mrf.mxu0  ;;  %6205 = vmatmul.mubr.bf16.gmra.mxu0 %v2940_v63  ;;  %v2944_v17 = vpack.c.bf16 %v2928_v22, %v2927_v16 }
 0x19e   : > { %v1356_v24 = vadd.f32 %v5918_v21, %v7353_v53  ;;  %v5966_v8 = vpop.f32.mrf.mxu1  ;;  %6208 = vmatprep.mubr.bf16.mxu0 %v2941_v5 }
 0x19f   : > { %v1287_v39 = vpop.f32.mrf.mxu0 }
 0x1a0   : > { %v1354_v45 = vadd.f32 %v1287_v39, %v7355_v49  ;;  %v7456_v42 = vadd.f32 %v5966_v8, %v1356_v24  ;;  %v1593_v46 = vpop.f32.mrf.mxu1 }
 0x1a1   : > { %v5919_v13 = vpop.f32.mrf.mxu0 }
 0x1a2   : > { %v1357_v47 = vadd.f32 %v5919_v13, %v7357_v19  ;;  %v7459_v27 = vadd.f32 %v1593_v46, %v1354_v45  ;;  %v5967_v56 = vpop.f32.mrf.mxu1 }
 0x1a3   : > { %v7461_v55 = vpop.f32.mrf.mxu0 }
 0x1a4   : > { %v7463_v53 = vadd.f32 %v5967_v56, %v1357_v47  ;;  %v7465_v4 = vpop.f32.mrf.mxu1 }
 0x1a5   : > { %v5922_v37 = vpop.f32.mrf.mxu0  ;;  %6209 = vmatmul.mubr.bf16.gmra.mxu0 %v2942_v51 }
 0x1a6   : > { %v1360_v49 = vadd.f32 %v5922_v37, %v7364_v10  ;;  %v5970_v63 = vpop.f32.mrf.mxu1  ;;  %6212 = vmatprep.mubr.bf16.mxu0 %v7286_v61 }
 0x1a7   : > { %v1303_v5 = vpop.f32.mrf.mxu0 }
 0x1a8   : > { %v1358_v19 = vadd.f32 %v1303_v5, %v7367_v12  ;;  %v7470_v21 = vadd.f32 %v5970_v63, %v1360_v49  ;;  %v1609_v24 = vpop.f32.mrf.mxu1  ;;  %v1049_v63 = vadd.f32 %v7383_v15, %v7381_v1 }
 0x1a9   : > { %v5923_v8 = vpop.f32.mrf.mxu0 }
 0x1aa   : > { %v1361_v36 = vadd.f32 %v5923_v8, %v7369_v9  ;;  %v7473_v39 = vadd.f32 %v1609_v24, %v1358_v19  ;;  %v5971_v45 = vpop.f32.mrf.mxu1 }
 0x1ab   : > { %v7475_v46 = vpop.f32.mrf.mxu0 }
 0x1ac   : > { %v7477_v10 = vadd.f32 %v5971_v45, %v1361_v36  ;;  %v7479_v61 = vpop.f32.mrf.mxu1 }
 0x1ad   : > { %v5926_v13 = vpop.f32.mrf.mxu0  ;;  %6213 = vmatmul.mubr.bf16.gmra.mxu0 %v2944_v17 }
 0x1ae   : > { %v1364_v12 = vadd.f32 %v5926_v13, %v7375_v35  ;;  %v5974_v51 = vpop.f32.mrf.mxu1 }
 0x1af   : > { %v1319_v47 = vpop.f32.mrf.mxu0 }
 0x1b0   : > { %v1362_v56 = vadd.f32 %v1319_v47, %v7377_v59  ;;  %v7483_v37 = vadd.f32 %v5974_v51, %v1364_v12  ;;  %v1625_v9 = vpop.f32.mrf.mxu1  ;;  %v6530_v47 = vld [vmem:[%s8454_s3 + $0x78] sm:$0xff]  }
 0x1b1   : > { %v5927_v49 = vpop.f32.mrf.mxu0  ;;  %6216 = vmatprep.subr.bf16.mxu1 %v6530_v47 }
 0x1b2   : > { %v1365_v16 = vadd.f32 %v5927_v49, %v7379_v29  ;;  %v7488_v22 = vadd.f32 %v1625_v9, %v1362_v56  ;;  %v5975_v5 = vpop.f32.mrf.mxu1  ;;  %6217 = vmatpush3.bf16.msra.mxu1 %v6530_v47 }
 0x1b3   : > { %v1322_v19 = vpop.f32.mrf.mxu0 }
 0x1b4   : > { %v1363_v24 = vadd.f32 %v1322_v19, %v1049_v63  ;;  %v7490_v8 = vadd.f32 %v5975_v5, %v1365_v16  ;;  %v1628_v35 = vpop.f32.mrf.mxu1 }
 0x1b5   : > { %v5994_v17 = vpop.f32.mrf.mxu0 }
 0x1b6   : > { %v7492_v36 = vadd.f32 %v1628_v35, %v1363_v24  ;;  %v7495_v59 = vadd.f32 %v5994_v17, %v7387_v6  ;;  %v7497_v45 = vpop.f32.mrf.mxu1 }
 0x1b7   : > { %v1819_v13 = vpop.f32.mrf.mxu0 }
 0x1b8   : > { %v7500_v1 = vadd.f32 %v1819_v13, %v7390_v23  ;;  %v7502_v29 = vpop.f32.mrf.mxu1 }
 0x1b9   : > { %v5995_v15 = vpop.f32.mrf.mxu0 }
 0x1ba   : > { %v7505_v12 = vadd.f32 %v5995_v15, %v7395_v30  ;;  %v7507_v51 = vpop.f32.mrf.mxu1 }
 0x1bb   : > { %v7512_v6 = vpop.f32.mrf.mxu0 }
 0x1bc   : > { %v7514_v56 = vpop.f32.mrf.mxu1 }
 0x1bd   : > { %v5998_v9 = vpop.f32.mrf.mxu0 }
 0x1be   : > { %v7517_v23 = vadd.f32 %v5998_v9, %v7401_v54  ;;  %v7519_v49 = vpop.f32.mrf.mxu1 }
 0x1bf   : > { %v1835_v30 = vpop.f32.mrf.mxu0 }
 0x1c0   : > { %v7522_v63 = vadd.f32 %v1835_v30, %v7404_v58  ;;  %v7524_v16 = vpop.f32.mrf.mxu1  ;;  %v6531_v30 = vld [vmem:[%s8454_s3 + $0x70] sm:$0xff]  }
 0x1c1   : > { %v5999_v5 = vpop.f32.mrf.mxu0  ;;  %6218 = vmatprep.subr.bf16.mxu1 %v6531_v30 }
 0x1c2   : > { %v7527_v19 = vadd.f32 %v5999_v5, %v7409_v62  ;;  %v7529_v24 = vpop.f32.mrf.mxu1  ;;  %6219 = vmatpush3.bf16.msra.mxu1 %v6531_v30 }
 0x1c3   : > { %v7531_v35 = vpop.f32.mrf.mxu0 }
 0x1c4   : > { %v7533_v17 = vpop.f32.mrf.mxu1 }
 0x1c5   : > { %v6002_v54 = vpop.f32.mrf.mxu0 }
 0x1c6   : > { %v7536_v13 = vadd.f32 %v6002_v54, %v7415_v52  ;;  %v7538_v15 = vpop.f32.mrf.mxu1 }
 0x1c7   : > { %v1851_v58 = vpop.f32.mrf.mxu0 }
 0x1c8   : > { %v7541_v47 = vadd.f32 %v1851_v58, %v7418_v43  ;;  %v7543_v9 = vpop.f32.mrf.mxu1  ;;  %v6532_v58 = vld [vmem:[%s8454_s3 + $0x68] sm:$0xff]  }
 0x1c9   : > { %8463 = vst [vmem:[#allocation6_spill] sm:$0xff] %v7543_v9  ;;  %v6003_v62 = vpop.f32.mrf.mxu0  ;;  %v6534_v9 = vld [vmem:[%s8454_s3 + $0xb8] sm:$0xff]   ;;  %6220 = vmatprep.subr.bf16.mxu1 %v6532_v58 }
 0x1ca   : > { %v7549_v5 = vadd.f32 %v6003_v62, %v7423_v11  ;;  %v7551_v44 = vpop.f32.mrf.mxu1  ;;  %6264 = vmatprep.subr.bf16.mxu0 %v6534_v9  ;;  %6221 = vmatpush3.bf16.msra.mxu1 %v6532_v58 }
 0x1cb   : > { %8465 = vst [vmem:[#allocation8_spill] sm:$0xff] %v7551_v44  ;;  %v7553_v52 = vpop.f32.mrf.mxu0  ;;  %6265 = vmatpush3.bf16.msra.mxu0 %v6534_v9  ;;  %v1001_v9 = vadd.f32 %v7351_v38, %v7349_v48 }
 0x1cc   : > { %8464 = vst [vmem:[#allocation7_spill] sm:$0xff] %v7549_v5  ;;  %8466 = vst [vmem:[#allocation9_spill] sm:$0xff] %v7553_v52  ;;  %v7555_v54 = vpop.f32.mrf.mxu1  ;;  %v6533_v52 = vld [vmem:[%s8454_s3 + $0x60] sm:$0xff]  }
 0x1cd   : > { %8467 = vst [vmem:[#allocation10_spill] sm:$0xff] %v7555_v54  ;;  %v6006_v43 = vpop.f32.mrf.mxu0  ;;  %6222 = vmatprep.subr.bf16.mxu1 %v6533_v52 }
 0x1ce   : > { %v7564_v11 = vadd.f32 %v6006_v43, %v7429_v14  ;;  %v7566_v62 = vpop.f32.mrf.mxu1  ;;  %v6535_v14 = vld [vmem:[%s8454_s3 + $0xb0] sm:$0xff]   ;;  %v1653_v43 = vadd.f32 %v7439_v0, %v7435_v18  ;;  %6223 = vmatpush3.bf16.msra.mxu1 %v6533_v52  ;;  %v6536_v18 = vld [vmem:[%s8454_s3 + $0x58] sm:$0xff]   ;;  %v1351_v0 = vadd.f32 %v7448_v41, %v1001_v9  ;;  %v6538_v41 = vld [vmem:[%s8454_s3 + $0xa0] sm:$0xff]  }
 0x1cf   : > { %8468 = vst [vmem:[#allocation11_spill] sm:$0xff] %v7566_v62  ;;  %v1867_v44 = vpop.f32.mrf.mxu0  ;;  %6266 = vmatprep.subr.bf16.mxu0 %v6535_v14  ;;  %6224 = vmatprep.subr.bf16.mxu1 %v6536_v18 }
 0x1d0   : > { %v7569_v54 = vadd.f32 %v1867_v44, %v7432_v20  ;;  %v7571_v30 = vpop.f32.mrf.mxu1  ;;  %6267 = vmatpush3.bf16.msra.mxu0 %v6535_v14 }
 0x1d1   : > { %8470 = vst [vmem:[#allocation13_spill] sm:$0xff] %v7571_v30  ;;  %v6007_v5 = vpop.f32.mrf.mxu0 }
 0x1d2   : > { %8469 = vst [vmem:[#allocation12_spill] sm:$0xff] %v7569_v54  ;;  %v7582_v62 = vadd.f32 %v6007_v5, %v7437_v57  ;;  %v7584_v44 = vpop.f32.mrf.mxu1  ;;  %v6537_v57 = vld [vmem:[%s8454_s3 + $0xa8] sm:$0xff]   ;;  %6225 = vmatpush3.bf16.msra.mxu1 %v6536_v18  ;;  %v1017_v18 = vadd.f32 %v7361_v50, %v7359_v31 }
 0x1d3   : > { %v1870_v20 = vpop.f32.mrf.mxu0  ;;  %6268 = vmatprep.subr.bf16.mxu0 %v6537_v57 }
 0x1d4   : > { %v7588_v58 = vadd.f32 %v1870_v20, %v1653_v43  ;;  %v7590_v30 = vpop.f32.mrf.mxu1  ;;  %6269 = vmatpush3.bf16.msra.mxu0 %v6537_v57 }
 0x1d5   : > { %8471 = vst [vmem:[#allocation14_spill] sm:$0xff] %v7590_v30  ;;  %v6010_v54 = vpop.f32.mrf.mxu0  ;;  %6270 = vmatprep.subr.bf16.mxu0 %v6538_v41 }
 0x1d6   : > { %v7600_v5 = vadd.f32 %v6010_v54, %v7443_v2  ;;  %v7602_v48 = vpop.f32.mrf.mxu1  ;;  %v6539_v2 = vld [vmem:[%s8454_s3 + $0x50] sm:$0xff]   ;;  %v1657_v54 = vadd.f32 %v7452_v3, %v1351_v0  ;;  %v6542_v3 = vld [vmem:[%s8454_s3 + $0x48] sm:$0xff]   ;;  %v1355_v0 = vadd.f32 %v7461_v55, %v1017_v18 }
 0x1d7   : > { %8473 = vst [vmem:[#allocation16_spill] sm:$0xff] %v7602_v48  ;;  %v1883_v38 = vpop.f32.mrf.mxu0  ;;  %6226 = vmatprep.subr.bf16.mxu1 %v6539_v2  ;;  %v6541_v55 = vld [vmem:[%s8454_s3 + $0x90] sm:$0xff]  }
 0x1d8   : > { %8472 = vst [vmem:[#allocation15_spill] sm:$0xff] %v7600_v5  ;;  %v7605_v52 = vadd.f32 %v1883_v38, %v7446_v33  ;;  %v7607_v14 = vpop.f32.mrf.mxu1  ;;  %6271 = vmatpush3.bf16.msra.mxu0 %v6538_v41  ;;  %6227 = vmatpush3.bf16.msra.mxu1 %v6539_v2 }
 0x1d9   : > { %8475 = vst [vmem:[#allocation18_spill] sm:$0xff] %v7607_v14  ;;  %v6011_v43 = vpop.f32.mrf.mxu0  ;;  %6228 = vmatprep.subr.bf16.mxu1 %v6542_v3 }
 0x1da   : > { %8474 = vst [vmem:[#allocation17_spill] sm:$0xff] %v7605_v52  ;;  %v7617_v20 = vadd.f32 %v6011_v43, %v7450_v32  ;;  %v7619_v33 = vpop.f32.mrf.mxu1  ;;  %v6540_v32 = vld [vmem:[%s8454_s3 + $0x98] sm:$0xff]  }
 0x1db   : > { %8477 = vst [vmem:[#allocation20_spill] sm:$0xff] %v7619_v33  ;;  %v1886_v9 = vpop.f32.mrf.mxu0  ;;  %6272 = vmatprep.subr.bf16.mxu0 %v6540_v32 }
 0x1dc   : > { %8476 = vst [vmem:[#allocation19_spill] sm:$0xff] %v7617_v20  ;;  %v7623_v57 = vadd.f32 %v1886_v9, %v1657_v54  ;;  %v7625_v38 = vpop.f32.mrf.mxu1  ;;  %6273 = vmatpush3.bf16.msra.mxu0 %v6540_v32  ;;  %6229 = vmatpush3.bf16.msra.mxu1 %v6542_v3  ;;  %v1033_v32 = vadd.f32 %v7373_v26, %v7371_v25 }
 0x1dd   : > { %8479 = vst [vmem:[#allocation22_spill] sm:$0xff] %v7625_v38  ;;  %v6014_v14 = vpop.f32.mrf.mxu0  ;;  %6274 = vmatprep.subr.bf16.mxu0 %v6541_v55 }
 0x1de   : > { %8478 = vst [vmem:[#allocation21_spill] sm:$0xff] %v7623_v57  ;;  %v7635_v43 = vadd.f32 %v6014_v14, %v7456_v42  ;;  %v7637_v31 = vpop.f32.mrf.mxu1  ;;  %v6544_v42 = vld [vmem:[%s8454_s3 + $0x40] sm:$0xff]   ;;  %v1661_v14 = vadd.f32 %v7465_v4, %v1355_v0  ;;  %v1359_v4 = vadd.f32 %v7475_v46, %v1033_v32 }
 0x1df   : > { %8481 = vst [vmem:[#allocation24_spill] sm:$0xff] %v7637_v31  ;;  %v1899_v50 = vpop.f32.mrf.mxu0  ;;  %6230 = vmatprep.subr.bf16.mxu1 %v6544_v42 }
 0x1e0   : > { %8480 = vst [vmem:[#allocation23_spill] sm:$0xff] %v7635_v43  ;;  %v7640_v41 = vadd.f32 %v1899_v50, %v7459_v27  ;;  %v7642_v2 = vpop.f32.mrf.mxu1  ;;  %6275 = vmatpush3.bf16.msra.mxu0 %v6541_v55  ;;  %6231 = vmatpush3.bf16.msra.mxu1 %v6544_v42  ;;  %v6545_v42 = vld [vmem:[%s8454_s3 + $0x80] sm:$0xff]   ;;  %v1665_v46 = vadd.f32 %v7479_v61, %v1359_v4 }
 0x1e1   : > { %8483 = vst [vmem:[#allocation26_spill] sm:$0xff] %v7642_v2  ;;  %v6015_v54 = vpop.f32.mrf.mxu0 }
 0x1e2   : > { %8482 = vst [vmem:[#allocation25_spill] sm:$0xff] %v7640_v41  ;;  %v7652_v9 = vadd.f32 %v6015_v54, %v7463_v53  ;;  %v7654_v27 = vpop.f32.mrf.mxu1  ;;  %v6543_v53 = vld [vmem:[%s8454_s3 + $0x88] sm:$0xff]  }
 0x1e3   : > { %8485 = vst [vmem:[#allocation28_spill] sm:$0xff] %v7654_v27  ;;  %v1902_v18 = vpop.f32.mrf.mxu0  ;;  %6276 = vmatprep.subr.bf16.mxu0 %v6543_v53 }
 0x1e4   : > { %8484 = vst [vmem:[#allocation27_spill] sm:$0xff] %v7652_v9  ;;  %v7658_v3 = vadd.f32 %v1902_v18, %v1661_v14  ;;  %v7660_v50 = vpop.f32.mrf.mxu1  ;;  %6277 = vmatpush3.bf16.msra.mxu0 %v6543_v53 }
 0x1e5   : > { %8487 = vst [vmem:[#allocation30_spill] sm:$0xff] %v7660_v50  ;;  %v6018_v2 = vpop.f32.mrf.mxu0  ;;  %6278 = vmatprep.subr.bf16.mxu0 %v6545_v42 }
 0x1e6   : > { %8486 = vst [vmem:[#allocation29_spill] sm:$0xff] %v7658_v3  ;;  %v7667_v0 = vadd.f32 %v6018_v2, %v7470_v21  ;;  %v7669_v54 = vpop.f32.mrf.mxu1 }
 0x1e7   : > { %8489 = vst [vmem:[#allocation32_spill] sm:$0xff] %v7669_v54  ;;  %v1915_v27 = vpop.f32.mrf.mxu0 }
 0x1e8   : > { %8488 = vst [vmem:[#allocation31_spill] sm:$0xff] %v7667_v0  ;;  %v7672_v25 = vadd.f32 %v1915_v27, %v7473_v39  ;;  %v7674_v26 = vpop.f32.mrf.mxu1  ;;  %6279 = vmatpush3.bf16.msra.mxu0 %v6545_v42  ;;  %v7692_v27 = vld [vmem:[%s8454_s3 + $0x38] sm:$0xff]  }
 0x1e9   : > { %8491 = vst [vmem:[#allocation34_spill] sm:$0xff] %v7674_v26  ;;  %v6019_v55 = vpop.f32.mrf.mxu0  ;;  %8496 = vst [vmem:[#allocation39_spill] sm:$0xff] %v7692_v27  ;;  %6240 = vmatprep.subr.bf16.mxu1 %v7692_v27  ;;  %v7718_v27 = vld [vmem:[%s8454_s3 + $0x138] sm:$0xff]  }
 0x1ea   : > { %8490 = vst [vmem:[#allocation33_spill] sm:$0xff] %v7672_v25  ;;  %v7681_v21 = vadd.f32 %v6019_v55, %v7477_v10  ;;  %v7683_v2 = vpop.f32.mrf.mxu1  ;;  %8505 = vst [vmem:[#allocation48_spill] sm:$0xff] %v7718_v27  ;;  %6312 = vmatprep.subr.bf16.mxu0 %v7718_v27 }
 0x1eb   : > { %8493 = vst [vmem:[#allocation36_spill] sm:$0xff] %v7683_v2  ;;  %v1918_v14 = vpop.f32.mrf.mxu0 }
 0x1ec   : > { %8492 = vst [vmem:[#allocation35_spill] sm:$0xff] %v7681_v21  ;;  %v7685_v18 = vadd.f32 %v1918_v14, %v1665_v46  ;;  %v7687_v39 = vpop.f32.mrf.mxu1 }
 0x1ed   : > { %8495 = vst [vmem:[#allocation38_spill] sm:$0xff] %v7687_v39  ;;  %v6022_v32 = vpop.f32.mrf.mxu0 }
 0x1ee   : > { %8494 = vst [vmem:[#allocation37_spill] sm:$0xff] %v7685_v18  ;;  %v7695_v61 = vadd.f32 %v6022_v32, %v7483_v37  ;;  %v7697_v10 = vpop.f32.mrf.mxu1 }
 0x1ef   : > { %8498 = vst [vmem:[#allocation41_spill] sm:$0xff] %v7697_v10  ;;  %v1931_v53 = vpop.f32.mrf.mxu0 }
 0x1f0   : > { %8497 = vst [vmem:[#allocation40_spill] sm:$0xff] %v7695_v61  ;;  %v7701_v4 = vadd.f32 %v1931_v53, %v7488_v22  ;;  %v7703_v55 = vpop.f32.mrf.mxu1 }
 0x1f1   : > { %8500 = vst [vmem:[#allocation43_spill] sm:$0xff] %v7703_v55  ;;  %v6023_v42 = vpop.f32.mrf.mxu0 }
 0x1f2   : > { %8499 = vst [vmem:[#allocation42_spill] sm:$0xff] %v7701_v4  ;;  %v7706_v46 = vadd.f32 %v6023_v42, %v7490_v8  ;;  %v7708_v14 = vpop.f32.mrf.mxu1 }
 0x1f3   : > { %8502 = vst [vmem:[#allocation45_spill] sm:$0xff] %v7708_v14  ;;  %v1934_v39 = vpop.f32.mrf.mxu0 }
 0x1f4   : > { %8501 = vst [vmem:[#allocation44_spill] sm:$0xff] %v7706_v46  ;;  %v7711_v37 = vadd.f32 %v1934_v39, %v7492_v36  ;;  %v7713_v32 = vpop.f32.mrf.mxu1 }
 0x1f5   : > { %8504 = vst [vmem:[#allocation47_spill] sm:$0xff] %v7713_v32  ;;  %v6090_v22 = vpop.f32.mrf.mxu0 }
 0x1f6   : > { %8503 = vst [vmem:[#allocation46_spill] sm:$0xff] %v7711_v37  ;;  %v6138_v53 = vpop.f32.mrf.mxu1 }
 0x1f7   : > { %v2432_v55 = vpop.f32.mrf.mxu0 }
 0x1f8   : > { %v2738_v8 = vpop.f32.mrf.mxu1 }
 0x1f9   : > { %v6091_v42 = vpop.f32.mrf.mxu0 }
 0x1fa   : > { %v7721_v46 = vpop.f32.mrf.mxu1 }
 0x1fb   : > { %v2435_v14 = vpop.f32.mrf.mxu0 }
 0x1fc   : > { %v7725_v36 = vpop.f32.mrf.mxu1 }
 0x1fd   : > { %v7723_v4 = vpop.f32.mrf.mxu0 }
 0x1fe   : > { %v7731_v37 = vpop.f32.mrf.mxu1 }
 0x1ff   : > { %v7727_v39 = vpop.f32.mrf.mxu0 }
 0x200   : > { %v7737_v27 = vpop.f32.mrf.mxu1 }
 0x201   : > { %v7729_v32 = vpop.f32.mrf.mxu0 }
 0x202   : > { %v7743_v21 = vpop.f32.mrf.mxu1 }
 0x203   : > { %v7733_v10 = vpop.f32.mrf.mxu0 }
 0x204   : > { %v7749_v54 = vpop.f32.mrf.mxu1 }
 0x205   : > { %v7735_v61 = vpop.f32.mrf.mxu0 }
 0x206   : > { %v7755_v3 = vpop.f32.mrf.mxu1 }
 0x207   : > { %v7739_v18 = vpop.f32.mrf.mxu0 }
 0x208   : > { %v7761_v31 = vpop.f32.mrf.mxu1 }
 0x209   : > { %v7741_v2 = vpop.f32.mrf.mxu0 }
 0x20a   : > { %v7767_v57 = vpop.f32.mrf.mxu1 }
 0x20b   : > { %v7745_v26 = vpop.f32.mrf.mxu0 }
 0x20c   : > { %v7773_v52 = vpop.f32.mrf.mxu1 }
 0x20d   : > { %v7747_v25 = vpop.f32.mrf.mxu0 }
 0x20f   : > { %v7751_v0 = vpop.f32.mrf.mxu0 }
 0x210   : > { %8506 = vst [vmem:[#allocation49_spill] sm:$0xff] %v7751_v0 }
 0x211   : > { %v7753_v50 = vpop.f32.mrf.mxu0 }
 0x212   : > { %8507 = vst [vmem:[#allocation50_spill] sm:$0xff] %v7753_v50 }
 0x213   : > { %v7757_v9 = vpop.f32.mrf.mxu0 }
 0x214   : > { %8508 = vst [vmem:[#allocation51_spill] sm:$0xff] %v7757_v9  ;;  %v7779_v9 = vpop.f32.mrf.mxu1 }
 0x215   : > { %v7759_v41 = vpop.f32.mrf.mxu0 }
 0x216   : > { %8509 = vst [vmem:[#allocation52_spill] sm:$0xff] %v7759_v41 }
 0x217   : > { %v7763_v43 = vpop.f32.mrf.mxu0 }
 0x218   : > { %8510 = vst [vmem:[#allocation53_spill] sm:$0xff] %v7763_v43  ;;  %v7785_v43 = vpop.f32.mrf.mxu1 }
 0x219   : > { %v7765_v38 = vpop.f32.mrf.mxu0  ;;  %8518 = vst [vmem:[#allocation61_spill] sm:$0xff] %v7785_v43 }
 0x21a   : > { %8511 = vst [vmem:[#allocation54_spill] sm:$0xff] %v7765_v38 }
 0x21b   : > { %v7769_v33 = vpop.f32.mrf.mxu0 }
 0x21c   : > { %8512 = vst [vmem:[#allocation55_spill] sm:$0xff] %v7769_v33  ;;  %v7791_v33 = vpop.f32.mrf.mxu1 }
 0x21d   : > { %v7771_v20 = vpop.f32.mrf.mxu0  ;;  %8521 = vst [vmem:[#allocation64_spill] sm:$0xff] %v7791_v33 }
 0x21e   : > { %8513 = vst [vmem:[#allocation56_spill] sm:$0xff] %v7771_v20 }
 0x21f   : > { %v7775_v48 = vpop.f32.mrf.mxu0 }
 0x220   : > { %8514 = vst [vmem:[#allocation57_spill] sm:$0xff] %v7775_v48  ;;  %v7801_v48 = vpop.f32.mrf.mxu1 }
 0x221   : > { %v7777_v5 = vpop.f32.mrf.mxu0 }
 0x222   : > { %8515 = vst [vmem:[#allocation58_spill] sm:$0xff] %v7777_v5  ;;  %v1641_v5 = vadd.f32 %v7397_v40, %v7393_v34  ;;  %v7812_v34 = vpop.f32.mrf.mxu1 }
 0x223   : > { %v7781_v41 = vpop.f32.mrf.mxu0 }
 0x224   : > { %8516 = vst [vmem:[#allocation59_spill] sm:$0xff] %v7781_v41  ;;  %v2254_v41 = vadd.f32 %v7497_v45, %v7495_v59 }
 0x225   : > { %v7783_v50 = vpop.f32.mrf.mxu0 }
 0x226   : > { %8517 = vst [vmem:[#allocation60_spill] sm:$0xff] %v7783_v50  ;;  %v2561_v33 = vadd.f32 %v6090_v22, %v2254_v41 }
 0x227   : > { %v7787_v38 = vpop.f32.mrf.mxu0 }
 0x228   : > { %8519 = vst [vmem:[#allocation62_spill] sm:$0xff] %v7787_v38  ;;  %v2252_v38 = vadd.f32 %v7502_v29, %v7500_v1  ;;  %v2867_v45 = vadd.f32 %v6138_v53, %v2561_v33  ;;  %v1645_v1 = vadd.f32 %v7411_v7, %v7407_v60  ;;  %v3275_v53 = vld [vmem:[#allocation3] ss:$2 sm:$0xff] }
 0x229   : > { %v7789_v0 = vpop.f32.mrf.mxu0 }
 0x22a   : > { %8520 = vst [vmem:[#allocation63_spill] sm:$0xff] %v7789_v0  ;;  %v1947_v0 = vadd.f32 %v7512_v6, %v1641_v5  ;;  %v7822_v6 = vld [vmem:[%s8453_s2] ss:$0 sm:$0xff] }
 0x22b   : > { %v7793_v20 = vpop.f32.mrf.mxu0 }
 0x22c   : > { %8522 = vst [vmem:[#allocation65_spill] sm:$0xff] %v7793_v20  ;;  %v2559_v20 = vadd.f32 %v2432_v55, %v2252_v38  ;;  %v2253_v59 = vadd.f32 %v7514_v56, %v1947_v0  ;;  %v7826_v38 = vpop.f32.mrf.mxu1  ;;  %v2256_v56 = vadd.f32 %v7524_v16, %v7522_v63 }
 0x22d   : > { %v7795_v30 = vpop.f32.mrf.mxu0 }
 0x22e   : > { %8523 = vst [vmem:[#allocation66_spill] sm:$0xff] %v7795_v30  ;;  %v2255_v30 = vadd.f32 %v7507_v51, %v7505_v12  ;;  %v2258_v12 = vadd.f32 %v7519_v49, %v7517_v23  ;;  %v2865_v51 = vadd.f32 %v2738_v8, %v2559_v20  ;;  %v2560_v5 = vadd.f32 %v2435_v14, %v2253_v59  ;;  %v7838_v22 = vpop.f32.mrf.mxu1  ;;  %v3291_v8 = vld [vmem:[#allocation3 + $0x1] ss:$2 sm:$0xff] }
 0x22f   : > { %v7803_v50 = vpop.f32.mrf.mxu0  ;;  %v2259_v23 = vadd.f32 %v7529_v24, %v7527_v19  ;;  %v2563_v14 = vadd.f32 %v7727_v39, %v2256_v56  ;;  %v2262_v39 = vadd.f32 %v7538_v15, %v7536_v13 }
 0x230   : > { %8524 = vst [vmem:[#allocation67_spill] sm:$0xff] %v7803_v50  ;;  %v2562_v50 = vadd.f32 %v6091_v42, %v2255_v30  ;;  %v1951_v30 = vadd.f32 %v7531_v35, %v1645_v1  ;;  %v2565_v33 = vadd.f32 %v7723_v4, %v2258_v12  ;;  %v2866_v20 = vadd.f32 %v7725_v36, %v2560_v5  ;;  %v8525_v42 = vld [vmem:[#allocation5_spill] sm:$0xff] }
 0x231   : > { %v7808_v43 = vpop.f32.mrf.mxu0  ;;  %v1649_v36 = vadd.f32 %v8525_v42, %v7421_v28  ;;  %v3306_v28 = vmax.f32 %v3275_v53, %v3291_v8  ;;  %v2569_v15 = vadd.f32 %v7735_v61, %v2262_v39  ;;  %v8530_v61 = vld [vmem:[#allocation10_spill] sm:$0xff] }
 0x232   : > { %v2868_v7 = vadd.f32 %v7721_v46, %v2562_v50  ;;  %v2257_v35 = vadd.f32 %v7533_v17, %v1951_v30  ;;  %v2871_v4 = vadd.f32 %v7731_v37, %v2565_v33  ;;  %v2566_v46 = vadd.f32 %v7729_v32, %v2259_v23  ;;  %v7851_v37 = vpop.f32.mrf.mxu1  ;;  %v8528_v30 = vld [vmem:[#allocation7_spill] sm:$0xff] }
 0x233   : > { %v7814_v40 = vpop.f32.mrf.mxu0  ;;  %v2869_v17 = vadd.f32 %v7737_v27, %v2563_v14  ;;  %v3315_v27 = vld [vmem:[#allocation3 + $0x2] ss:$2 sm:$0xff] }
 0x234   : > { %v2872_v13 = vadd.f32 %v7743_v21, %v2566_v46 }
 0x235   : > { %v6186_v29 = vpop.f32.mrf.mxu0 }
 0x236   : > { %v3173_v41 = vadd.f32 %v6186_v29, %v2867_v45  ;;  %v2564_v45 = vadd.f32 %v7733_v10, %v2257_v35  ;;  %v8526_v29 = vld [vmem:[#allocation6_spill] sm:$0xff] }
 0x237   : > { %v3044_v60 = vpop.f32.mrf.mxu0  ;;  %v2260_v12 = vadd.f32 %v8526_v29, %v7541_v47 }
 0x238   : > { %v3212_v0 = vadd.f32 %v7822_v6, %v3173_v41  ;;  %v3171_v55 = vadd.f32 %v3044_v60, %v2865_v51  ;;  %v8527_v51 = vld [vmem:[#allocation9_spill] sm:$0xff]  ;;  %v8529_v60 = vld [vmem:[#allocation8_spill] sm:$0xff] }
 0x239   : > { %v6187_v49 = vpop.f32.mrf.mxu0  ;;  %v1955_v5 = vadd.f32 %v8527_v51, %v1649_v36  ;;  %v2567_v47 = vadd.f32 %v7739_v18, %v2260_v12  ;;  %v8531_v18 = vld [vmem:[#allocation11_spill] sm:$0xff] }
 0x23a   : > { %3245 = vst [vmem:[#allocation3 + $0x31] sm:$0xff] %v3212_v0  ;;  %v3210_v63 = vadd.f32 %v7822_v6, %v3171_v55  ;;  %v3174_v16 = vadd.f32 %v6187_v49, %v2868_v7  ;;  %v2263_v7 = vadd.f32 %v8529_v60, %v8528_v30  ;;  %v2870_v0 = vadd.f32 %v7749_v54, %v2564_v45  ;;  %v7864_v55 = vpop.f32.mrf.mxu1  ;;  %v8533_v45 = vld [vmem:[#allocation13_spill] sm:$0xff] }
 0x23b   : > { %v3047_v50 = vpop.f32.mrf.mxu0  ;;  %v2261_v49 = vadd.f32 %v8530_v61, %v1955_v5 }
 0x23c   : > { %3243 = vst [vmem:[#allocation3 + $0x19] sm:$0xff] %v3210_v63  ;;  %v3213_v19 = vadd.f32 %v7822_v6, %v3174_v16  ;;  %v3172_v24 = vadd.f32 %v3047_v50, %v2866_v20  ;;  %v3330_v20 = vmax.f32 %v3306_v28, %v3315_v27  ;;  %v2875_v63 = vadd.f32 %v7755_v3, %v2569_v15  ;;  %v8535_v27 = vld [vmem:[#allocation49_spill] sm:$0xff] }
 0x23d   : > { %v6190_v59 = vpop.f32.mrf.mxu0  ;;  %v2570_v16 = vadd.f32 %v7741_v2, %v2263_v7  ;;  %v2266_v50 = vadd.f32 %v8531_v18, %v7564_v11  ;;  %v8540_v18 = vld [vmem:[#allocation17_spill] sm:$0xff] }
 0x23e   : > { %3246 = vst [vmem:[#allocation3 + $0x39] sm:$0xff] %v3213_v19  ;;  %v3211_v32 = vadd.f32 %v7822_v6, %v3172_v24  ;;  %v3177_v1 = vadd.f32 %v6190_v59, %v2871_v4  ;;  %v2568_v4 = vadd.f32 %v7745_v26, %v2261_v49  ;;  %v2873_v19 = vadd.f32 %v7761_v31, %v2567_v47  ;;  %v7875_v24 = vpop.f32.mrf.mxu1  ;;  %v8532_v31 = vld [vmem:[#allocation12_spill] sm:$0xff] }
 0x23f   : > { %v3060_v41 = vpop.f32.mrf.mxu0  ;;  %v2573_v2 = vadd.f32 %v7747_v25, %v2266_v50  ;;  %v2876_v59 = vadd.f32 %v7767_v57, %v2570_v16  ;;  %v8538_v47 = vld [vmem:[#allocation16_spill] sm:$0xff]  ;;  %v8541_v50 = vld [vmem:[#allocation18_spill] sm:$0xff] }
 0x240   : > { %3244 = vst [vmem:[#allocation3 + $0x21] sm:$0xff] %v3211_v32  ;;  %v3216_v10 = vadd.f32 %v7822_v6, %v3177_v1  ;;  %v3175_v56 = vadd.f32 %v3060_v41, %v2869_v17  ;;  %v2264_v32 = vadd.f32 %v8533_v45, %v8532_v31  ;;  %v2267_v1 = vadd.f32 %v7584_v44, %v7582_v62  ;;  %v7886_v51 = vpop.f32.mrf.mxu1  ;;  %v8545_v31 = vld [vmem:[#allocation19_spill] sm:$0xff]  ;;  %v8546_v45 = vld [vmem:[#allocation20_spill] sm:$0xff] }
 0x241   : > { %v6191_v33 = vpop.f32.mrf.mxu0  ;;  %v2874_v29 = vadd.f32 %v7773_v52, %v2568_v4  ;;  %v8536_v52 = vld [vmem:[#allocation50_spill] sm:$0xff]  ;;  %v2268_v4 = vadd.f32 %v8541_v50, %v8540_v18 }
 0x242   : > { %3249 = vst [vmem:[#allocation3 + $0x61] sm:$0xff] %v3216_v10  ;;  %v3214_v21 = vadd.f32 %v7822_v6, %v3175_v56  ;;  %v3178_v23 = vadd.f32 %v6191_v33, %v2872_v13  ;;  %v8534_v13 = vld [vmem:[#allocation14_spill] sm:$0xff]  ;;  %v2571_v10 = vadd.f32 %v8535_v27, %v2264_v32  ;;  %v2879_v56 = vadd.f32 %v7779_v9, %v2573_v2 }
 0x243   : > { %v3063_v14 = vpop.f32.mrf.mxu0  ;;  %v2265_v15 = vadd.f32 %v8534_v13, %v7588_v58  ;;  %v2574_v30 = vadd.f32 %v8536_v52, %v2267_v1  ;;  %v2271_v32 = vadd.f32 %v8546_v45, %v8545_v31  ;;  %v8547_v1 = vld [vmem:[#allocation21_spill] sm:$0xff] }
 0x244   : > { %3247 = vst [vmem:[#allocation3 + $0x49] sm:$0xff] %v3214_v21  ;;  %v3217_v35 = vadd.f32 %v7822_v6, %v3178_v23  ;;  %v3176_v54 = vadd.f32 %v3063_v14, %v2870_v0  ;;  %v8537_v0 = vld [vmem:[#allocation15_spill] sm:$0xff]  ;;  %v7898_v14 = vpop.f32.mrf.mxu1  ;;  %v3526_v13 = vld [vmem:[#allocation4 + $0x1] sm:$0xff] }
 0x245   : > { %v6194_v46 = vpop.f32.mrf.mxu0  ;;  %v3277_v8 = vld [vmem:[#allocation3 + $0x30] ss:$2 sm:$0xff]  ;;  %v3293_v42 = vld [vmem:[#allocation3 + $0x31] ss:$2 sm:$0xff]  ;;  %v2270_v21 = vadd.f32 %v8538_v47, %v8537_v0  ;;  %v8539_v23 = vld [vmem:[#allocation51_spill] sm:$0xff] }
 0x246   : > { %3250 = vst [vmem:[#allocation3 + $0x69] sm:$0xff] %v3217_v35  ;;  %v3215_v53 = vadd.f32 %v7822_v6, %v3176_v54  ;;  %v3181_v3 = vadd.f32 %v6194_v46, %v2875_v63  ;;  %v3307_v5 = vmax.f32 %v3277_v8, %v3293_v42  ;;  %v2572_v61 = vadd.f32 %v8539_v23, %v2265_v15  ;;  %v3317_v49 = vld [vmem:[#allocation3 + $0x32] ss:$2 sm:$0xff]  ;;  %v3434_v63 = vld [vmem:[#allocation3 + $0x31] ss:$2 sm:$0xff]  ;;  %v7912_v15 = vpop.f32.mrf.mxu1 }
 0x247   : > { %v3338_v36 = vld [vmem:[#allocation3 + $0x18] ss:$2 sm:$0xff]  ;;  %v3076_v39 = vpop.f32.mrf.mxu0  ;;  %v3362_v25 = vld [vmem:[#allocation3 + $0x19] ss:$2 sm:$0xff]  ;;  %v8542_v46 = vld [vmem:[#allocation61_spill] sm:$0xff] }
 0x248   : > { %v3353_v11 = vmax.f32 %v3330_v20, %v3338_v36  ;;  %3248 = vst [vmem:[#allocation3 + $0x51] sm:$0xff] %v3215_v53  ;;  %v3220_v26 = vadd.f32 %v7822_v6, %v3181_v3  ;;  %v3179_v17 = vadd.f32 %v3076_v39, %v2873_v19  ;;  %v3386_v62 = vld [vmem:[#allocation3 + $0x1a] ss:$2 sm:$0xff]  ;;  %v3331_v9 = vmax.f32 %v3307_v5, %v3317_v49 }
 0x249   : > { %v6195_v12 = vpop.f32.mrf.mxu0  ;;  %v3410_v58 = vld [vmem:[#allocation3 + $0x30] ss:$2 sm:$0xff]  ;;  %v2877_v19 = vadd.f32 %v8542_v46, %v2571_v10  ;;  %v8543_v53 = vld [vmem:[#allocation52_spill] sm:$0xff]  ;;  %v8551_v49 = vld [vmem:[#allocation23_spill] sm:$0xff] }
 0x24a   : > { %v3377_v28 = vmax.f32 %v3353_v11, %v3362_v25  ;;  %3253 = vst [vmem:[#allocation3 + $0x91] sm:$0xff] %v3220_v26  ;;  %v3218_v57 = vadd.f32 %v7822_v6, %v3179_v17  ;;  %v3182_v41 = vadd.f32 %v6195_v12, %v2876_v59  ;;  %v2577_v3 = vadd.f32 %v8543_v53, %v2270_v21  ;;  %v8544_v39 = vld [vmem:[#allocation64_spill] sm:$0xff]  ;;  %v3458_v5 = vld [vmem:[#allocation3 + $0x32] ss:$2 sm:$0xff] }
 0x24b   : > { %v3079_v44 = vpop.f32.mrf.mxu0  ;;  %v2880_v59 = vadd.f32 %v8544_v39, %v2574_v30  ;;  %v2878_v12 = vadd.f32 %v7801_v48, %v2572_v61  ;;  %v8554_v53 = vld [vmem:[#allocation25_spill] sm:$0xff] }
 0x24c   : > { %v3401_v60 = vmax.f32 %v3377_v28, %v3386_v62  ;;  %3251 = vst [vmem:[#allocation3 + $0x79] sm:$0xff] %v3218_v57  ;;  %v3221_v7 = vadd.f32 %v7822_v6, %v3182_v41  ;;  %v3180_v33 = vadd.f32 %v3079_v44, %v2874_v29  ;;  %v8548_v29 = vld [vmem:[#allocation22_spill] sm:$0xff]  ;;  %v8549_v44 = vld [vmem:[#allocation53_spill] sm:$0xff]  ;;  %v2883_v30 = vadd.f32 %v7812_v34, %v2577_v3  ;;  %v8553_v34 = vld [vmem:[#allocation55_spill] sm:$0xff] }
 0x24d   : > { %v6198_v20 = vpop.f32.mrf.mxu0  ;;  %v3279_v2 = vld [vmem:[#allocation3 + $0x60] ss:$2 sm:$0xff]  ;;  %v3295_v8 = vld [vmem:[#allocation3 + $0x61] ss:$2 sm:$0xff]  ;;  %v2269_v25 = vadd.f32 %v8548_v29, %v8547_v1  ;;  %v2575_v52 = vadd.f32 %v8549_v44, %v2268_v4  ;;  %v8555_v3 = vld [vmem:[#allocation26_spill] sm:$0xff] }
 0x24e   : > { %v3425_v16 = vmax.f32 %v3401_v60, %v3410_v58  ;;  %3254 = vst [vmem:[#allocation3 + $0x99] sm:$0xff] %v3221_v7  ;;  %v3219_v35 = vadd.f32 %v7822_v6, %v3180_v33  ;;  %v3185_v54 = vadd.f32 %v6198_v20, %v2879_v56  ;;  %v3308_v27 = vmax.f32 %v3279_v2, %v3295_v8  ;;  %v8550_v60 = vld [vmem:[#allocation54_spill] sm:$0xff]  ;;  %v8552_v58 = vld [vmem:[#allocation24_spill] sm:$0xff]  ;;  %v8557_v1 = vld [vmem:[#allocation27_spill] sm:$0xff] }
 0x24f   : > { %v3340_v42 = vld [vmem:[#allocation3 + $0x48] ss:$2 sm:$0xff]  ;;  %v3092_v36 = vpop.f32.mrf.mxu0  ;;  %v3364_v28 = vld [vmem:[#allocation3 + $0x49] ss:$2 sm:$0xff]  ;;  %v2578_v48 = vadd.f32 %v8550_v60, %v2271_v32  ;;  %v2274_v20 = vadd.f32 %v8552_v58, %v8551_v49  ;;  %v2272_v2 = vadd.f32 %v8555_v3, %v8554_v53  ;;  %v2881_v8 = vadd.f32 %v7826_v38, %v2575_v52 }
 0x250   : > { %v3449_v11 = vmax.f32 %v3425_v16, %v3434_v63  ;;  %v3354_v26 = vmax.f32 %v3331_v9, %v3340_v42  ;;  %3252 = vst [vmem:[#allocation3 + $0x81] sm:$0xff] %v3219_v35  ;;  %v3224_v17 = vadd.f32 %v7822_v6, %v3185_v54  ;;  %v3183_v57 = vadd.f32 %v3092_v36, %v2877_v19  ;;  %v3388_v7 = vld [vmem:[#allocation3 + $0x4a] ss:$2 sm:$0xff]  ;;  %v7928_v54 = vpop.f32.mrf.mxu1  ;;  %v3436_v50 = vld [vmem:[#allocation3 + $0x61] ss:$2 sm:$0xff] }
 0x251   : > { %v6199_v41 = vpop.f32.mrf.mxu0  ;;  %v2576_v9 = vadd.f32 %v8553_v34, %v2269_v25  ;;  %v3319_v63 = vld [vmem:[#allocation3 + $0x62] ss:$2 sm:$0xff] }
 0x252   : > { %v3378_v10 = vmax.f32 %v3354_v26, %v3364_v28  ;;  %3257 = vst [vmem:[#allocation3 + $0xc1] sm:$0xff] %v3224_v17  ;;  %v3186_v56 = vadd.f32 %v6199_v41, %v2880_v59  ;;  %v7914_v62 = vmax.f32 %v3449_v11, %v3458_v5  ;;  %v3222_v33 = vadd.f32 %v7822_v6, %v3183_v57  ;;  %v3412_v16 = vld [vmem:[#allocation3 + $0x60] ss:$2 sm:$0xff]  ;;  %v8560_v5 = vld [vmem:[#allocation30_spill] sm:$0xff]  ;;  %v8561_v60 = vld [vmem:[#allocation57_spill] sm:$0xff] }
 0x253   : > { %v3095_v0 = vpop.f32.mrf.mxu0  ;;  %v3332_v18 = vmax.f32 %v3308_v27, %v3319_v63  ;;  %v8556_v42 = vld [vmem:[#allocation56_spill] sm:$0xff]  ;;  %v2884_v17 = vadd.f32 %v7838_v22, %v2578_v48  ;;  %v2882_v38 = vadd.f32 %v7851_v37, %v2576_v9  ;;  %v7942_v22 = vpop.f32.mrf.mxu1  ;;  %v2579_v48 = vadd.f32 %v8561_v60, %v2272_v2  ;;  %v8563_v34 = vld [vmem:[#allocation31_spill] sm:$0xff] }
 0x254   : > { %v3402_v47 = vmax.f32 %v3378_v10, %v3388_v7  ;;  %v3225_v21 = vadd.f32 %v7822_v6, %v3186_v56  ;;  %v3184_v23 = vadd.f32 %v3095_v0, %v2878_v12  ;;  %3481 = vst [vmem:[%s6673_s15] sm:$0xff] %v7914_v62  ;;  %3490 = vst [vmem:[#allocation4 + $0x11] sm:$0xff] %v7914_v62  ;;  %v8558_v29 = vld [vmem:[#allocation28_spill] sm:$0xff]  ;;  %v8559_v12 = vld [vmem:[#allocation29_spill] sm:$0xff] }
 0x255   : > { %v3534_v61 = vpack.c.bf16 %v7914_v62, %v3526_v13  ;;  %3255 = vst [vmem:[#allocation3 + $0xa9] sm:$0xff] %v3222_v33  ;;  %v6202_v35 = vpop.f32.mrf.mxu0  ;;  %v2581_v36 = vadd.f32 %v8556_v42, %v2274_v20  ;;  %v3281_v39 = vld [vmem:[#allocation3 + $0x90] ss:$2 sm:$0xff]  ;;  %v3297_v59 = vld [vmem:[#allocation3 + $0x91] ss:$2 sm:$0xff]  ;;  %v2275_v25 = vadd.f32 %v8558_v29, %v8557_v1  ;;  %v2273_v28 = vadd.f32 %v8560_v5, %v8559_v12  ;;  %v8565_v63 = vld [vmem:[#allocation59_spill] sm:$0xff] }
 0x256   : > { %v3426_v4 = vmax.f32 %v3402_v47, %v3412_v16  ;;  %3258 = vst [vmem:[#allocation3 + $0xc9] sm:$0xff] %v3225_v21  ;;  %v3223_v46 = vadd.f32 %v7822_v6, %v3184_v23  ;;  %v3189_v19 = vadd.f32 %v6202_v35, %v2883_v30  ;;  %v3460_v57 = vld [vmem:[#allocation3 + $0x62] ss:$2 sm:$0xff]  ;;  %v3781_v10 = vld [vmem:[#allocation4 + $0x2] sm:$0xff]  ;;  %v3309_v44 = vmax.f32 %v3281_v39, %v3297_v59 }
 0x257   : > { %6232 = vmatprep.mubr.bf16.mxu1 %v3534_v61  ;;  %v3342_v11 = vld [vmem:[#allocation3 + $0x78] ss:$2 sm:$0xff]  ;;  %v3108_v26 = vpop.f32.mrf.mxu0  ;;  %v3366_v41 = vld [vmem:[#allocation3 + $0x79] ss:$2 sm:$0xff]  ;;  %v2887_v7 = vadd.f32 %v7864_v55, %v2581_v36  ;;  %v8564_v55 = vld [vmem:[#allocation32_spill] sm:$0xff]  ;;  %v2580_v16 = vadd.f32 %v8565_v63, %v2273_v28  ;;  %v2885_v39 = vadd.f32 %v7875_v24, %v2579_v48 }
 0x258   : > { %v3450_v31 = vmax.f32 %v3426_v4, %v3436_v50  ;;  %v3355_v45 = vmax.f32 %v3332_v18, %v3342_v11  ;;  %3256 = vst [vmem:[#allocation3 + $0xb1] sm:$0xff] %v3223_v46  ;;  %v3228_v32 = vadd.f32 %v7822_v6, %v3189_v19  ;;  %v3187_v13 = vadd.f32 %v3108_v26, %v2881_v8  ;;  %v8562_v33 = vld [vmem:[#allocation58_spill] sm:$0xff]  ;;  %v7960_v4 = vpop.f32.mrf.mxu1  ;;  %v8566_v8 = vld [vmem:[#allocation33_spill] sm:$0xff]  ;;  %v8568_v59 = vld [vmem:[#allocation60_spill] sm:$0xff] }
 0x259   : > { %v6203_v27 = vpop.f32.mrf.mxu0  ;;  %v2582_v37 = vadd.f32 %v8562_v33, %v2275_v25  ;;  %v3390_v0 = vld [vmem:[#allocation3 + $0x7a] ss:$2 sm:$0xff]  ;;  %v2278_v9 = vadd.f32 %v8564_v55, %v8563_v34  ;;  %v3438_v19 = vld [vmem:[#allocation3 + $0x91] ss:$2 sm:$0xff]  ;;  %v2886_v24 = vadd.f32 %v7898_v14, %v2580_v16 }
 0x25a   : > { %v7944_v56 = vmax.f32 %v3450_v31, %v3460_v57  ;;  %v3379_v52 = vmax.f32 %v3355_v45, %v3366_v41  ;;  %3261 = vst [vmem:[#allocation3 + $0xf1] sm:$0xff] %v3228_v32  ;;  %v3190_v30 = vadd.f32 %v6203_v27, %v2884_v17  ;;  %v3226_v47 = vadd.f32 %v7822_v6, %v3187_v13  ;;  %v3321_v35 = vld [vmem:[#allocation3 + $0x92] ss:$2 sm:$0xff]  ;;  %v8570_v5 = vld [vmem:[#allocation36_spill] sm:$0xff] }
 0x25b   : > { %v3111_v21 = vpop.f32.mrf.mxu0  ;;  %v7950_v23 = vld [vmem:[#allocation4 + $0x12] sm:$0xff]  ;;  %v3414_v18 = vld [vmem:[#allocation3 + $0x90] ss:$2 sm:$0xff]  ;;  %v3333_v46 = vmax.f32 %v3309_v44, %v3321_v35  ;;  %v2585_v11 = vadd.f32 %v8568_v59, %v2278_v9  ;;  %v2888_v32 = vadd.f32 %v7886_v51, %v2582_v37 }
 0x25c   : > { %3482 = vst [vmem:[%s6673_s15 + $0x8] sm:$0xff] %v7944_v56  ;;  %3491 = vst [vmem:[#allocation4 + $0x21] sm:$0xff] %v7944_v56  ;;  %v3403_v61 = vmax.f32 %v3379_v52, %v3390_v0  ;;  %v3229_v49 = vadd.f32 %v7822_v6, %v3190_v30  ;;  %v3188_v58 = vadd.f32 %v3111_v21, %v2882_v38  ;;  %v8567_v42 = vld [vmem:[#allocation34_spill] sm:$0xff]  ;;  %v8569_v12 = vld [vmem:[#allocation35_spill] sm:$0xff]  ;;  %v7974_v52 = vpop.f32.mrf.mxu1 }
 0x25d   : > { %v3789_v20 = vpack.c.bf16 %v7950_v23, %v3781_v10  ;;  %3259 = vst [vmem:[#allocation3 + $0xd9] sm:$0xff] %v3226_v47  ;;  %v6206_v50 = vpop.f32.mrf.mxu0  ;;  %v2276_v36 = vadd.f32 %v8567_v42, %v8566_v8  ;;  %v3283_v26 = vld [vmem:[#allocation3 + $0xc0] ss:$2 sm:$0xff]  ;;  %v3299_v17 = vld [vmem:[#allocation3 + $0xc1] ss:$2 sm:$0xff]  ;;  %v2279_v28 = vadd.f32 %v8570_v5, %v8569_v12  ;;  %v8571_v38 = vld [vmem:[#allocation37_spill] sm:$0xff]  ;;  %v2891_v37 = vadd.f32 %v7912_v15, %v2585_v11 }
 0x25e   : > { %v3427_v53 = vmax.f32 %v3403_v61, %v3414_v18  ;;  %3262 = vst [vmem:[#allocation3 + $0xf9] sm:$0xff] %v3229_v49  ;;  %v3227_v3 = vadd.f32 %v7822_v6, %v3188_v58  ;;  %v3193_v2 = vadd.f32 %v6206_v50, %v2887_v7  ;;  %v8572_v57 = vld [vmem:[#allocation38_spill] sm:$0xff]  ;;  %v3310_v30 = vmax.f32 %v3283_v26, %v3299_v17  ;;  %v8574_v0 = vld [vmem:[#allocation63_spill] sm:$0xff]  ;;  %v8575_v9 = vld [vmem:[#allocation40_spill] sm:$0xff] }
 0x25f   : > { %6280 = vmatprep.mubr.bf16.mxu0 %v3789_v20  ;;  %v3344_v31 = vld [vmem:[#allocation3 + $0xa8] ss:$2 sm:$0xff]  ;;  %v3124_v45 = vpop.f32.mrf.mxu0  ;;  %v2277_v41 = vadd.f32 %v8572_v57, %v8571_v38  ;;  %v3368_v27 = vld [vmem:[#allocation3 + $0xa9] ss:$2 sm:$0xff]  ;;  %v8573_v7 = vld [vmem:[#allocation62_spill] sm:$0xff]  ;;  %v2586_v47 = vadd.f32 %v8574_v0, %v2279_v28 }
 0x260   : > { %v3451_v1 = vmax.f32 %v3427_v53, %v3438_v19  ;;  %v3356_v29 = vmax.f32 %v3333_v46, %v3344_v31  ;;  %3260 = vst [vmem:[#allocation3 + $0xe1] sm:$0xff] %v3227_v3  ;;  %v3232_v25 = vadd.f32 %v7822_v6, %v3193_v2  ;;  %v3462_v13 = vld [vmem:[#allocation3 + $0x92] ss:$2 sm:$0xff]  ;;  %v3191_v10 = vadd.f32 %v3124_v45, %v2885_v39  ;;  %v3323_v50 = vld [vmem:[#allocation3 + $0xc2] ss:$2 sm:$0xff]  ;;  %v7998_v3 = vpop.f32.mrf.mxu1 }
 0x261   : > { %v6207_v44 = vpop.f32.mrf.mxu0  ;;  %v2583_v33 = vadd.f32 %v8573_v7, %v2276_v36  ;;  %v3392_v14 = vld [vmem:[#allocation3 + $0xaa] ss:$2 sm:$0xff]  ;;  %v6548_v15 = vld [vmem:[%s8454_s3 + $0x30] sm:$0xff]   ;;  %v3334_v2 = vmax.f32 %v3310_v30, %v3323_v50  ;;  %v2892_v5 = vadd.f32 %v7942_v22, %v2586_v47 }
 0x262   : > { %v7976_v51 = vmax.f32 %v3451_v1, %v3462_v13  ;;  %v3380_v60 = vmax.f32 %v3356_v29, %v3368_v27  ;;  %3265 = vst [vmem:[#allocation3 + $0x121] sm:$0xff] %v3232_v25  ;;  %v3194_v48 = vadd.f32 %v6207_v44, %v2888_v32  ;;  %v3230_v21 = vadd.f32 %v7822_v6, %v3191_v10  ;;  %v8576_v63 = vld [vmem:[#allocation41_spill] sm:$0xff]  ;;  %v3416_v46 = vld [vmem:[#allocation3 + $0xc0] ss:$2 sm:$0xff]  ;;  %v3440_v8 = vld [vmem:[#allocation3 + $0xc1] ss:$2 sm:$0xff] }
 0x263   : > { %v3127_v61 = vpop.f32.mrf.mxu0  ;;  %v7982_v49 = vld [vmem:[#allocation4 + $0x22] sm:$0xff]  ;;  %v2282_v16 = vadd.f32 %v8576_v63, %v8575_v9  ;;  %v8579_v11 = vld [vmem:[#allocation43_spill] sm:$0xff]  ;;  %v2889_v17 = vadd.f32 %v7928_v54, %v2583_v33  ;;  %v6167_v33 = vpop.f32.mrf.mxu1 }
 0x264   : > { %3483 = vst [vmem:[%s6673_s15 + $0x10] sm:$0xff] %v7976_v51  ;;  %3492 = vst [vmem:[#allocation4 + $0x31] sm:$0xff] %v7976_v51  ;;  %v3404_v58 = vmax.f32 %v3380_v60, %v3392_v14  ;;  %v3233_v20 = vadd.f32 %v7822_v6, %v3194_v48  ;;  %v3192_v34 = vadd.f32 %v3127_v61, %v2886_v24  ;;  %v8577_v35 = vld [vmem:[#allocation65_spill] sm:$0xff]  ;;  %v8578_v59 = vld [vmem:[#allocation42_spill] sm:$0xff] }
 0x265   : > { %v3535_v55 = vpack.c.bf16 %v7976_v51, %v7944_v56  ;;  %v2584_v18 = vadd.f32 %v8577_v35, %v2277_v41  ;;  %3263 = vst [vmem:[#allocation3 + $0x109] sm:$0xff] %v3230_v21  ;;  %v6210_v19 = vpop.f32.mrf.mxu0  ;;  %v4239_v53 = vpack.c.bf16 %v7982_v49, %v7950_v23  ;;  %v2280_v26 = vadd.f32 %v8579_v11, %v8578_v59  ;;  %v8580_v31 = vld [vmem:[#allocation66_spill] sm:$0xff]  ;;  %v8581_v12 = vld [vmem:[#allocation39_spill] sm:$0xff]  ;;  %v8582_v41 = vld [vmem:[#allocation44_spill] sm:$0xff] }
 0x266   : > { %v3428_v42 = vmax.f32 %v3404_v58, %v3416_v46  ;;  %3266 = vst [vmem:[#allocation3 + $0x129] sm:$0xff] %v3233_v20  ;;  %v3231_v36 = vadd.f32 %v7822_v6, %v3192_v34  ;;  %v3197_v39 = vadd.f32 %v6210_v19, %v2891_v37  ;;  %v2589_v45 = vadd.f32 %v8580_v31, %v2282_v16  ;;  %v3285_v32 = vld [vmem:[#allocation3 + $0xf0] ss:$2 sm:$0xff]  ;;  %v3301_v1 = vld [vmem:[#allocation3 + $0xf1] ss:$2 sm:$0xff]  ;;  %v8585_v10 = vld [vmem:[#allocation47_spill] sm:$0xff] }
 0x267   : > { %6233 = vmatmul.mubr.bf16.vlgmr.msra.gmra.mxu1 %v3535_v55  ;;  %v3346_v29 = vld [vmem:[#allocation3 + $0xd8] ss:$2 sm:$0xff]  ;;  %v3140_v25 = vpop.f32.mrf.mxu0  ;;  %v8583_v24 = vld [vmem:[#allocation45_spill] sm:$0xff]  ;;  %v2890_v30 = vadd.f32 %v7960_v4, %v2584_v18  ;;  %v3370_v22 = vld [vmem:[#allocation3 + $0xd9] ss:$2 sm:$0xff]  ;;  %v3311_v37 = vmax.f32 %v3285_v32, %v3301_v1 }
 0x268   : > { %6241 = vmatpush3.bf16.msra.mxu1 %v8581_v12  ;;  %v3452_v28 = vmax.f32 %v3428_v42, %v3440_v8  ;;  %v3357_v38 = vmax.f32 %v3334_v2, %v3346_v29  ;;  %3264 = vst [vmem:[#allocation3 + $0x111] sm:$0xff] %v3231_v36  ;;  %v3236_v57 = vadd.f32 %v7822_v6, %v3197_v39  ;;  %v6550_v54 = vld [vmem:[%s8454_s3 + $0x28] sm:$0xff]   ;;  %v3464_v60 = vld [vmem:[#allocation3 + $0xc2] ss:$2 sm:$0xff]  ;;  %v2853_v2 = vpop.f32.mrf.mxu1 }
 0x269   : > { %6242 = vmatprep.subr.bf16.mxu1 %v6548_v15  ;;  %v2283_v13 = vadd.f32 %v8583_v24, %v8582_v41  ;;  %v8584_v27 = vld [vmem:[#allocation46_spill] sm:$0xff]  ;;  %v3195_v48 = vadd.f32 %v3140_v25, %v2889_v17  ;;  %v6211_v7 = vpop.f32.mrf.mxu0  ;;  %v8586_v21 = vld [vmem:[#allocation67_spill] sm:$0xff]  ;;  %v2895_v58 = vadd.f32 %v7974_v52, %v2589_v45  ;;  %v6552_v19 = vld [vmem:[%s8454_s3 + $0x20] sm:$0xff]  }
 0x26a   : > { %v2281_v44 = vadd.f32 %v8585_v10, %v8584_v27  ;;  %v3381_v0 = vmax.f32 %v3357_v38, %v3370_v22  ;;  %3269 = vst [vmem:[#allocation3 + $0x151] sm:$0xff] %v3236_v57  ;;  %v3198_v47 = vadd.f32 %v6211_v7, %v2892_v5  ;;  %v8016_v14 = vmax.f32 %v3452_v28, %v3464_v60  ;;  %v3394_v34 = vld [vmem:[#allocation3 + $0xda] ss:$2 sm:$0xff]  ;;  %v3442_v42 = vld [vmem:[#allocation3 + $0xf1] ss:$2 sm:$0xff] }
 0x26b   : > { %v2587_v61 = vadd.f32 %v8586_v21, %v2280_v26  ;;  %v2590_v20 = vadd.f32 %v7808_v43, %v2283_v13  ;;  %v3234_v4 = vadd.f32 %v7822_v6, %v3195_v48  ;;  %v3143_v55 = vpop.f32.mrf.mxu0  ;;  %v8022_v9 = vld [vmem:[#allocation4 + $0x32] sm:$0xff]  ;;  %v3418_v50 = vld [vmem:[#allocation3 + $0xf0] ss:$2 sm:$0xff] }
 0x26c   : > { %6243 = vmatpush3.bf16.msra.mxu1 %v6548_v15  ;;  %v3405_v63 = vmax.f32 %v3381_v0, %v3394_v34  ;;  %v3237_v16 = vadd.f32 %v7822_v6, %v3198_v47  ;;  %v3196_v35 = vadd.f32 %v3143_v55, %v2890_v30  ;;  %v8027_v18 = vpack.c.bf16 %v8022_v9, %v7982_v49  ;;  %v6549_v52 = vld [vmem:[%s8454_s3 + $0x130] sm:$0xff]   ;;  %v8587_v45 = vld [vmem:[#allocation48_spill] sm:$0xff]  ;;  %v6551_v12 = vld [vmem:[%s8454_s3 + $0x128] sm:$0xff]  }
 0x26d   : > { %6244 = vmatprep.subr.bf16.mxu1 %v6550_v54  ;;  %3484 = vst [vmem:[%s6673_s15 + $0x18] sm:$0xff] %v8016_v14  ;;  %3493 = vst [vmem:[#allocation4 + $0x41] sm:$0xff] %v8016_v14  ;;  %v2588_v43 = vadd.f32 %v7814_v40, %v2281_v44  ;;  %v3325_v15 = vld [vmem:[#allocation3 + $0xf2] ss:$2 sm:$0xff]  ;;  %v6214_v46 = vpop.f32.mrf.mxu0  ;;  %v2893_v40 = vadd.f32 %v7998_v3, %v2587_v61  ;;  %v3303_v26 = vld [vmem:[#allocation3 + $0x121] ss:$2 sm:$0xff]  ;;  %v2896_v32 = vadd.f32 %v6167_v33, %v2590_v20 }
 0x26e   : > { %3267 = vst [vmem:[#allocation3 + $0x139] sm:$0xff] %v3234_v4  ;;  %v3335_v8 = vmax.f32 %v3311_v37, %v3325_v15  ;;  %v3429_v36 = vmax.f32 %v3405_v63, %v3418_v50  ;;  %3270 = vst [vmem:[#allocation3 + $0x159] sm:$0xff] %v3237_v16  ;;  %v3235_v39 = vadd.f32 %v7822_v6, %v3196_v35  ;;  %6281 = vmatmul.mubr.bf16.vlgmr.msra.gmra.mxu0 %v8027_v18  ;;  %v3287_v11 = vld [vmem:[#allocation3 + $0x120] ss:$2 sm:$0xff]  ;;  %v6553_v37 = vld [vmem:[%s8454_s3 + $0x120] sm:$0xff]  }
 0x26f   : > { %v3201_v59 = vadd.f32 %v6214_v46, %v2895_v58  ;;  %v3348_v17 = vld [vmem:[#allocation3 + $0x108] ss:$2 sm:$0xff]  ;;  %v3156_v31 = vpop.f32.mrf.mxu0  ;;  %6313 = vmatpush3.bf16.msra.mxu0 %v8587_v45  ;;  %v2894_v5 = vadd.f32 %v2853_v2, %v2588_v43  ;;  %v3372_v28 = vld [vmem:[#allocation3 + $0x109] ss:$2 sm:$0xff]  ;;  %v3312_v41 = vmax.f32 %v3287_v11, %v3303_v26  ;;  %v6556_v0 = vld [vmem:[%s8454_s3 + $0x10] sm:$0xff]  }
 0x270   : > { %6245 = vmatpush3.bf16.msra.mxu1 %v6550_v54  ;;  %v3453_v1 = vmax.f32 %v3429_v36, %v3442_v42  ;;  %v3358_v29 = vmax.f32 %v3335_v8, %v3348_v17  ;;  %3268 = vst [vmem:[#allocation3 + $0x141] sm:$0xff] %v3235_v39  ;;  %6314 = vmatprep.subr.bf16.mxu0 %v6549_v52  ;;  %v3466_v3 = vld [vmem:[#allocation3 + $0xf2] ss:$2 sm:$0xff]  ;;  %v6554_v54 = vld [vmem:[%s8454_s3 + $0x18] sm:$0xff]  }
 0x271   : > { %v3240_v25 = vadd.f32 %v7822_v6, %v3201_v59  ;;  %v3199_v38 = vadd.f32 %v3156_v31, %v2893_v40  ;;  %v6215_v57 = vpop.f32.mrf.mxu0  ;;  %6246 = vmatprep.subr.bf16.mxu1 %v6552_v19  ;;  %v3396_v10 = vld [vmem:[#allocation3 + $0x10a] ss:$2 sm:$0xff]  ;;  %v3444_v20 = vld [vmem:[#allocation3 + $0x121] ss:$2 sm:$0xff] }
 0x272   : > { %v3382_v24 = vmax.f32 %v3358_v29, %v3372_v28  ;;  %v3202_v13 = vadd.f32 %v6215_v57, %v2896_v32  ;;  %v8050_v27 = vmax.f32 %v3453_v1, %v3466_v3  ;;  %v3327_v47 = vld [vmem:[#allocation3 + $0x122] ss:$2 sm:$0xff] }
 0x273   : > { %3273 = vst [vmem:[#allocation3 + $0x181] sm:$0xff] %v3240_v25  ;;  %v3238_v44 = vadd.f32 %v7822_v6, %v3199_v38  ;;  %v3159_v30 = vpop.f32.mrf.mxu0  ;;  %6315 = vmatpush3.bf16.msra.mxu0 %v6549_v52  ;;  %v3420_v21 = vld [vmem:[#allocation3 + $0x120] ss:$2 sm:$0xff]  ;;  %v3336_v58 = vmax.f32 %v3312_v41, %v3327_v47  ;;  %v6560_v40 = vld [vmem:[%s8454_s3] sm:$0xff]   ;;  %v6559_v25 = vld [vmem:[%s8454_s3 + $0x108] sm:$0xff]  }
 0x274   : > { %v8053_v60 = vld [vmem:[#allocation4 + $0x42] sm:$0xff]  ;;  %6247 = vmatpush3.bf16.msra.mxu1 %v6552_v19  ;;  %v3406_v22 = vmax.f32 %v3382_v24, %v3396_v10  ;;  %v3241_v48 = vadd.f32 %v7822_v6, %v3202_v13  ;;  %v3200_v7 = vadd.f32 %v3159_v30, %v2894_v5  ;;  %6316 = vmatprep.subr.bf16.mxu0 %v6551_v12  ;;  %v6555_v43 = vld [vmem:[%s8454_s3 + $0x118] sm:$0xff]   ;;  %v6557_v59 = vld [vmem:[%s8454_s3 + $0x110] sm:$0xff]  }
 0x275   : > { %3485 = vst [vmem:[%s6673_s15 + $0x20] sm:$0xff] %v8050_v27  ;;  %3494 = vst [vmem:[#allocation4 + $0x51] sm:$0xff] %v8050_v27  ;;  %v8061_v33 = vpack.c.bf16 %v8050_v27, %v8016_v14  ;;  %6248 = vmatprep.subr.bf16.mxu1 %v6554_v54  ;;  %v4240_v61 = vpack.c.bf16 %v8053_v60, %v8022_v9  ;;  %v3289_v55 = vld [vmem:[#allocation3 + $0x150] ss:$2 sm:$0xff]  ;;  %v3305_v63 = vld [vmem:[#allocation3 + $0x151] ss:$2 sm:$0xff] }
 0x276   : > { %3271 = vst [vmem:[#allocation3 + $0x169] sm:$0xff] %v3238_v44  ;;  %v3430_v34 = vmax.f32 %v3406_v22, %v3420_v21  ;;  %3274 = vst [vmem:[#allocation3 + $0x189] sm:$0xff] %v3241_v48  ;;  %v3239_v4 = vadd.f32 %v7822_v6, %v3200_v7  ;;  %v6558_v6 = vld [vmem:[%s8454_s3 + $0x8] sm:$0xff]   ;;  %v3468_v15 = vld [vmem:[#allocation3 + $0x122] ss:$2 sm:$0xff]  ;;  %v3313_v19 = vmax.f32 %v3289_v55, %v3305_v63 }
 0x277   : > { %6236 = vmatprep.mubr.bf16.mxu1 %v8061_v33  ;;  %v3350_v16 = vld [vmem:[#allocation3 + $0x138] ss:$2 sm:$0xff]  ;;  %6317 = vmatpush3.bf16.msra.mxu0 %v6551_v12  ;;  %v3374_v50 = vld [vmem:[#allocation3 + $0x139] ss:$2 sm:$0xff]  ;;  %v6562_v12 = vld [vmem:[%s8454_s3 + $0xf8] sm:$0xff]  }
 0x278   : > { %6249 = vmatpush3.bf16.msra.mxu1 %v6554_v54  ;;  %v3454_v35 = vmax.f32 %v3430_v34, %v3444_v20  ;;  %v3359_v52 = vmax.f32 %v3336_v58, %v3350_v16  ;;  %3272 = vst [vmem:[#allocation3 + $0x171] sm:$0xff] %v3239_v4  ;;  %6318 = vmatprep.subr.bf16.mxu0 %v6553_v37  ;;  %v3398_v8 = vld [vmem:[#allocation3 + $0x13a] ss:$2 sm:$0xff]  ;;  %v3446_v45 = vld [vmem:[#allocation3 + $0x151] ss:$2 sm:$0xff] }
 0x279   : > { %6250 = vmatprep.subr.bf16.mxu1 %v6556_v0  ;;  %v3329_v11 = vld [vmem:[#allocation3 + $0x152] ss:$2 sm:$0xff]  ;;  %v6563_v47 = vld [vmem:[%s8454_s3 + $0x1b8] sm:$0xff]  }
 0x27a   : > { %v8079_v46 = vmax.f32 %v3454_v35, %v3468_v15  ;;  %v3383_v2 = vmax.f32 %v3359_v52, %v3374_v50  ;;  %v3422_v26 = vld [vmem:[#allocation3 + $0x150] ss:$2 sm:$0xff]  ;;  %v3337_v17 = vmax.f32 %v3313_v19, %v3329_v11  ;;  %v8105_v54 = vld [vmem:[#allocation4 + $0x10] sm:$0xff]  ;;  %v4089_v52 = vpack.c.bf16 %v7944_v56, %v7914_v62  ;;  %v6571_v11 = vld [vmem:[%s8454_s3 + $0x198] sm:$0xff]  }
 0x27b   : > { %6319 = vmatpush3.bf16.msra.mxu0 %v6553_v37  ;;  %v3470_v5 = vld [vmem:[#allocation3 + $0x152] ss:$2 sm:$0xff]  ;;  %v4090_v56 = vpack.c.bf16 %v8016_v14, %v7976_v51  ;;  %v8265_v49 = vld [vmem:[%s8454_s3 + $0x218] sm:$0xff]  }
 0x27c   : > { %v8081_v42 = vld [vmem:[#allocation4 + $0x52] sm:$0xff]  ;;  %6251 = vmatpush3.bf16.msra.mxu1 %v6556_v0  ;;  %3486 = vst [vmem:[%s6673_s15 + $0x28] sm:$0xff] %v8079_v46  ;;  %3495 = vst [vmem:[#allocation4 + $0x61] sm:$0xff] %v8079_v46  ;;  %v3407_v36 = vmax.f32 %v3383_v2, %v3398_v8  ;;  %6320 = vmatprep.subr.bf16.mxu0 %v6555_v43  ;;  %v3498_v57 = vld [vmem:[#allocation4] sm:$0xff]  ;;  %v4091_v8 = vpack.c.bf16 %v8079_v46, %v8050_v27 }
 0x27d   : > { %v8088_v39 = vpack.c.bf16 %v8081_v42, %v8053_v60  ;;  %6252 = vmatprep.subr.bf16.mxu1 %v6558_v6  ;;  %v6561_v44 = vld [vmem:[%s8454_s3 + $0x100] sm:$0xff]   ;;  %v3424_v30 = vld [vmem:[#allocation3 + $0x180] ss:$2 sm:$0xff]  ;;  %v3506_v22 = vpack.c.bf16 %v8105_v54, %v3498_v57  ;;  %v3448_v37 = vld [vmem:[#allocation3 + $0x181] ss:$2 sm:$0xff] }
 0x27e   : > { %v3431_v31 = vmax.f32 %v3407_v36, %v3422_v26  ;;  %v3472_v21 = vld [vmem:[#allocation3 + $0x182] ss:$2 sm:$0xff]  ;;  %v6566_v15 = vld [vmem:[%s8454_s3 + $0xe8] sm:$0xff]  }
 0x27f   : > { %6284 = vmatprep.mubr.bf16.mxu0 %v8088_v39  ;;  %v3352_v32 = vld [vmem:[#allocation3 + $0x168] ss:$2 sm:$0xff]  ;;  %6321 = vmatpush3.bf16.msra.mxu0 %v6555_v43  ;;  %v3376_v3 = vld [vmem:[#allocation3 + $0x169] ss:$2 sm:$0xff]  ;;  %v8126_v58 = vld [vmem:[#allocation4 + $0x30] sm:$0xff] }
 0x280   : > { %6253 = vmatpush3.bf16.msra.mxu1 %v6558_v6  ;;  %v3455_v1 = vmax.f32 %v3431_v31, %v3446_v45  ;;  %v3360_v29 = vmax.f32 %v3337_v17, %v3352_v32  ;;  %6322 = vmatprep.subr.bf16.mxu0 %v6557_v59  ;;  %v3400_v41 = vld [vmem:[#allocation3 + $0x16a] ss:$2 sm:$0xff]  ;;  %v8132_v55 = vld [vmem:[#allocation4 + $0x50] sm:$0xff] }
 0x281   : > { %6254 = vmatprep.subr.bf16.mxu1 %v6560_v40  ;;  %v3500_v4 = vld [vmem:[#allocation4 + $0x20] sm:$0xff]  ;;  %v6564_v35 = vld [vmem:[%s8454_s3 + $0xf0] sm:$0xff]   ;;  %v6567_v14 = vld [vmem:[%s8454_s3 + $0x1a8] sm:$0xff]  }
 0x282   : > { %v8103_v28 = vmax.f32 %v3455_v1, %v3470_v5  ;;  %v3384_v38 = vmax.f32 %v3360_v29, %v3376_v3  ;;  %v3507_v16 = vpack.c.bf16 %v8126_v58, %v3500_v4  ;;  %v8147_v43 = vld [vmem:[#allocation4 + $0x40] sm:$0xff]  ;;  %v6565_v19 = vld [vmem:[%s8454_s3 + $0x1b0] sm:$0xff]   ;;  %v3939_v51 = vpack.c.bf16 %v3500_v4, %v8105_v54  ;;  %v6570_v27 = vld [vmem:[%s8454_s3 + $0xd8] sm:$0xff]  }
 0x283   : > { %6323 = vmatpush3.bf16.msra.mxu0 %v6557_v59  ;;  %v8107_v24 = vld [vmem:[#allocation4 + $0x62] sm:$0xff]  ;;  %v8152_v6 = vpack.c.bf16 %v8132_v55, %v8147_v43  ;;  %v6573_v17 = vld [vmem:[%s8454_s3 + $0x190] sm:$0xff]   ;;  %v6578_v32 = vld [vmem:[%s8454_s3 + $0x178] sm:$0xff]   ;;  %v3940_v29 = vpack.c.bf16 %v8147_v43, %v8126_v58 }
 0x284   : > { %6255 = vmatpush3.bf16.msra.mxu1 %v6560_v40  ;;  %3487 = vst [vmem:[%s6673_s15 + $0x30] sm:$0xff] %v8103_v28  ;;  %3496 = vst [vmem:[#allocation4 + $0x71] sm:$0xff] %v8103_v28  ;;  %v3408_v13 = vmax.f32 %v3384_v38, %v3400_v41  ;;  %6324 = vmatprep.subr.bf16.mxu0 %v6559_v25  ;;  %v8114_v10 = vpack.c.bf16 %v8103_v28, %v8079_v46  ;;  %v3504_v62 = vld [vmem:[#allocation4 + $0x60] sm:$0xff]  ;;  %v6572_v40 = vld [vmem:[%s8454_s3 + $0xd0] sm:$0xff]  }
 0x285   : > { %6288 = vmatprep.subr.bf16.mxu1 %v6562_v12  ;;  %v4241_v48 = vpack.c.bf16 %v8107_v24, %v8081_v42  ;;  %v6568_v36 = vld [vmem:[%s8454_s3 + $0xe0] sm:$0xff]   ;;  %v6574_v26 = vld [vmem:[%s8454_s3 + $0xc8] sm:$0xff]   ;;  %v8219_v5 = vld [vmem:[%s8454_s3 + $0x238] sm:$0xff]  }
 0x286   : > { %v3432_v7 = vmax.f32 %v3408_v13, %v3424_v30  ;;  %6237 = vmatmul.mubr.bf16.gmra.mxu1 %v8114_v10  ;;  %v6569_v59 = vld [vmem:[%s8454_s3 + $0x1a0] sm:$0xff]   ;;  %v6575_v45 = vld [vmem:[%s8454_s3 + $0x188] sm:$0xff]   ;;  %v8228_v38 = vld [vmem:[%s8454_s3 + $0x230] sm:$0xff]  }
 0x287   : > { %6325 = vmatpush3.bf16.msra.mxu0 %v6559_v25  ;;  %6256 = vmatprep.mubr.bf16.mxu1 %v3506_v22  ;;  %v6576_v31 = vld [vmem:[%s8454_s3 + $0xc0] sm:$0xff]   ;;  %v3941_v25 = vpack.c.bf16 %v3504_v62, %v8132_v55  ;;  %v6582_v3 = vld [vmem:[%s8454_s3 + $0x168] sm:$0xff]   ;;  %v4389_v13 = vld [vmem:[#allocation4 + $0x90] sm:$0xff] }
 0x288   : > { %v3456_v0 = vmax.f32 %v3432_v7, %v3448_v37  ;;  %6326 = vmatprep.subr.bf16.mxu0 %v6561_v44  ;;  %v6577_v1 = vld [vmem:[%s8454_s3 + $0x180] sm:$0xff]   ;;  %v8241_v41 = vld [vmem:[%s8454_s3 + $0x228] sm:$0xff]   ;;  %v6588_v23 = vld [vmem:[%s8454_s3 + $0x150] sm:$0xff]  }
 0x289   : > { %v6584_v54 = vld [vmem:[%s8454_s3 + $0x160] sm:$0xff]   ;;  %v6591_v37 = vld [vmem:[%s8454_s3 + $0x208] sm:$0xff]   ;;  %v4533_v55 = vld [vmem:[#allocation4 + $0x31] sm:$0xff] }
 0x28a   : > { %v8128_v20 = vmax.f32 %v3456_v0, %v3472_v21  ;;  %v8254_v22 = vld [vmem:[%s8454_s3 + $0x220] sm:$0xff]   ;;  %v6594_v0 = vld [vmem:[%s8454_s3 + $0x1f8] sm:$0xff]   ;;  %v6595_v21 = vld [vmem:[%s8454_s3 + $0x1f0] sm:$0xff]  }
 0x28b   : > { %v8130_v34 = vld [vmem:[#allocation4 + $0x72] sm:$0xff]  ;;  %6327 = vmatpush3.bf16.msra.mxu0 %v6561_v44  ;;  %v6592_v7 = vld [vmem:[%s8454_s3 + $0x140] sm:$0xff]   ;;  %v6596_v58 = vld [vmem:[%s8454_s3 + $0x1e8] sm:$0xff]  }
 0x28c   : > { %3488 = vst [vmem:[%s6673_s15 + $0x38] sm:$0xff] %v8128_v20  ;;  %3497 = vst [vmem:[#allocation4 + $0x81] sm:$0xff] %v8128_v20  ;;  %v8139_v63 = vpack.c.bf16 %v8130_v34, %v8107_v24  ;;  %6360 = vmatprep.subr.bf16.mxu0 %v6563_v47  ;;  %v8158_v50 = vld [vmem:[#allocation4 + $0x70] sm:$0xff]  ;;  %v4092_v46 = vpack.c.bf16 %v8128_v20, %v8103_v28  ;;  %v6586_v44 = vld [vmem:[%s8454_s3 + $0x158] sm:$0xff]  }
 0x28d   : > { %v8166_v2 = vpack.c.bf16 %v8158_v50, %v3504_v62  ;;  %v4532_v9 = vld [vmem:[#allocation4 + $0x21] sm:$0xff]  ;;  %v6598_v42 = vld [vmem:[%s8454_s3 + $0x1d8] sm:$0xff]  }
 0x28e   : > { %6285 = vmatmul.mubr.bf16.gmra.mxu0 %v8139_v63  ;;  %6257 = vmatmul.mubr.bf16.vlgmr.msra.gmra.mxu1 %v3507_v16  ;;  %v6597_v60 = vld [vmem:[%s8454_s3 + $0x1e0] sm:$0xff]   ;;  %v6600_v24 = vld [vmem:[%s8454_s3 + $0x1c8] sm:$0xff]  }
 0x28f   : > { %6328 = vmatprep.mubr.bf16.mxu0 %v4089_v52  ;;  %6289 = vmatpush3.bf16.msra.mxu1 %v6562_v12  ;;  %v6580_v12 = vld [vmem:[%s8454_s3 + $0x170] sm:$0xff]  }
 0x290   : > { %6260 = vmatprep.mubr.bf16.mxu1 %v8152_v6  ;;  %6290 = vmatprep.subr.bf16.mxu1 %v6564_v35 }
 0x293   : > { %6291 = vmatpush3.bf16.msra.mxu1 %v6564_v35  ;;  %v3938_v28 = vld [vmem:[#allocation4 + $0x80] sm:$0xff] }
 0x294   : > { %6292 = vmatprep.subr.bf16.mxu1 %v6566_v15  ;;  %v3942_v57 = vpack.c.bf16 %v3938_v28, %v8158_v50  ;;  %v4393_v30 = vpack.c.bf16 %v4389_v13, %v3938_v28  ;;  %v4238_v4 = vld [vmem:[#allocation4 + $0x82] sm:$0xff] }
 0x296   : > { %6329 = vmatmul.mubr.bf16.vlgmr.msra.gmra.mxu0 %v4090_v56  ;;  %6261 = vmatmul.mubr.bf16.gmra.mxu1 %v8166_v2 }
 0x297   : > { %6361 = vmatpush3.bf16.msra.mxu0 %v6563_v47  ;;  %6332 = vmatprep.mubr.bf16.mxu0 %v4091_v8  ;;  %v6593_v47 = vld [vmem:[%s8454_s3 + $0x200] sm:$0xff]  }
 0x298   : > { %6362 = vmatprep.subr.bf16.mxu0 %v6565_v19  ;;  %6293 = vmatpush3.bf16.msra.mxu1 %v6566_v15 }
 0x299   : > { %6304 = vmatprep.mubr.bf16.mxu1 %v3939_v51  ;;  %6294 = vmatprep.subr.bf16.mxu1 %v6568_v36 }
 0x29b   : > { %6363 = vmatpush3.bf16.msra.mxu0 %v6565_v19 }
 0x29c   : > { %6364 = vmatprep.subr.bf16.mxu0 %v6567_v14  ;;  %6295 = vmatpush3.bf16.msra.mxu1 %v6568_v36 }
 0x29d   : > { %6296 = vmatprep.subr.bf16.mxu1 %v6570_v27 }
 0x29e   : > { %6333 = vmatmul.mubr.bf16.gmra.mxu0 %v4092_v46 }
 0x29f   : > { %6365 = vmatpush3.bf16.msra.mxu0 %v6567_v14  ;;  %6376 = vmatprep.mubr.bf16.mxu0 %v3507_v16  ;;  %v4242_v16 = vpack.c.bf16 %v4238_v4, %v8130_v34  ;;  %v4539_v34 = vld [vmem:[#allocation4 + $0x91] sm:$0xff] }
 0x2a0   : > { %6366 = vmatprep.subr.bf16.mxu0 %v6569_v59  ;;  %6297 = vmatpush3.bf16.msra.mxu1 %v6570_v27  ;;  %v4543_v35 = vpack.c.bf16 %v4539_v34, %v8128_v20 }
 0x2a1   : > { %6298 = vmatprep.subr.bf16.mxu1 %v6572_v40 }
 0x2a3   : > { %6367 = vmatpush3.bf16.msra.mxu0 %v6569_v59 }
 0x2a4   : > { %6368 = vmatprep.subr.bf16.mxu0 %v6571_v11  ;;  %6299 = vmatpush3.bf16.msra.mxu1 %v6572_v40 }
 0x2a5   : > { %6300 = vmatprep.subr.bf16.mxu1 %v6574_v26 }
 0x2a7   : > { %6369 = vmatpush3.bf16.msra.mxu0 %v6571_v11 }
 0x2a8   : > { %6370 = vmatprep.subr.bf16.mxu0 %v6573_v17  ;;  %6301 = vmatpush3.bf16.msra.mxu1 %v6574_v26 }
 0x2a9   : > { %6302 = vmatprep.subr.bf16.mxu1 %v6576_v31 }
 0x2ab   : > { %6371 = vmatpush3.bf16.msra.mxu0 %v6573_v17 }
 0x2ac   : > { %6372 = vmatprep.subr.bf16.mxu0 %v6575_v45  ;;  %6303 = vmatpush3.bf16.msra.mxu1 %v6576_v31 }
 0x2ad   : > { %6336 = vmatprep.subr.bf16.mxu1 %v6578_v32 }
 0x2af   : > { %6373 = vmatpush3.bf16.msra.mxu0 %v6575_v45  ;;  %6305 = vmatmul.mubr.bf16.vlgmr.msra.gmra.mxu1 %v3940_v29 }
 0x2b0   : > { %6374 = vmatprep.subr.bf16.mxu0 %v6577_v1  ;;  %6308 = vmatprep.mubr.bf16.mxu1 %v3941_v25 }
 0x2b1   : > { %6337 = vmatpush3.bf16.msra.mxu1 %v6578_v32 }
 0x2b2   : > { %6338 = vmatprep.subr.bf16.mxu1 %v6580_v12 }
 0x2b3   : > { %6375 = vmatpush3.bf16.msra.mxu0 %v6577_v1 }
 0x2b4   : > { %6408 = vmatprep.subr.bf16.mxu0 %v8219_v5 }
 0x2b5   : > { %6339 = vmatpush3.bf16.msra.mxu1 %v6580_v12 }
 0x2b6   : > { %6377 = vmatmul.mubr.bf16.vlgmr.msra.gmra.mxu0 %v8152_v6  ;;  %6340 = vmatprep.subr.bf16.mxu1 %v6582_v3 }
 0x2b7   : > { %6380 = vmatprep.mubr.bf16.mxu0 %v8166_v2  ;;  %6409 = vmatpush3.bf16.msra.mxu0 %v8219_v5 }
 0x2b8   : > { %6410 = vmatprep.subr.bf16.mxu0 %v8228_v38  ;;  %6309 = vmatmul.mubr.bf16.gmra.mxu1 %v3942_v57 }
 0x2b9   : > { %6341 = vmatpush3.bf16.msra.mxu1 %v6582_v3  ;;  %6352 = vmatprep.mubr.bf16.mxu1 %v4239_v53  ;;  %v6590_v53 = vld [vmem:[%s8454_s3 + $0x148] sm:$0xff]  }
 0x2ba   : > { %6342 = vmatprep.subr.bf16.mxu1 %v6584_v54 }
 0x2bb   : > { %6411 = vmatpush3.bf16.msra.mxu0 %v8228_v38 }
 0x2bc   : > { %6412 = vmatprep.subr.bf16.mxu0 %v8241_v41 }
 0x2bd   : > { %6343 = vmatpush3.bf16.msra.mxu1 %v6584_v54 }
 0x2be   : > { %6381 = vmatmul.mubr.bf16.gmra.mxu0 %v4393_v30  ;;  %6344 = vmatprep.subr.bf16.mxu1 %v6586_v44 }
 0x2bf   : > { %6413 = vmatpush3.bf16.msra.mxu0 %v8241_v41  ;;  %6424 = vmatprep.mubr.bf16.mxu0 %v8027_v18  ;;  %v8275_v18 = vld [vmem:[%s8454_s3 + $0x210] sm:$0xff]  }
 0x2c0   : > { %6414 = vmatprep.subr.bf16.mxu0 %v8254_v22 }
 0x2c1   : > { %6345 = vmatpush3.bf16.msra.mxu1 %v6586_v44 }
 0x2c2   : > { %6346 = vmatprep.subr.bf16.mxu1 %v6588_v23 }
 0x2c3   : > { %6415 = vmatpush3.bf16.msra.mxu0 %v8254_v22 }
 0x2c4   : > { %6416 = vmatprep.subr.bf16.mxu0 %v8265_v49 }
 0x2c5   : > { %6347 = vmatpush3.bf16.msra.mxu1 %v6588_v23 }
 0x2c6   : > { %6348 = vmatprep.subr.bf16.mxu1 %v6590_v53 }
 0x2c7   : > { %6417 = vmatpush3.bf16.msra.mxu0 %v8265_v49 }
 0x2c8   : > { %6418 = vmatprep.subr.bf16.mxu0 %v8275_v18 }
 0x2c9   : > { %6349 = vmatpush3.bf16.msra.mxu1 %v6590_v53 }
 0x2ca   : > { %6350 = vmatprep.subr.bf16.mxu1 %v6592_v7 }
 0x2cb   : > { %6419 = vmatpush3.bf16.msra.mxu0 %v8275_v18 }
 0x2cc   : > { %6420 = vmatprep.subr.bf16.mxu0 %v6591_v37 }
 0x2cd   : > { %6351 = vmatpush3.bf16.msra.mxu1 %v6592_v7 }
 0x2ce   : > { %6384 = vmatprep.subr.bf16.mxu1 %v6594_v0 }
 0x2cf   : > { %6421 = vmatpush3.bf16.msra.mxu0 %v6591_v37 }
 0x2d0   : > { %6422 = vmatprep.subr.bf16.mxu0 %v6593_v47  ;;  %6353 = vmatmul.mubr.bf16.vlgmr.msra.gmra.mxu1 %v4240_v61  ;;  %v4540_v61 = vpack.c.bf16 %v4533_v55, %v4532_v9 }
 0x2d1   : > { %6356 = vmatprep.mubr.bf16.mxu1 %v4241_v48  ;;  %6385 = vmatpush3.bf16.msra.mxu1 %v6594_v0  ;;  %v6601_v48 = vld [vmem:[%s8454_s3 + $0x1c0] sm:$0xff]  }
 0x2d2   : > { %6386 = vmatprep.subr.bf16.mxu1 %v6595_v21 }
 0x2d3   : > { %6423 = vmatpush3.bf16.msra.mxu0 %v6593_v47 }
 0x2d5   : > { %6387 = vmatpush3.bf16.msra.mxu1 %v6595_v21 }
 0x2d6   : > { %6425 = vmatmul.mubr.bf16.vlgmr.msra.gmra.mxu0 %v8088_v39  ;;  %6388 = vmatprep.subr.bf16.mxu1 %v6596_v58  ;;  %v6599_v39 = vld [vmem:[%s8454_s3 + $0x1d0] sm:$0xff]  }
 0x2d8   : > { %6357 = vmatmul.mubr.bf16.gmra.mxu1 %v4242_v16 }
 0x2d9   : > { %6389 = vmatpush3.bf16.msra.mxu1 %v6596_v58  ;;  %6400 = vmatprep.mubr.bf16.mxu1 %v4540_v61 }
 0x2da   : > { %6390 = vmatprep.subr.bf16.mxu1 %v6597_v60 }
 0x2dd   : > { %6391 = vmatpush3.bf16.msra.mxu1 %v6597_v60 }
 0x2de   : > { %6392 = vmatprep.subr.bf16.mxu1 %v6598_v42 }
 0x2e1   : > { %6393 = vmatpush3.bf16.msra.mxu1 %v6598_v42 }
 0x2e2   : > { %6394 = vmatprep.subr.bf16.mxu1 %v6599_v39 }
 0x2e5   : > { %6395 = vmatpush3.bf16.msra.mxu1 %v6599_v39 }
 0x2e6   : > { %6396 = vmatprep.subr.bf16.mxu1 %v6600_v24 }
 0x2e9   : > { %6397 = vmatpush3.bf16.msra.mxu1 %v6600_v24 }
 0x2ea   : > { %6398 = vmatprep.subr.bf16.mxu1 %v6601_v48 }
 0x2ed   : > { %6399 = vmatpush3.bf16.msra.mxu1 %v6601_v48 }
 0x2ee   : > { %6432 = vmatprep.subr.bf16.mxu1 %v8219_v5 }
 0x2f0   : > { %6401 = vmatmul.mubr.bf16.vlgmr.msra.gmra.mxu1 %v8061_v33  ;;  %v4689_v33 = vld [vmem:[#allocation4 + $0x92] sm:$0xff] }
 0x2f1   : > { %6404 = vmatprep.mubr.bf16.mxu1 %v8114_v10  ;;  %6440 = vmatpush3.bf16.msra.mxu1 %v8219_v5  ;;  %v4693_v10 = vpack.c.bf16 %v4689_v33, %v4238_v4 }
 0x2f2   : > { %6433 = vmatprep.subr.bf16.mxu1 %v8228_v38 }
 0x2f5   : > { %6441 = vmatpush3.bf16.msra.mxu1 %v8228_v38 }
 0x2f6   : > { %6434 = vmatprep.subr.bf16.mxu1 %v8241_v41 }
 0x2f8   : > { %6405 = vmatmul.mubr.bf16.gmra.mxu1 %v4543_v35 }
 0x2f9   : > { %6442 = vmatpush3.bf16.msra.mxu1 %v8241_v41  ;;  %6428 = vmatprep.mubr.bf16.mxu1 %v8139_v63 }
 0x2fa   : > { %6435 = vmatprep.subr.bf16.mxu1 %v8254_v22 }
 0x2fd   : > { %6443 = vmatpush3.bf16.msra.mxu1 %v8254_v22 }
 0x2fe   : > { %6436 = vmatprep.subr.bf16.mxu1 %v8265_v49 }
 0x301   : > { %6444 = vmatpush3.bf16.msra.mxu1 %v8265_v49 }
 0x302   : > { %6437 = vmatprep.subr.bf16.mxu1 %v8275_v18 }
 0x305   : > { %6445 = vmatpush3.bf16.msra.mxu1 %v8275_v18 }
 0x306   : > { %6438 = vmatprep.subr.bf16.mxu1 %v6591_v37 }
 0x309   : > { %6446 = vmatpush3.bf16.msra.mxu1 %v6591_v37 }
 0x30a   : > { %6439 = vmatprep.subr.bf16.mxu1 %v6593_v47 }
 0x30d   : > { %6447 = vmatpush3.bf16.msra.mxu1 %v6593_v47 }
 0x310   : > { %6429 = vmatmul.mubr.bf16.vlgmr.msra.gmra.mxu1 %v4693_v10 }
 0x327   : > { %v6234_v20 = vpop.f32.mrf.mxu1 }
 0x329   : > { %v3637_v63 = vpop.f32.mrf.mxu1 }
 0x32b   : > { %v6235_v52 = vpop.f32.mrf.mxu1 }
 0x32d   : > { %v3640_v43 = vpop.f32.mrf.mxu1 }
 0x32e   : > { %v6282_v62 = vpop.f32.mrf.mxu0 }
 0x330   : > { %v3892_v19 = vpop.f32.mrf.mxu0 }
 0x332   : > { %v6283_v8 = vpop.f32.mrf.mxu0 }
 0x334   : > { %v3895_v51 = vpop.f32.mrf.mxu0 }
 0x346   : > { %v8337_v6 = vpop.f32.mrf.mxu1 }
 0x348   : > { %v8339_v15 = vpop.f32.mrf.mxu1 }
 0x34a   : > { %v8341_v50 = vpop.f32.mrf.mxu1 }
 0x34c   : > { %v8343_v56 = vpop.f32.mrf.mxu1 }
 0x34e   : > { %v6258_v2 = vpop.f32.mrf.mxu1  ;;  %v8345_v27 = vpop.f32.mrf.mxu0 }
 0x34f   : > { %v3759_v58 = vadd.f32 %v6258_v2, %v6234_v20 }
 0x350   : > { %v3750_v36 = vpop.f32.mrf.mxu1  ;;  %v8347_v59 = vpop.f32.mrf.mxu0 }
 0x351   : > { %v3751_v4 = vadd.f32 %v3750_v36, %v3637_v63  ;;  %v3925_v60 = vadd.f32 %v6282_v62, %v3759_v58 }
 0x352   : > { %v6259_v14 = vpop.f32.mrf.mxu1  ;;  %v8351_v11 = vpop.f32.mrf.mxu0 }
 0x353   : > { %v3762_v9 = vadd.f32 %v6259_v14, %v6235_v52  ;;  %v3923_v39 = vadd.f32 %v3892_v19, %v3751_v4 }
 0x354   : > { %v3753_v46 = vpop.f32.mrf.mxu1  ;;  %v8355_v17 = vpop.f32.mrf.mxu0 }
 0x355   : > { %v3754_v61 = vadd.f32 %v3753_v46, %v3640_v43  ;;  %v3926_v35 = vadd.f32 %v6283_v8, %v3762_v9 }
 0x356   : > { %v8349_v40 = vpop.f32.mrf.mxu1  ;;  %v6330_v45 = vpop.f32.mrf.mxu0 }
 0x357   : > { %v3924_v10 = vadd.f32 %v3895_v51, %v3754_v61 }
 0x358   : > { %v8353_v26 = vpop.f32.mrf.mxu1  ;;  %v4192_v1 = vpop.f32.mrf.mxu0 }
 0x35a   : > { %v8357_v31 = vpop.f32.mrf.mxu1  ;;  %v6331_v25 = vpop.f32.mrf.mxu0 }
 0x35c   : > { %v8359_v32 = vpop.f32.mrf.mxu1  ;;  %v4195_v5 = vpop.f32.mrf.mxu0 }
 0x35e   : > { %v8361_v28 = vpop.f32.mrf.mxu0 }
 0x360   : > { %v8363_v57 = vpop.f32.mrf.mxu0 }
 0x362   : > { %v8367_v41 = vpop.f32.mrf.mxu0 }
 0x364   : > { %v8371_v44 = vpop.f32.mrf.mxu0 }
 0x36f   : > { %v6306_v29 = vpop.f32.mrf.mxu1 }
 0x370   : > { %v4075_v42 = vadd.f32 %v6306_v29, %v3925_v60 }
 0x371   : > { %v4042_v12 = vpop.f32.mrf.mxu1 }
 0x372   : > { %v4073_v34 = vadd.f32 %v4042_v12, %v3923_v39  ;;  %v3775_v39 = vadd.f32 %v8349_v40, %v8337_v6 }
 0x373   : > { %v6307_v3 = vpop.f32.mrf.mxu1 }
 0x374   : > { %v4076_v33 = vadd.f32 %v6307_v3, %v3926_v35  ;;  %v3929_v35 = vadd.f32 %v8345_v27, %v3775_v39 }
 0x375   : > { %v4045_v38 = vpop.f32.mrf.mxu1 }
 0x376   : > { %v6378_v22 = vpop.f32.mrf.mxu0  ;;  %v4074_v2 = vadd.f32 %v4045_v38, %v3924_v10  ;;  %v4226_v43 = vadd.f32 %v6331_v25, %v4076_v33  ;;  %v3770_v33 = vadd.f32 %v8359_v32, %v8343_v56 }
 0x378   : > { %v8365_v54 = vpop.f32.mrf.mxu1  ;;  %v4493_v49 = vpop.f32.mrf.mxu0  ;;  %v4224_v46 = vadd.f32 %v4195_v5, %v4074_v2  ;;  %v3928_v40 = vadd.f32 %v8355_v17, %v3770_v33 }
 0x379   : > { %v4079_v2 = vadd.f32 %v8365_v54, %v3929_v35 }
 0x37a   : > { %v8369_v13 = vpop.f32.mrf.mxu1  ;;  %v6379_v18 = vpop.f32.mrf.mxu0 }
 0x37c   : > { %v8373_v30 = vpop.f32.mrf.mxu1  ;;  %v4496_v37 = vpop.f32.mrf.mxu0 }
 0x37e   : > { %v8375_v23 = vpop.f32.mrf.mxu1  ;;  %v8377_v47 = vpop.f32.mrf.mxu0 }
 0x37f   : > { %8588 = vst [vmem:[#allocation5_spill] sm:$0xff] %v8377_v47  ;;  %v4225_v47 = vadd.f32 %v6330_v45, %v4075_v42  ;;  %v8392_v45 = vld [vmem:[%s8455_s4] ss:$0 sm:$0xff]  ;;  %v4078_v27 = vadd.f32 %v8375_v23, %v3928_v40 }
 0x380   : > { %v8379_v55 = vpop.f32.mrf.mxu0 }
 0x381   : > { %8589 = vst [vmem:[#allocation6_spill] sm:$0xff] %v8379_v55  ;;  %v4223_v55 = vadd.f32 %v4192_v1, %v4073_v34  ;;  %v3778_v34 = vadd.f32 %v8357_v31, %v8341_v50  ;;  %v4229_v50 = vadd.f32 %v8361_v28, %v4079_v2 }
 0x382   : > { %v8383_v24 = vpop.f32.mrf.mxu0 }
 0x383   : > { %v3930_v6 = vadd.f32 %v8351_v11, %v3778_v34  ;;  %v4228_v11 = vadd.f32 %v8371_v44, %v4078_v27 }
 0x384   : > { %v8387_v20 = vpop.f32.mrf.mxu0 }
 0x390   : > { %v6354_v53 = vpop.f32.mrf.mxu1 }
 0x391   : > { %v4375_v36 = vadd.f32 %v6354_v53, %v4225_v47 }
 0x392   : > { %v4342_v7 = vpop.f32.mrf.mxu1 }
 0x393   : > { %v4373_v62 = vadd.f32 %v4342_v7, %v4223_v55  ;;  %v4526_v29 = vadd.f32 %v6378_v22, %v4375_v36 }
 0x394   : > { %v6355_v0 = vpop.f32.mrf.mxu1 }
 0x395   : > { %v4376_v19 = vadd.f32 %v6355_v0, %v4226_v43  ;;  %v4524_v51 = vadd.f32 %v4493_v49, %v4373_v62  ;;  %v8590_v62 = vld [vmem:[#allocation5_spill] sm:$0xff] }
 0x396   : > { %v4345_v21 = vpop.f32.mrf.mxu1  ;;  %v6426_v52 = vpop.f32.mrf.mxu0 }
 0x397   : > { %v4374_v8 = vadd.f32 %v4345_v21, %v4224_v46  ;;  %v4527_v25 = vadd.f32 %v6379_v18, %v4376_v19 }
 0x398   : > { %v8381_v16 = vpop.f32.mrf.mxu1  ;;  %v4793_v58 = vpop.f32.mrf.mxu0 }
 0x399   : > { %v4525_v47 = vadd.f32 %v4496_v37, %v4374_v8  ;;  %v3767_v37 = vadd.f32 %v8353_v26, %v8339_v15  ;;  %v4080_v26 = vadd.f32 %v8373_v30, %v3930_v6  ;;  %v4379_v56 = vadd.f32 %v8381_v16, %v4229_v50  ;;  %v4855_v50 = vld [vmem:[%s8458_s7] sm:$0x1] }
 0x39a   : > { %v8385_v48 = vpop.f32.mrf.mxu1  ;;  %v6427_v53 = vpop.f32.mrf.mxu0 }
 0x39b   : > { %v3927_v36 = vadd.f32 %v8347_v59, %v3767_v37  ;;  %v4230_v54 = vadd.f32 %v8367_v41, %v4080_v26  ;;  %v4530_v43 = vadd.f32 %v8590_v62, %v4379_v56 }
 0x39c   : > { %v6359_v63 = vpop.f32.mrf.mxu1  ;;  %v4796_v60 = vpop.f32.mrf.mxu0 }
 0x39e   : > { %v4361_v14 = vpop.f32.mrf.mxu1 }
 0x39f   : > { %v4378_v30 = vadd.f32 %v4361_v14, %v4228_v11 }
 0x3b0   : > { %v6402_v4 = vpop.f32.mrf.mxu1 }
 0x3b1   : > { %v4676_v12 = vadd.f32 %v6402_v4, %v4526_v29  ;;  %v8591_v29 = vld [vmem:[#allocation6_spill] sm:$0xff] }
 0x3b2   : > { %v4643_v3 = vpop.f32.mrf.mxu1 }
 0x3b3   : > { %v4826_v1 = vadd.f32 %v6426_v52, %v4676_v12  ;;  %v4674_v38 = vadd.f32 %v4643_v3, %v4524_v51  ;;  %v4077_v52 = vadd.f32 %v8369_v13, %v3927_v36  ;;  %v4380_v13 = vadd.f32 %v6359_v63, %v4230_v54 }
 0x3b4   : > { %v6403_v5 = vpop.f32.mrf.mxu1  ;;  %v4529_v63 = vadd.f32 %v8387_v20, %v4378_v30 }
 0x3b5   : > { %v4841_v22 = vadd.f32 %v8392_v45, %v4826_v1  ;;  %v4824_v7 = vadd.f32 %v4793_v58, %v4674_v38  ;;  %v4677_v0 = vadd.f32 %v6403_v5, %v4527_v25  ;;  %v4227_v31 = vadd.f32 %v8363_v57, %v4077_v52 }
 0x3b6   : > { %v4646_v49 = vpop.f32.mrf.mxu1 }
 0x3b7   : > { %4849 = vst [vmem:[%s6678_s18 + $0x10] sm:$0xff] %v4841_v22  ;;  %v4839_v21 = vadd.f32 %v8392_v45, %v4824_v7  ;;  %v4827_v55 = vadd.f32 %v6427_v53, %v4677_v0  ;;  %v4675_v9 = vadd.f32 %v4646_v49, %v4525_v47  ;;  %v4377_v59 = vadd.f32 %v8385_v48, %v4227_v31  ;;  %v4871_v31 = vld [vmem:[%s8459_s8] sm:$0x1] }
 0x3b8   : > { %v6406_v10 = vpop.f32.mrf.mxu1  ;;  %v4531_v48 = vadd.f32 %v8383_v24, %v4380_v13  ;;  %v4874_v44 = vmul.f32 %v4841_v22, %v4841_v22 }
 0x3b9   : > { %4847 = vst [vmem:[%s6678_s18] sm:$0xff] %v4839_v21  ;;  %v4842_v61 = vadd.f32 %v8392_v45, %v4827_v55  ;;  %v4825_v18 = vadd.f32 %v4796_v60, %v4675_v9  ;;  %v4872_v28 = vmul.f32 %v4839_v21, %v4839_v21  ;;  %v4680_v23 = vadd.f32 %v6406_v10, %v4530_v43 }
 0x3ba   : > { %v4659_v15 = vpop.f32.mrf.mxu1  ;;  %v4528_v16 = vadd.f32 %v8591_v29, %v4377_v59 }
 0x3bb   : > { %4850 = vst [vmem:[%s6678_s18 + $0x18] sm:$0xff] %v4842_v61  ;;  %v4840_v42 = vadd.f32 %v8392_v45, %v4825_v18  ;;  %v4875_v5 = vmul.f32 %v4842_v61, %v4842_v61 }
 0x3bc   : > { %v6407_v32 = vpop.f32.mrf.mxu1  ;;  %v4678_v4 = vadd.f32 %v4659_v15, %v4528_v16 }
 0x3bd   : > { %4848 = vst [vmem:[%s6678_s18 + $0x8] sm:$0xff] %v4840_v42  ;;  %v4873_v17 = vmul.f32 %v4840_v42, %v4840_v42  ;;  %v4856_v46 = vadd.f32 %v4840_v42, %v4839_v21  ;;  %v4681_v12 = vadd.f32 %v6407_v32, %v4531_v48 }
 0x3be   : > { %v4662_v19 = vpop.f32.mrf.mxu1 }
 0x3bf   : > { %v4880_v58 = vadd.f32 %v4873_v17, %v4872_v28  ;;  %v4857_v3 = vadd.f32 %v4856_v46, %v4841_v22  ;;  %v4679_v38 = vadd.f32 %v4662_v19, %v4529_v63 }
 0x3c1   : > { %v4881_v53 = vadd.f32 %v4880_v58, %v4874_v44  ;;  %v4858_v0 = vadd.f32 %v4857_v3, %v4842_v61 }
 0x3c3   : > { %v4882_v55 = vadd.f32 %v4881_v53, %v4875_v5 }
 0x3d0   : > { %v6430_v57 = vpop.f32.mrf.mxu1 }
 0x3d1   : > { %v4830_v41 = vadd.f32 %v6430_v57, %v4680_v23 }
 0x3d2   : > { %v4809_v8 = vpop.f32.mrf.mxu1 }
 0x3d3   : > { %v4845_v14 = vadd.f32 %v8392_v45, %v4830_v41  ;;  %v4828_v51 = vadd.f32 %v4809_v8, %v4678_v4 }
 0x3d4   : > { %v6431_v1 = vpop.f32.mrf.mxu1 }
 0x3d5   : > { %4853 = vst [vmem:[%s6678_s18 + $0x30] sm:$0xff] %v4845_v14  ;;  %v4843_v25 = vadd.f32 %v8392_v45, %v4828_v51  ;;  %v4831_v24 = vadd.f32 %v6431_v1, %v4681_v12  ;;  %v4878_v42 = vmul.f32 %v4845_v14, %v4845_v14 }
 0x3d6   : > { %v4812_v7 = vpop.f32.mrf.mxu1 }
 0x3d7   : > { %4851 = vst [vmem:[%s6678_s18 + $0x20] sm:$0xff] %v4843_v25  ;;  %v4876_v20 = vmul.f32 %v4843_v25, %v4843_v25  ;;  %v4846_v47 = vadd.f32 %v8392_v45, %v4831_v24  ;;  %v4829_v49 = vadd.f32 %v4812_v7, %v4679_v38  ;;  %v4859_v21 = vadd.f32 %v4858_v0, %v4843_v25 }
 0x3d9   : > { %4854 = vst [vmem:[%s6678_s18 + $0x38] sm:$0xff] %v4846_v47  ;;  %v4844_v22 = vadd.f32 %v8392_v45, %v4829_v49  ;;  %v4883_v9 = vadd.f32 %v4882_v55, %v4876_v20  ;;  %v4879_v34 = vmul.f32 %v4846_v47, %v4846_v47 }
 0x3db   : > { %4852 = vst [vmem:[%s6678_s18 + $0x28] sm:$0xff] %v4844_v22  ;;  %v4860_v60 = vadd.f32 %v4859_v21, %v4844_v22  ;;  %v4877_v18 = vmul.f32 %v4844_v22, %v4844_v22 }
 0x3dd   : > { %v4861_v39 = vadd.f32 %v4860_v60, %v4845_v14  ;;  %v4884_v37 = vadd.f32 %v4883_v9, %v4877_v18 }
 0x3df   : > { %v4862_v35 = vadd.f32 %v4861_v39, %v4846_v47  ;;  %v4885_v33 = vadd.f32 %v4884_v37, %v4878_v42 }
 0x3e1   : > { %v4863_v61 = vrot.slane %v4862_v35, 4  ;;  %v4886_v10 = vadd.f32 %v4885_v33, %v4879_v34 }
 0x3e3   : > { %v4864_v2 = vadd.f32 %v4863_v61, %v4862_v35  ;;  %v4887_v36 = vrot.slane %v4886_v10, 4 }
 0x3e5   : > { %v4865_v52 = vrot.slane %v4864_v2, 2  ;;  %v4888_v6 = vadd.f32 %v4887_v36, %v4886_v10 }
 0x3e7   : > { %v4866_v40 = vadd.f32 %v4865_v52, %v4864_v2  ;;  %v4889_v15 = vrot.slane %v4888_v6, 2 }
 0x3e9   : > { %v4867_v26 = vrot.slane %v4866_v40, 1  ;;  %v4890_v45 = vadd.f32 %v4889_v15, %v4888_v6 }
 0x3eb   : > { %v4868_v27 = vadd.f32 %v4867_v26, %v4866_v40  ;;  %v4891_v56 = vrot.slane %v4890_v45, 1 }
 0x3ed   : > { %v4869_v32 = vadd.f32 %v4868_v27, %v4855_v50  ;;  %v4892_v59 = vadd.f32 %v4891_v56, %v4890_v45 }
 0x3ef   : > { %4870 = vst [vmem:[%s8458_s7] sm:$0x1] %v4869_v32  ;;  %v4893_v54 = vadd.f32 %v4892_v59, %v4871_v31 }
 0x3f1   : > { %4894 = vst [vmem:[%s8459_s8] sm:$0x1] %v4893_v54 }
 0x3f2 PF: > { %s19_s27 = sadd.s32 1, %s6608_s27  }
 0x3f3   : > { %p16_p5 = scmp.ge.s32.totalorder %s19_s27, 4  }
 0x3f5   :  { %18 = sbr.rel (!%p16_p5) target bundleno = 1 (0x1), region = 193 }

</bundles_post_ra>
